<compile_context>
chip_gen: v7x
topology: tpu7x:2x2x1
jax: 0.10.0
libtpu: 0.0.40
codegen_flags: <defaults>
</compile_context>

<pallas_src>
import functools

import jax
import jax.numpy as jnp
import numpy as np
from jax import lax
from jax.experimental import pallas as pl
from jax.experimental.pallas import tpu as pltpu


def _upsample_conv_kernel(x_ref, w_ref, b_ref, o_ref):
    """Fused 2x nearest upsample + 3x3 'same' conv for one (batch, C_out, H) tile.

    x_ref: (H+2, W+2, C_in)     padded original image (full image, per batch elem)
    w_ref: (4, 4, C_in, TCO)    folded sub-pixel weights, indexed [phase, tap]
    b_ref: (1, TCO)             bias slice
    o_ref: (TH, 2, W, 2, TCO)   interleaved output tile: o[i, a, j, b, co]
    """
    _, wp2, cin = x_ref.shape
    w = wp2 - 2
    th = o_ref.shape[0]
    tco = o_ref.shape[-1]

    hi = pl.program_id(2)
    row0 = pl.multiple_of(hi * th, th)

    # Hoisted bias: accumulators start from one broadcast (no per-phase epilogue add).
    bias = jnp.broadcast_to(b_ref[...].astype(jnp.float32), (th * w, tco))
    accs = [bias, bias, bias, bias]

    # 9 distinct shifted windows of the padded original image; each window is
    # materialised once and contributes to the 1/2/4 phases that use it.
    for r in range(3):                            # padded-row offset = a + dr
        for c in range(3):                        # padded-col offset = b + dc
            win = x_ref[pl.ds(row0 + r, th), c:c + w, :]       # (TH, W, C_in)
            win = win.reshape(th * w, cin)        # native dtype -> native MXU rate
            for a in range(max(0, r - 1), min(2, r + 1)):
                dr = r - a                        # row tap in {0, 1}
                for b in range(max(0, c - 1), min(2, c + 1)):
                    dc = c - b                    # col tap in {0, 1}
                    phase = 2 * a + b
                    accs[phase] = accs[phase] + jnp.dot(
                        win, w_ref[phase, 2 * dr + dc],
                        preferred_element_type=jnp.float32)

    # One store + cast per phase, into the interleaved output tile.
    for a in range(2):
        for b in range(2):
            val = accs[2 * a + b].reshape(th, 1, w, 1, tco).astype(o_ref.dtype)
            o_ref[:, a:a + 1, :, b:b + 1, :] = val


def _subpixel_weights(weight):
    """Fold 3x3 conv weights (OIHW) into 4-phase x 4-tap effective weights.

    The fold is accumulated in f32 (review: bf16 per-slot sums lose precision)
    and cast back to the weight dtype so the MXU sees native-dtype operands.
    Returns (4, 4, C_in, C_out), indexed [2*a + b, 2*dr + dc, ci, co].
    """
    c_out, c_in = weight.shape[0], weight.shape[1]
    w_t = jnp.transpose(weight, (2, 3, 1, 0)).astype(jnp.float32)   # (3,3,Ci,Co)
    weff = jnp.zeros((4, 4, c_in, c_out), jnp.float32)
    for a in range(2):
        for b in range(2):
            for dh in range(3):
                dr = (a + dh - 1) // 2 - a + 1          # row tap in {0, 1}
                for dw in range(3):
                    dc = (b + dw - 1) // 2 - b + 1      # col tap in {0, 1}
                    weff = weff.at[2 * a + b, 2 * dr + dc].add(w_t[dh, dw])
    return weff.astype(weight.dtype)


def _largest_divisor_leq(n, target):
    t = max(1, min(n, target))
    while n % t:
        t -= 1
    return t


def upsample_forward(x, weight, bias, *, use_conv=True, th=None, tco=None):
    """Equivalent of Upsample(channels, use_conv=True, dims=2).forward on NCHW x."""
    b, c, h, w = x.shape
    assert weight.shape == (c, c, 3, 3)   # mirrors `assert x.shape[1] == channels`
    # TODO(synk): dims=1 / dims=3 conv_nd variants not implemented (module default dims=2).

    if not use_conv:
        # F.interpolate(scale_factor=2, mode='nearest') -- pure data movement.
        return jnp.repeat(jnp.repeat(x, 2, axis=2), 2, axis=3)

    # ---- tile sizes ---------------------------------------------------------
    if tco is None:                       # C_out tile: lane-dense & MXU-friendly
        if c % 256 == 0:
            tco = 256                     # full-width N for the 256x256 MXU (v6e/v7x)
        elif c % 128 == 0:
            tco = 128                     # v5e MXU is 128 wide
        else:
            tco = c
    if th is None:                        # H tile: bounds the per-step output block
        th = _largest_divisor_leq(h, 32)
    assert h % th == 0 and c % tco == 0 and (tco == c or tco % 128 == 0)
    nh, nc = h // th, c // tco

    # ---- layout glue (one HBM pass: NCHW->NHWC transpose + pad fuse in XLA) --
    # Channels go on the lane axis; the 2x-upsampled tensor is never built.
    x_nhwc = jnp.transpose(x, (0, 2, 3, 1))                        # (B, H, W, C)
    x_pad = jnp.pad(x_nhwc, ((0, 0), (1, 1), (1, 1), (0, 0)))      # (B, H+2, W+2, C)
    # TODO(synk): fuse the 1-px pad into the kernel (per-tile VMEM halo copy) to
    # drop this wrapper-side HBM pass entirely.

    weff = _subpixel_weights(weight)                               # (4, 4, C, C)
    bias2d = bias.reshape(1, c)

    # VMEM budget derived from the actual blocks (double-buffered) + slack.
    itemsize = jnp.dtype(x.dtype).itemsize
    x_blk = (h + 2) * (w + 2) * c * itemsize
    w_blk = 16 * c * tco * itemsize
    o_blk = th * 2 * w * 2 * tco * itemsize
    acc_bytes = 4 * th * w * tco * 4 + 2 * th * w * c * itemsize
    need = 2 * (x_blk + w_blk + o_blk) + acc_bytes + (8 << 20)
    try:
        cap = int(pltpu.get_tpu_info().vmem_capacity_bytes) * 3 // 4
    except Exception:                     # best-effort query; fall back conservatively
        cap = 96 << 20
    vmem_limit = int(min(max(need, 32 << 20), cap))

    flops = 2 * 16 * b * h * w * c * c    # 16 (TH*W, C) @ (C, TCO) dots per tile
    bytes_accessed = (b * (h + 2) * (w + 2) * c + 16 * c * c + c
                      + b * 4 * h * w * c) * itemsize

    y6 = pl.pallas_call(
        _upsample_conv_kernel,
        out_shape=jax.ShapeDtypeStruct((b, h, 2, w, 2, c), x.dtype),
        grid=(b, nc, nh),
        in_specs=[
            # Full padded image per batch element; block index is constant in
            # (co, hi) so it is only re-DMA'd when the batch index changes.
            pl.BlockSpec((None, h + 2, w + 2, c), lambda bi, co, hi: (bi, 0, 0, 0)),
            # Folded weights, tiled over C_out so the per-step block stays small.
            # TODO(synk): for very large C also single-buffer this constant-index
            # block (pipeline_mode=pl.Buffered(1)) and/or add a C_in reduction axis.
            pl.BlockSpec((4, 4, c, tco), lambda bi, co, hi: (0, 0, 0, co)),
            pl.BlockSpec((1, tco), lambda bi, co, hi: (0, co)),
        ],
        out_specs=pl.BlockSpec((None, th, 2, w, 2, tco),
                               lambda bi, co, hi: (bi, hi, 0, 0, 0, co)),
        compiler_params=pltpu.CompilerParams(
            dimension_semantics=("parallel", "parallel", "parallel"),
            vmem_limit_bytes=vmem_limit,
        ),
        cost_estimate=pl.CostEstimate(flops=flops, transcendentals=0,
                                      bytes_accessed=bytes_accessed),
    )(x_pad, weff, bias2d)

    # Interleaved (B, H, 2, W, 2, C) -> NHWC is a FREE reshape; one transpose
    # back to NCHW to honour the module's output layout.
    y = y6.reshape(b, 2 * h, 2 * w, c)
    return jnp.transpose(y, (0, 3, 1, 2))


def upsample_forward_ref(x, weight, bias, *, use_conv=True):
    """Pure-JAX reference (no Pallas) for correctness checking."""
    x_up = jnp.repeat(jnp.repeat(x, 2, axis=2), 2, axis=3)
    if not use_conv:
        return x_up
    y = lax.conv_general_dilated(
        x_up, weight, window_strides=(1, 1), padding=((1, 1), (1, 1)),
        dimension_numbers=("NCHW", "OIHW", "NCHW"),
        precision=lax.Precision.HIGHEST)
    return y + bias[None, :, None, None]


if __name__ == "__main__":
    def _params(key, c_, dtype):
        k2, k3 = jax.random.split(key)
        fan_in = c_ * 3 * 3            # Conv2d(channels, channels, 3) default init
        bound = 1.0 / float(np.sqrt(fan_in))
        wt = jax.random.uniform(k2, (c_, c_, 3, 3), jnp.float32, -bound, bound)
        bs = jax.random.uniform(k3, (c_,), jnp.float32, -bound, bound)
        return wt.astype(dtype), bs.astype(dtype)

    key = jax.random.PRNGKey(0)
    # (B, C, H, W, dtype, th, tco, rtol, atol): f32 toy case with 2 H-tiles, a
    # bf16 lane-dense (C=128) case, and an f32 multi-C_out-tile case (review).
    cases = [
        (2, 4, 16, 16, jnp.float32, 8, None, 1e-4, 1e-4),
        (1, 128, 8, 8, jnp.bfloat16, None, None, 2e-2, 2e-2),
        (1, 256, 8, 8, jnp.float32, None, 128, 1e-3, 1e-3),
    ]
    for (B, C, H, W, dtype, th, tco, rtol, atol) in cases:
        key, kx, kp = jax.random.split(key, 3)
        x = jax.random.normal(kx, (B, C, H, W), jnp.float32).astype(dtype)
        wt, bs = _params(kp, C, dtype)

        fn = jax.jit(functools.partial(upsample_forward, th=th, tco=tco))
        out = jax.block_until_ready(fn(x, wt, bs))

        ref = upsample_forward_ref(x.astype(jnp.float32), wt.astype(jnp.float32),
                                   bs.astype(jnp.float32))
        np.testing.assert_allclose(np.asarray(out.astype(jnp.float32)),
                                   np.asarray(ref), rtol=rtol, atol=atol)
        assert out.shape == (B, C, 2 * H, 2 * W)

    print("KERNEL_OK")
</pallas_src>

<mosaic_0001>
module attributes {stable_mosaic.version = 11 : i64} {
  func.func @_upsample_conv_kernel(%arg0: i32, %arg1: i32, %arg2: i32, %arg3: memref<1x18x18x4xf32, #tpu.memory_space<vmem>>, %arg4: memref<4x4x4x4xf32, #tpu.memory_space<vmem>>, %arg5: memref<1x4xf32, #tpu.memory_space<vmem>>, %arg6: memref<1x8x2x16x2x4xf32, #tpu.memory_space<vmem>>) attributes {dimension_semantics = [#tpu.dimension_semantics<parallel>, #tpu.dimension_semantics<parallel>, #tpu.dimension_semantics<parallel>], iteration_bounds = array<i64: 2, 1, 2>, scalar_prefetch = 0 : i64, scratch_operands = 0 : i64, tpu.core_type = #tpu.core_type<tc>, window_params = [{transform_indices = @transform_0, window_bounds = array<i64: 1, 18, 18, 4>}, {transform_indices = @transform_1, window_bounds = array<i64: 4, 4, 4, 4>}, {transform_indices = @transform_2, window_bounds = array<i64: 1, 4>}, {transform_indices = @transform_3, window_bounds = array<i64: 1, 8, 2, 16, 2, 4>}]} {
    %c8_i32 = arith.constant 8 : i32
    %0 = arith.muli %arg2, %c8_i32 : i32
    %1 = tpu.assume_multiple %0, 8 : i32
    %c0 = arith.constant 0 : index
    %c0_0 = arith.constant 0 : index
    %2 = vector.load %arg5[%c0, %c0_0] : memref<1x4xf32, #tpu.memory_space<vmem>>, vector<1x4xf32>
    %3 = vector.shape_cast %2 : vector<1x4xf32> to vector<1x4xf32>
    %4 = vector.broadcast %3 : vector<1x4xf32> to vector<128x4xf32>
    %c0_i32 = arith.constant 0 : i32
    %5 = arith.addi %1, %c0_i32 : i32
    %c0_1 = arith.constant 0 : index
    %6 = arith.index_cast %5 : i32 to index
    %c0_2 = arith.constant 0 : index
    %c0_3 = arith.constant 0 : index
    %7 = vector.load %arg3[%c0_1, %6, %c0_2, %c0_3] : memref<1x18x18x4xf32, #tpu.memory_space<vmem>>, vector<1x8x16x4xf32>
    %8 = vector.shape_cast %7 : vector<1x8x16x4xf32> to vector<8x16x4xf32>
    %9 = vector.shape_cast %8 : vector<8x16x4xf32> to vector<128x4xf32>
    %c0_4 = arith.constant 0 : index
    %c0_5 = arith.constant 0 : index
    %c0_6 = arith.constant 0 : index
    %c0_7 = arith.constant 0 : index
    %10 = vector.load %arg4[%c0_4, %c0_5, %c0_6, %c0_7] : memref<4x4x4x4xf32, #tpu.memory_space<vmem>>, vector<1x1x4x4xf32>
    %11 = vector.shape_cast %10 : vector<1x1x4x4xf32> to vector<4x4xf32>
    %cst = arith.constant dense<0.000000e+00> : vector<128x4xf32>
    %12 = tpu.matmul %9, %11, %cst {dimension_numbers = #tpu.dot_dimension_numbers<[1], [0], [0], [1], [0, 0, 1, 1], [], []>} : vector<128x4xf32>, vector<4x4xf32>, vector<128x4xf32> -> vector<128x4xf32>
    %13 = arith.addf %4, %12 : vector<128x4xf32>
    %c0_i32_8 = arith.constant 0 : i32
    %14 = arith.addi %1, %c0_i32_8 : i32
    %c0_9 = arith.constant 0 : index
    %15 = arith.index_cast %14 : i32 to index
    %c1 = arith.constant 1 : index
    %c0_10 = arith.constant 0 : index
    %16 = vector.load %arg3[%c0_9, %15, %c1, %c0_10] : memref<1x18x18x4xf32, #tpu.memory_space<vmem>>, vector<1x8x16x4xf32>
    %17 = vector.shape_cast %16 : vector<1x8x16x4xf32> to vector<8x16x4xf32>
    %18 = vector.shape_cast %17 : vector<8x16x4xf32> to vector<128x4xf32>
    %c0_11 = arith.constant 0 : index
    %c1_12 = arith.constant 1 : index
    %c0_13 = arith.constant 0 : index
    %c0_14 = arith.constant 0 : index
    %19 = vector.load %arg4[%c0_11, %c1_12, %c0_13, %c0_14] : memref<4x4x4x4xf32, #tpu.memory_space<vmem>>, vector<1x1x4x4xf32>
    %20 = vector.shape_cast %19 : vector<1x1x4x4xf32> to vector<4x4xf32>
    %cst_15 = arith.constant dense<0.000000e+00> : vector<128x4xf32>
    %21 = tpu.matmul %18, %20, %cst_15 {dimension_numbers = #tpu.dot_dimension_numbers<[1], [0], [0], [1], [0, 0, 1, 1], [], []>} : vector<128x4xf32>, vector<4x4xf32>, vector<128x4xf32> -> vector<128x4xf32>
    %22 = arith.addf %13, %21 : vector<128x4xf32>
    %c1_16 = arith.constant 1 : index
    %c0_17 = arith.constant 0 : index
    %c0_18 = arith.constant 0 : index
    %c0_19 = arith.constant 0 : index
    %23 = vector.load %arg4[%c1_16, %c0_17, %c0_18, %c0_19] : memref<4x4x4x4xf32, #tpu.memory_space<vmem>>, vector<1x1x4x4xf32>
    %24 = vector.shape_cast %23 : vector<1x1x4x4xf32> to vector<4x4xf32>
    %cst_20 = arith.constant dense<0.000000e+00> : vector<128x4xf32>
    %25 = tpu.matmul %18, %24, %cst_20 {dimension_numbers = #tpu.dot_dimension_numbers<[1], [0], [0], [1], [0, 0, 1, 1], [], []>} : vector<128x4xf32>, vector<4x4xf32>, vector<128x4xf32> -> vector<128x4xf32>
    %26 = arith.addf %4, %25 : vector<128x4xf32>
    %c0_i32_21 = arith.constant 0 : i32
    %27 = arith.addi %1, %c0_i32_21 : i32
    %c0_22 = arith.constant 0 : index
    %28 = arith.index_cast %27 : i32 to index
    %c2 = arith.constant 2 : index
    %c0_23 = arith.constant 0 : index
    %29 = vector.load %arg3[%c0_22, %28, %c2, %c0_23] : memref<1x18x18x4xf32, #tpu.memory_space<vmem>>, vector<1x8x16x4xf32>
    %30 = vector.shape_cast %29 : vector<1x8x16x4xf32> to vector<8x16x4xf32>
    %31 = vector.shape_cast %30 : vector<8x16x4xf32> to vector<128x4xf32>
    %c1_24 = arith.constant 1 : index
    %c1_25 = arith.constant 1 : index
    %c0_26 = arith.constant 0 : index
    %c0_27 = arith.constant 0 : index
    %32 = vector.load %arg4[%c1_24, %c1_25, %c0_26, %c0_27] : memref<4x4x4x4xf32, #tpu.memory_space<vmem>>, vector<1x1x4x4xf32>
    %33 = vector.shape_cast %32 : vector<1x1x4x4xf32> to vector<4x4xf32>
    %cst_28 = arith.constant dense<0.000000e+00> : vector<128x4xf32>
    %34 = tpu.matmul %31, %33, %cst_28 {dimension_numbers = #tpu.dot_dimension_numbers<[1], [0], [0], [1], [0, 0, 1, 1], [], []>} : vector<128x4xf32>, vector<4x4xf32>, vector<128x4xf32> -> vector<128x4xf32>
    %35 = arith.addf %26, %34 : vector<128x4xf32>
    %c1_i32 = arith.constant 1 : i32
    %36 = arith.addi %1, %c1_i32 : i32
    %c0_29 = arith.constant 0 : index
    %37 = arith.index_cast %36 : i32 to index
    %c0_30 = arith.constant 0 : index
    %c0_31 = arith.constant 0 : index
    %38 = vector.load %arg3[%c0_29, %37, %c0_30, %c0_31] : memref<1x18x18x4xf32, #tpu.memory_space<vmem>>, vector<1x8x16x4xf32>
    %39 = vector.shape_cast %38 : vector<1x8x16x4xf32> to vector<8x16x4xf32>
    %40 = vector.shape_cast %39 : vector<8x16x4xf32> to vector<128x4xf32>
    %c0_32 = arith.constant 0 : index
    %c2_33 = arith.constant 2 : index
    %c0_34 = arith.constant 0 : index
    %c0_35 = arith.constant 0 : index
    %41 = vector.load %arg4[%c0_32, %c2_33, %c0_34, %c0_35] : memref<4x4x4x4xf32, #tpu.memory_space<vmem>>, vector<1x1x4x4xf32>
    %42 = vector.shape_cast %41 : vector<1x1x4x4xf32> to vector<4x4xf32>
    %cst_36 = arith.constant dense<0.000000e+00> : vector<128x4xf32>
    %43 = tpu.matmul %40, %42, %cst_36 {dimension_numbers = #tpu.dot_dimension_numbers<[1], [0], [0], [1], [0, 0, 1, 1], [], []>} : vector<128x4xf32>, vector<4x4xf32>, vector<128x4xf32> -> vector<128x4xf32>
    %44 = arith.addf %22, %43 : vector<128x4xf32>
    %c2_37 = arith.constant 2 : index
    %c0_38 = arith.constant 0 : index
    %c0_39 = arith.constant 0 : index
    %c0_40 = arith.constant 0 : index
    %45 = vector.load %arg4[%c2_37, %c0_38, %c0_39, %c0_40] : memref<4x4x4x4xf32, #tpu.memory_space<vmem>>, vector<1x1x4x4xf32>
    %46 = vector.shape_cast %45 : vector<1x1x4x4xf32> to vector<4x4xf32>
    %cst_41 = arith.constant dense<0.000000e+00> : vector<128x4xf32>
    %47 = tpu.matmul %40, %46, %cst_41 {dimension_numbers = #tpu.dot_dimension_numbers<[1], [0], [0], [1], [0, 0, 1, 1], [], []>} : vector<128x4xf32>, vector<4x4xf32>, vector<128x4xf32> -> vector<128x4xf32>
    %48 = arith.addf %4, %47 : vector<128x4xf32>
    %c1_i32_42 = arith.constant 1 : i32
    %49 = arith.addi %1, %c1_i32_42 : i32
    %c0_43 = arith.constant 0 : index
    %50 = arith.index_cast %49 : i32 to index
    %c1_44 = arith.constant 1 : index
    %c0_45 = arith.constant 0 : index
    %51 = vector.load %arg3[%c0_43, %50, %c1_44, %c0_45] : memref<1x18x18x4xf32, #tpu.memory_space<vmem>>, vector<1x8x16x4xf32>
    %52 = vector.shape_cast %51 : vector<1x8x16x4xf32> to vector<8x16x4xf32>
    %53 = vector.shape_cast %52 : vector<8x16x4xf32> to vector<128x4xf32>
    %c0_46 = arith.constant 0 : index
    %c3 = arith.constant 3 : index
    %c0_47 = arith.constant 0 : index
    %c0_48 = arith.constant 0 : index
    %54 = vector.load %arg4[%c0_46, %c3, %c0_47, %c0_48] : memref<4x4x4x4xf32, #tpu.memory_space<vmem>>, vector<1x1x4x4xf32>
    %55 = vector.shape_cast %54 : vector<1x1x4x4xf32> to vector<4x4xf32>
    %cst_49 = arith.constant dense<0.000000e+00> : vector<128x4xf32>
    %56 = tpu.matmul %53, %55, %cst_49 {dimension_numbers = #tpu.dot_dimension_numbers<[1], [0], [0], [1], [0, 0, 1, 1], [], []>} : vector<128x4xf32>, vector<4x4xf32>, vector<128x4xf32> -> vector<128x4xf32>
    %57 = arith.addf %44, %56 : vector<128x4xf32>
    %c1_50 = arith.constant 1 : index
    %c2_51 = arith.constant 2 : index
    %c0_52 = arith.constant 0 : index
    %c0_53 = arith.constant 0 : index
    %58 = vector.load %arg4[%c1_50, %c2_51, %c0_52, %c0_53] : memref<4x4x4x4xf32, #tpu.memory_space<vmem>>, vector<1x1x4x4xf32>
    %59 = vector.shape_cast %58 : vector<1x1x4x4xf32> to vector<4x4xf32>
    %cst_54 = arith.constant dense<0.000000e+00> : vector<128x4xf32>
    %60 = tpu.matmul %53, %59, %cst_54 {dimension_numbers = #tpu.dot_dimension_numbers<[1], [0], [0], [1], [0, 0, 1, 1], [], []>} : vector<128x4xf32>, vector<4x4xf32>, vector<128x4xf32> -> vector<128x4xf32>
    %61 = arith.addf %35, %60 : vector<128x4xf32>
    %c2_55 = arith.constant 2 : index
    %c1_56 = arith.constant 1 : index
    %c0_57 = arith.constant 0 : index
    %c0_58 = arith.constant 0 : index
    %62 = vector.load %arg4[%c2_55, %c1_56, %c0_57, %c0_58] : memref<4x4x4x4xf32, #tpu.memory_space<vmem>>, vector<1x1x4x4xf32>
    %63 = vector.shape_cast %62 : vector<1x1x4x4xf32> to vector<4x4xf32>
    %cst_59 = arith.constant dense<0.000000e+00> : vector<128x4xf32>
    %64 = tpu.matmul %53, %63, %cst_59 {dimension_numbers = #tpu.dot_dimension_numbers<[1], [0], [0], [1], [0, 0, 1, 1], [], []>} : vector<128x4xf32>, vector<4x4xf32>, vector<128x4xf32> -> vector<128x4xf32>
    %65 = arith.addf %48, %64 : vector<128x4xf32>
    %c3_60 = arith.constant 3 : index
    %c0_61 = arith.constant 0 : index
    %c0_62 = arith.constant 0 : index
    %c0_63 = arith.constant 0 : index
    %66 = vector.load %arg4[%c3_60, %c0_61, %c0_62, %c0_63] : memref<4x4x4x4xf32, #tpu.memory_space<vmem>>, vector<1x1x4x4xf32>
    %67 = vector.shape_cast %66 : vector<1x1x4x4xf32> to vector<4x4xf32>
    %cst_64 = arith.constant dense<0.000000e+00> : vector<128x4xf32>
    %68 = tpu.matmul %53, %67, %cst_64 {dimension_numbers = #tpu.dot_dimension_numbers<[1], [0], [0], [1], [0, 0, 1, 1], [], []>} : vector<128x4xf32>, vector<4x4xf32>, vector<128x4xf32> -> vector<128x4xf32>
    %69 = arith.addf %4, %68 : vector<128x4xf32>
    %c1_i32_65 = arith.constant 1 : i32
    %70 = arith.addi %1, %c1_i32_65 : i32
    %c0_66 = arith.constant 0 : index
    %71 = arith.index_cast %70 : i32 to index
    %c2_67 = arith.constant 2 : index
    %c0_68 = arith.constant 0 : index
    %72 = vector.load %arg3[%c0_66, %71, %c2_67, %c0_68] : memref<1x18x18x4xf32, #tpu.memory_space<vmem>>, vector<1x8x16x4xf32>
    %73 = vector.shape_cast %72 : vector<1x8x16x4xf32> to vector<8x16x4xf32>
    %74 = vector.shape_cast %73 : vector<8x16x4xf32> to vector<128x4xf32>
    %c1_69 = arith.constant 1 : index
    %c3_70 = arith.constant 3 : index
    %c0_71 = arith.constant 0 : index
    %c0_72 = arith.constant 0 : index
    %75 = vector.load %arg4[%c1_69, %c3_70, %c0_71, %c0_72] : memref<4x4x4x4xf32, #tpu.memory_space<vmem>>, vector<1x1x4x4xf32>
    %76 = vector.shape_cast %75 : vector<1x1x4x4xf32> to vector<4x4xf32>
    %cst_73 = arith.constant dense<0.000000e+00> : vector<128x4xf32>
    %77 = tpu.matmul %74, %76, %cst_73 {dimension_numbers = #tpu.dot_dimension_numbers<[1], [0], [0], [1], [0, 0, 1, 1], [], []>} : vector<128x4xf32>, vector<4x4xf32>, vector<128x4xf32> -> vector<128x4xf32>
    %78 = arith.addf %61, %77 : vector<128x4xf32>
    %c3_74 = arith.constant 3 : index
    %c1_75 = arith.constant 1 : index
    %c0_76 = arith.constant 0 : index
    %c0_77 = arith.constant 0 : index
    %79 = vector.load %arg4[%c3_74, %c1_75, %c0_76, %c0_77] : memref<4x4x4x4xf32, #tpu.memory_space<vmem>>, vector<1x1x4x4xf32>
    %80 = vector.shape_cast %79 : vector<1x1x4x4xf32> to vector<4x4xf32>
    %cst_78 = arith.constant dense<0.000000e+00> : vector<128x4xf32>
    %81 = tpu.matmul %74, %80, %cst_78 {dimension_numbers = #tpu.dot_dimension_numbers<[1], [0], [0], [1], [0, 0, 1, 1], [], []>} : vector<128x4xf32>, vector<4x4xf32>, vector<128x4xf32> -> vector<128x4xf32>
    %82 = arith.addf %69, %81 : vector<128x4xf32>
    %c2_i32 = arith.constant 2 : i32
    %83 = arith.addi %1, %c2_i32 : i32
    %c0_79 = arith.constant 0 : index
    %84 = arith.index_cast %83 : i32 to index
    %c0_80 = arith.constant 0 : index
    %c0_81 = arith.constant 0 : index
    %85 = vector.load %arg3[%c0_79, %84, %c0_80, %c0_81] : memref<1x18x18x4xf32, #tpu.memory_space<vmem>>, vector<1x8x16x4xf32>
    %86 = vector.shape_cast %85 : vector<1x8x16x4xf32> to vector<8x16x4xf32>
    %87 = vector.shape_cast %86 : vector<8x16x4xf32> to vector<128x4xf32>
    %c2_82 = arith.constant 2 : index
    %c2_83 = arith.constant 2 : index
    %c0_84 = arith.constant 0 : index
    %c0_85 = arith.constant 0 : index
    %88 = vector.load %arg4[%c2_82, %c2_83, %c0_84, %c0_85] : memref<4x4x4x4xf32, #tpu.memory_space<vmem>>, vector<1x1x4x4xf32>
    %89 = vector.shape_cast %88 : vector<1x1x4x4xf32> to vector<4x4xf32>
    %cst_86 = arith.constant dense<0.000000e+00> : vector<128x4xf32>
    %90 = tpu.matmul %87, %89, %cst_86 {dimension_numbers = #tpu.dot_dimension_numbers<[1], [0], [0], [1], [0, 0, 1, 1], [], []>} : vector<128x4xf32>, vector<4x4xf32>, vector<128x4xf32> -> vector<128x4xf32>
    %91 = arith.addf %65, %90 : vector<128x4xf32>
    %c2_i32_87 = arith.constant 2 : i32
    %92 = arith.addi %1, %c2_i32_87 : i32
    %c0_88 = arith.constant 0 : index
    %93 = arith.index_cast %92 : i32 to index
    %c1_89 = arith.constant 1 : index
    %c0_90 = arith.constant 0 : index
    %94 = vector.load %arg3[%c0_88, %93, %c1_89, %c0_90] : memref<1x18x18x4xf32, #tpu.memory_space<vmem>>, vector<1x8x16x4xf32>
    %95 = vector.shape_cast %94 : vector<1x8x16x4xf32> to vector<8x16x4xf32>
    %96 = vector.shape_cast %95 : vector<8x16x4xf32> to vector<128x4xf32>
    %c2_91 = arith.constant 2 : index
    %c3_92 = arith.constant 3 : index
    %c0_93 = arith.constant 0 : index
    %c0_94 = arith.constant 0 : index
    %97 = vector.load %arg4[%c2_91, %c3_92, %c0_93, %c0_94] : memref<4x4x4x4xf32, #tpu.memory_space<vmem>>, vector<1x1x4x4xf32>
    %98 = vector.shape_cast %97 : vector<1x1x4x4xf32> to vector<4x4xf32>
    %cst_95 = arith.constant dense<0.000000e+00> : vector<128x4xf32>
    %99 = tpu.matmul %96, %98, %cst_95 {dimension_numbers = #tpu.dot_dimension_numbers<[1], [0], [0], [1], [0, 0, 1, 1], [], []>} : vector<128x4xf32>, vector<4x4xf32>, vector<128x4xf32> -> vector<128x4xf32>
    %100 = arith.addf %91, %99 : vector<128x4xf32>
    %c3_96 = arith.constant 3 : index
    %c2_97 = arith.constant 2 : index
    %c0_98 = arith.constant 0 : index
    %c0_99 = arith.constant 0 : index
    %101 = vector.load %arg4[%c3_96, %c2_97, %c0_98, %c0_99] : memref<4x4x4x4xf32, #tpu.memory_space<vmem>>, vector<1x1x4x4xf32>
    %102 = vector.shape_cast %101 : vector<1x1x4x4xf32> to vector<4x4xf32>
    %cst_100 = arith.constant dense<0.000000e+00> : vector<128x4xf32>
    %103 = tpu.matmul %96, %102, %cst_100 {dimension_numbers = #tpu.dot_dimension_numbers<[1], [0], [0], [1], [0, 0, 1, 1], [], []>} : vector<128x4xf32>, vector<4x4xf32>, vector<128x4xf32> -> vector<128x4xf32>
    %104 = arith.addf %82, %103 : vector<128x4xf32>
    %c2_i32_101 = arith.constant 2 : i32
    %105 = arith.addi %1, %c2_i32_101 : i32
    %c0_102 = arith.constant 0 : index
    %106 = arith.index_cast %105 : i32 to index
    %c2_103 = arith.constant 2 : index
    %c0_104 = arith.constant 0 : index
    %107 = vector.load %arg3[%c0_102, %106, %c2_103, %c0_104] : memref<1x18x18x4xf32, #tpu.memory_space<vmem>>, vector<1x8x16x4xf32>
    %108 = vector.shape_cast %107 : vector<1x8x16x4xf32> to vector<8x16x4xf32>
    %109 = vector.shape_cast %108 : vector<8x16x4xf32> to vector<128x4xf32>
    %c3_105 = arith.constant 3 : index
    %c3_106 = arith.constant 3 : index
    %c0_107 = arith.constant 0 : index
    %c0_108 = arith.constant 0 : index
    %110 = vector.load %arg4[%c3_105, %c3_106, %c0_107, %c0_108] : memref<4x4x4x4xf32, #tpu.memory_space<vmem>>, vector<1x1x4x4xf32>
    %111 = vector.shape_cast %110 : vector<1x1x4x4xf32> to vector<4x4xf32>
    %cst_109 = arith.constant dense<0.000000e+00> : vector<128x4xf32>
    %112 = tpu.matmul %109, %111, %cst_109 {dimension_numbers = #tpu.dot_dimension_numbers<[1], [0], [0], [1], [0, 0, 1, 1], [], []>} : vector<128x4xf32>, vector<4x4xf32>, vector<128x4xf32> -> vector<128x4xf32>
    %113 = arith.addf %104, %112 : vector<128x4xf32>
    %114 = vector.shape_cast %57 : vector<128x4xf32> to vector<8x1x16x1x4xf32>
    %c0_110 = arith.constant 0 : index
    %c0_111 = arith.constant 0 : index
    %c0_112 = arith.constant 0 : index
    %c0_113 = arith.constant 0 : index
    %c0_114 = arith.constant 0 : index
    %c0_115 = arith.constant 0 : index
    %115 = vector.load %arg6[%c0_110, %c0_111, %c0_112, %c0_113, %c0_114, %c0_115] : memref<1x8x2x16x2x4xf32, #tpu.memory_space<vmem>>, vector<1x8x1x16x1x4xf32>
    %116 = vector.shape_cast %115 : vector<1x8x1x16x1x4xf32> to vector<8x1x16x1x4xf32>
    %117 = vector.shape_cast %114 : vector<8x1x16x1x4xf32> to vector<1x8x1x16x1x4xf32>
    tpu.vector_store %arg6[%c0_110, %c0_111, %c0_112, %c0_113, %c0_114, %c0_115], %117 {strides = array<i32>} : memref<1x8x2x16x2x4xf32, #tpu.memory_space<vmem>>, vector<1x8x1x16x1x4xf32>,
    %118 = vector.shape_cast %78 : vector<128x4xf32> to vector<8x1x16x1x4xf32>
    %c0_116 = arith.constant 0 : index
    %c0_117 = arith.constant 0 : index
    %c0_118 = arith.constant 0 : index
    %c0_119 = arith.constant 0 : index
    %c1_120 = arith.constant 1 : index
    %c0_121 = arith.constant 0 : index
    %119 = vector.load %arg6[%c0_116, %c0_117, %c0_118, %c0_119, %c1_120, %c0_121] : memref<1x8x2x16x2x4xf32, #tpu.memory_space<vmem>>, vector<1x8x1x16x1x4xf32>
    %120 = vector.shape_cast %119 : vector<1x8x1x16x1x4xf32> to vector<8x1x16x1x4xf32>
    %121 = vector.shape_cast %118 : vector<8x1x16x1x4xf32> to vector<1x8x1x16x1x4xf32>
    tpu.vector_store %arg6[%c0_116, %c0_117, %c0_118, %c0_119, %c1_120, %c0_121], %121 {strides = array<i32>} : memref<1x8x2x16x2x4xf32, #tpu.memory_space<vmem>>, vector<1x8x1x16x1x4xf32>,
    %122 = vector.shape_cast %100 : vector<128x4xf32> to vector<8x1x16x1x4xf32>
    %c0_122 = arith.constant 0 : index
    %c0_123 = arith.constant 0 : index
    %c1_124 = arith.constant 1 : index
    %c0_125 = arith.constant 0 : index
    %c0_126 = arith.constant 0 : index
    %c0_127 = arith.constant 0 : index
    %123 = vector.load %arg6[%c0_122, %c0_123, %c1_124, %c0_125, %c0_126, %c0_127] : memref<1x8x2x16x2x4xf32, #tpu.memory_space<vmem>>, vector<1x8x1x16x1x4xf32>
    %124 = vector.shape_cast %123 : vector<1x8x1x16x1x4xf32> to vector<8x1x16x1x4xf32>
    %125 = vector.shape_cast %122 : vector<8x1x16x1x4xf32> to vector<1x8x1x16x1x4xf32>
    tpu.vector_store %arg6[%c0_122, %c0_123, %c1_124, %c0_125, %c0_126, %c0_127], %125 {strides = array<i32>} : memref<1x8x2x16x2x4xf32, #tpu.memory_space<vmem>>, vector<1x8x1x16x1x4xf32>,
    %126 = vector.shape_cast %113 : vector<128x4xf32> to vector<8x1x16x1x4xf32>
    %c0_128 = arith.constant 0 : index
    %c0_129 = arith.constant 0 : index
    %c1_130 = arith.constant 1 : index
    %c0_131 = arith.constant 0 : index
    %c1_132 = arith.constant 1 : index
    %c0_133 = arith.constant 0 : index
    %127 = vector.load %arg6[%c0_128, %c0_129, %c1_130, %c0_131, %c1_132, %c0_133] : memref<1x8x2x16x2x4xf32, #tpu.memory_space<vmem>>, vector<1x8x1x16x1x4xf32>
    %128 = vector.shape_cast %127 : vector<1x8x1x16x1x4xf32> to vector<8x1x16x1x4xf32>
    %129 = vector.shape_cast %126 : vector<8x1x16x1x4xf32> to vector<1x8x1x16x1x4xf32>
    tpu.vector_store %arg6[%c0_128, %c0_129, %c1_130, %c0_131, %c1_132, %c0_133], %129 {strides = array<i32>} : memref<1x8x2x16x2x4xf32, #tpu.memory_space<vmem>>, vector<1x8x1x16x1x4xf32>,
    return
  }
  func.func @transform_0(%arg0: i32, %arg1: i32, %arg2: i32) -> (i32, i32, i32, i32) {
    %c0_i32 = arith.constant 0 : i32
    %c0_i32_0 = arith.constant 0 : i32
    %c0_i32_1 = arith.constant 0 : i32
    %c0_i32_2 = arith.constant 0 : i32
    return %arg0, %c0_i32, %c0_i32_0, %c0_i32_1 : i32, i32, i32, i32
  }
  func.func @transform_1(%arg0: i32, %arg1: i32, %arg2: i32) -> (i32, i32, i32, i32) {
    %c0_i32 = arith.constant 0 : i32
    %c0_i32_0 = arith.constant 0 : i32
    %c0_i32_1 = arith.constant 0 : i32
    %c0_i32_2 = arith.constant 0 : i32
    return %c0_i32, %c0_i32_0, %c0_i32_1, %arg1 : i32, i32, i32, i32
  }
  func.func @transform_2(%arg0: i32, %arg1: i32, %arg2: i32) -> (i32, i32) {
    %c0_i32 = arith.constant 0 : i32
    %c0_i32_0 = arith.constant 0 : i32
    return %c0_i32, %arg1 : i32, i32
  }
  func.func @transform_3(%arg0: i32, %arg1: i32, %arg2: i32) -> (i32, i32, i32, i32, i32, i32) {
    %c0_i32 = arith.constant 0 : i32
    %c0_i32_0 = arith.constant 0 : i32
    %c0_i32_1 = arith.constant 0 : i32
    %c0_i32_2 = arith.constant 0 : i32
    return %arg0, %arg2, %c0_i32, %c0_i32_0, %c0_i32_1, %arg1 : i32, i32, i32, i32, i32, i32
  }
}

</mosaic_0001>

<bundles_post_ra>
// kernel: upsample_forward.1
= control target key start
LH: loop header
LB: loop body
LE: loop exit
PB: predicated region body
PF: predicated region fallthrough
CT: control target
= control target key end

     0   :  { %s9566_s12 = smov 0   ;;  %s9568_s13 = smov 0   ;;  %s12016_s0 = inlined_call_operand.vmem [shape: f32[2,18,18,4], index: 0, kind: input, shape index: {}]   ;;  %s12017_s1 = inlined_call_operand.vmem [shape: f32[4,4,4,4], index: 1, kind: input, shape index: {}]   ;;  %s12018_s2 = inlined_call_operand.vmem [shape: f32[1,4], index: 2, kind: input, shape index: {}]   ;;  %s12019_s3 = inlined_call_operand.vmem [shape: f32[2,16,2,16,2,4], index: 3, kind: output, shape index: {}]  }
   0x1   :  { %s9570_s14 = smov 0   ;;  %s9572_s15 = smov 0  }
   0x2   :  { %s9574_s16 = smov 0  }
   0x3 LB: > { %s25_s17 = sadd.s32 1, %s9535_s14  ;;  %s32_s18 = sadd.s32 1, %s9539_s15  ;;  %s9543_s16 = sphi %s9574_s16, %s13_s16   ;;  %s9539_s15 = sphi %s9572_s15, %s12023_s15   ;;  %s9535_s14 = sphi %s9570_s14, %s12022_s14   ;;  %s9531_s13 = sphi %s9568_s13, %s12021_s13   ;;  %s9527_s12 = sphi %s9566_s12, %s12020_s12  }
   0x4   : > { %p26_p0 = scmp.ge.s32.totalorder %s25_s17, 2  ;;  %p7863_p1 = scmp.ge.s32.totalorder %s9543_s16, 1 }
   0x5   : > { %p177_p2 = scmp.lt.s32.totalorder %s9543_s16, 5 }
   0x6   : > { %s12025_s17 = smov (%p26_p0, %s25_s17), 0  ;;  %s12027_s18 = smov (!%p26_p0, %s32_s18), %s9539_s15 }
   0x7   : > { %p178_p3 = pnand %p7863_p1, %p177_p2  ;;  %p34_p4 = scmp.ge.s32.totalorder %s12027_s18, 2 }
   0x8   : > { %v268_v0 = vld [vmem:[%s12017_s1] sm:$0xf] (!%p178_p3)  ;;  %vm318_vm0 = vcmask (!%p178_p3), 1043456   ;;  %v7907_v1 = vld [vmem:[%s12017_s1 + $0x10] sm:$0xf] (!%p178_p3)  ;;  %p216_p5 = scmp.lt.s32.totalorder (!%p178_p3), %s9531_s13, 1 }
   0x9   : > { %s12029_s18 = smov (%p34_p4, %s12027_s18), 0  ;;  %181 = sbr.rel (%p178_p3) target bundleno = 619 (0x26b), region = 32 }
   0xa   : > { %8789 = vmatprep.subr.msk.mxu0 (!%p178_p3), %vm318_vm0, %v268_v0  ;;  %8841 = vmatprep.subr.msk.mxu1 (!%p178_p3), %vm318_vm0, %v7907_v1  ;;  %v7889_v2 = vld [vmem:[%s12017_s1 + $0x4] sm:$0xf] (!%p178_p3)  ;;  %v7925_v3 = vld [vmem:[%s12017_s1 + $0x14] sm:$0xf] (!%p178_p3)  ;;  %s7871_s27 = smul.u32 (!%p178_p3), 192, %s9527_s12  ;;  %vm269_vm1 = vcmask (!%p178_p3), 31744  }
   0xb   : > { %8790 = vmatpush3.msk.msra.mxu0 (!%p178_p3), %vm318_vm0, %v268_v0  ;;  %8842 = vmatpush3.msk.msra.mxu1 (!%p178_p3), %vm318_vm0, %v7907_v1  ;;  %v9648_v10 = vld [vmem:[%s12017_s1 + $0x8] sm:$0xf] (!%p178_p3)  ;;  %v9653_v11 = vld [vmem:[%s12017_s1 + $0x20] sm:$0xf] (!%p178_p3)  ;;  %v8013_v41 = vld [vmem:[%s12017_s1 + $0xc] sm:$0xf] (!%p178_p3) }
   0xc   : > { %8815 = vmatprep.subr.msk.mxu0 (!%p178_p3), %vm318_vm0, %v7889_v2  ;;  %8867 = vmatprep.subr.msk.mxu1 (!%p178_p3), %vm318_vm0, %v7925_v3  ;;  %v8031_v42 = vld [vmem:[%s12017_s1 + $0x18] sm:$0xf] (!%p178_p3)  ;;  %v8049_v56 = vld [vmem:[%s12017_s1 + $0x24] sm:$0xf] (!%p178_p3)  ;;  %v8067_v57 = vld [vmem:[%s12017_s1 + $0x30] sm:$0xf] (!%p178_p3) }
   0xd   : > { %v8101_v60 = vld [vmem:[%s12017_s1 + $0x1c] sm:$0xf] (!%p178_p3)  ;;  %v8119_v61 = vld [vmem:[%s12017_s1 + $0x34] sm:$0xf] (!%p178_p3)  ;;  %v8155_v0 = vld [vmem:[%s12017_s1 + $0x28] sm:$0xf] (!%p178_p3) }
   0xe   : > { %v8207_v1 = vld [vmem:[%s12017_s1 + $0x38] sm:$0xf] (!%p178_p3)  ;;  %s7865_s11 = sshll.u32 (!%p178_p3), %s9527_s12, 3  ;;  %vm4419_vm2 = vcmask (!%p178_p3), 24576  }
   0xf   : > { %p231_p6 = scmp.lt.s32.totalorder (!%p178_p3), %s7865_s11, 15 }
  0x10   : > { %s12031_s13 = smov (!%p216_p5, %s9531_s13), 1 }
  0x11   : > { %s9461_s28 = smul.u32 432, %s12031_s13  ;;  %s12033_s11 = smov (!%p231_p6, %s7865_s11), 15 }
  0x12   : > { %s7866_s19 = sshll.u32 %s12033_s11, 5  ;;  %s7867_s20 = sshll.u32 %s12031_s13, 9 }
  0x13   : > { %s220_s4 = scalar_lea.vmem %s12016_s0, %s9461_s28  ;;  %s238_s21 = sadd.s32 %s7867_s20, %s7866_s19 }
  0x14   : > { %s9623_s5 = scalar_lea.vmem %s220_s4, %s7871_s27 }
  0x15   : > { %v252_v4 = vld [vmem:[%s9623_s5] sm:$0xff]  ;;  %v253_v6 = vld [vmem:[%s9623_s5 + $0x8] sm:$0xff]  ;;  %v9637_v8 = vld [vmem:[%s9623_s5 + $0x18] sm:$0xff] }
  0x16   : > { %v9627_v5 = vld [vmem:[%s9623_s5 + $0x1] sm:$0xff]  ;;  %8791 = vmatprep.mubr.msk.f32.mxu0 %vm269_vm1, %v252_v4  ;;  %v9634_v7 = vld [vmem:[%s9623_s5 + $0x9] sm:$0xff]  ;;  %v9640_v9 = vld [vmem:[%s9623_s5 + $0x19] sm:$0xff] }
  0x17   : > { %8843 = vmatprep.mubr.msk.f32.mxu1 %vm269_vm1, %v9627_v5  ;;  %8792 = vmatmul.mubr.msk.f32.vlgmr.msra.gmra.mrb[0].mxu0 %vm269_vm1, %v253_v6  ;;  %v9658_v12 = vld [vmem:[%s9623_s5 + $0x20] sm:$0xff]  ;;  %v9668_v14 = vld [vmem:[%s9623_s5 + $0x30] sm:$0xff]  ;;  %v9686_v16 = vld [vmem:[%s9623_s5 + $0x38] sm:$0xff] }
  0x18   : > { %8844 = vmatmul.mubr.msk.f32.vlgmr.msra.gmra.mrb[0].mxu1 %vm269_vm1, %v9634_v7  ;;  %8816 = vmatpush3.msk.msra.mxu0 %vm318_vm0, %v7889_v2  ;;  %v9661_v13 = vld [vmem:[%s9623_s5 + $0x21] sm:$0xff]  ;;  %v9671_v15 = vld [vmem:[%s9623_s5 + $0x31] sm:$0xff]  ;;  %v9689_v17 = vld [vmem:[%s9623_s5 + $0x39] sm:$0xff] }
  0x19   : > { %8868 = vmatpush3.msk.msra.mxu1 %vm318_vm0, %v7925_v3  ;;  %8794 = vmatprep.mubr.msk.f32.mxu0 %vm269_vm1, %v9637_v8  ;;  %v9692_v18 = vld [vmem:[%s9623_s5 + $0x48] sm:$0xff]  ;;  %v9706_v20 = vld [vmem:[%s9623_s5 + $0x50] sm:$0xff]  ;;  %v9712_v22 = vld [vmem:[%s9623_s5 + $0x60] sm:$0xff] }
  0x1a   : > { %8846 = vmatprep.mubr.msk.f32.mxu1 %vm269_vm1, %v9640_v9  ;;  %8893 = vmatprep.subr.msk.mxu0 %vm318_vm0, %v9648_v10  ;;  %v9695_v19 = vld [vmem:[%s9623_s5 + $0x49] sm:$0xff]  ;;  %v9709_v21 = vld [vmem:[%s9623_s5 + $0x51] sm:$0xff]  ;;  %v9715_v23 = vld [vmem:[%s9623_s5 + $0x61] sm:$0xff] }
  0x1b   : > { %8919 = vmatprep.subr.msk.mxu1 %vm318_vm0, %v9653_v11  ;;  %8795 = vmatmul.mubr.msk.f32.gmra.mrb[2].mxu0 %vm269_vm1, %v9658_v12  ;;  %v9726_v24 = vld [vmem:[%s9623_s5 + $0x68] sm:$0xff]  ;;  %v9732_v26 = vld [vmem:[%s9623_s5 + $0x78] sm:$0xff]  ;;  %v9746_v28 = vld [vmem:[%s9623_s5 + $0x80] sm:$0xff] }
  0x1c   : > { %8847 = vmatmul.mubr.msk.f32.gmra.mrb[2].mxu1 %vm269_vm1, %v9661_v13  ;;  %8797 = vmatprep.mubr.msk.f32.mxu0 %vm269_vm1, %v9668_v14  ;;  %v9729_v25 = vld [vmem:[%s9623_s5 + $0x69] sm:$0xff]  ;;  %v9735_v27 = vld [vmem:[%s9623_s5 + $0x79] sm:$0xff]  ;;  %v9749_v29 = vld [vmem:[%s9623_s5 + $0x81] sm:$0xff] }
  0x1d   : > { %8849 = vmatprep.mubr.msk.f32.mxu1 %vm269_vm1, %v9671_v15  ;;  %v9752_v30 = vld [vmem:[%s9623_s5 + $0x90] sm:$0xff]  ;;  %v9766_v32 = vld [vmem:[%s9623_s5 + $0x98] sm:$0xff]  ;;  %v9772_v34 = vld [vmem:[%s9623_s5 + $0xa8] sm:$0xff] }
  0x1e   : > { %v9755_v31 = vld [vmem:[%s9623_s5 + $0x91] sm:$0xff]  ;;  %v9769_v33 = vld [vmem:[%s9623_s5 + $0x99] sm:$0xff]  ;;  %v9775_v35 = vld [vmem:[%s9623_s5 + $0xa9] sm:$0xff] }
  0x1f   : > { %8798 = vmatmul.mubr.msk.f32.gmra.mrb[4].mxu0 %vm269_vm1, %v9686_v16  ;;  %v9786_v36 = vld [vmem:[%s9623_s5 + $0xb0] sm:$0xff]  ;;  %v879_v38 = vld [vmem:[%s9623_s5 + $0x2] sm:$0xff]  ;;  %v9801_v40 = vld [vmem:[%s9623_s5 + $0x1a] sm:$0xff] }
  0x20   : > { %8850 = vmatmul.mubr.msk.f32.gmra.mrb[4].mxu1 %vm269_vm1, %v9689_v17  ;;  %8800 = vmatprep.mubr.msk.f32.mxu0 %vm269_vm1, %v9692_v18  ;;  %v9789_v37 = vld [vmem:[%s9623_s5 + $0xb1] sm:$0xff]  ;;  %v9817_v43 = vld [vmem:[%s9623_s5 + $0x22] sm:$0xff]  ;;  %v9837_v45 = vld [vmem:[%s9623_s5 + $0x3a] sm:$0xff] }
  0x21   : > { %8852 = vmatprep.mubr.msk.f32.mxu1 %vm269_vm1, %v9695_v19  ;;  %v880_v39 = vld [vmem:[%s9623_s5 + $0xa] sm:$0xff]  ;;  %v9824_v44 = vld [vmem:[%s9623_s5 + $0x32] sm:$0xff]  ;;  %v9854_v48 = vld [vmem:[%s9623_s5 + $0x62] sm:$0xff] }
  0x22   : > { %v9840_v46 = vld [vmem:[%s9623_s5 + $0x4a] sm:$0xff]  ;;  %v9851_v47 = vld [vmem:[%s9623_s5 + $0x52] sm:$0xff]  ;;  %v9868_v50 = vld [vmem:[%s9623_s5 + $0x7a] sm:$0xff] }
  0x23   : > { %8801 = vmatmul.mubr.msk.f32.gmra.mrb[6].mxu0 %vm269_vm1, %v9706_v20  ;;  %v9865_v49 = vld [vmem:[%s9623_s5 + $0x6a] sm:$0xff]  ;;  %v9879_v51 = vld [vmem:[%s9623_s5 + $0x82] sm:$0xff]  ;;  %v9882_v52 = vld [vmem:[%s9623_s5 + $0x92] sm:$0xff] }
  0x24   : > { %8853 = vmatmul.mubr.msk.f32.gmra.mrb[6].mxu1 %vm269_vm1, %v9709_v21  ;;  %8803 = vmatprep.mubr.msk.f32.mxu0 %vm269_vm1, %v9712_v22  ;;  %v9893_v53 = vld [vmem:[%s9623_s5 + $0x9a] sm:$0xff]  ;;  %v9896_v54 = vld [vmem:[%s9623_s5 + $0xaa] sm:$0xff]  ;;  %v9907_v55 = vld [vmem:[%s9623_s5 + $0xb2] sm:$0xff] }
  0x25   : > { %8855 = vmatprep.mubr.msk.f32.mxu1 %vm269_vm1, %v9715_v23  ;;  %v9976_v58 = vld [vmem:[%s9623_s5 + $0xc0] sm:$0xff]  ;;  %v9987_v59 = vld [vmem:[%s9623_s5 + $0xc8] sm:$0xff]  ;;  %v8241_v3 = vld [vmem:[%s12017_s1 + $0x3c] sm:$0xf] }
  0x26   : > { %v10056_v62 = vld [vmem:[%s9623_s5 + $0xc1] sm:$0xff]  ;;  %v10067_v63 = vld [vmem:[%s9623_s5 + $0xc9] sm:$0xff]  ;;  %v8153_v6 = vld [vmem:[%s9623_s5 + $0xd8] sm:$0xff] }
  0x27   : > { %8804 = vmatmul.mubr.msk.f32.gmra.mrb[8].mxu0 %vm269_vm1, %v9726_v24  ;;  %v8189_v2 = vld [vmem:[%s12017_s1 + $0x2c] sm:$0xf]  ;;  %v10210_v4 = vld [vmem:[%s9623_s5 + $0xc2] sm:$0xff] }
  0x28   : > { %8856 = vmatmul.mubr.msk.f32.gmra.mrb[8].mxu1 %vm269_vm1, %v9729_v25  ;;  %8806 = vmatprep.mubr.msk.f32.mxu0 %vm269_vm1, %v9732_v26 }
  0x29   : > { %8858 = vmatprep.mubr.msk.f32.mxu1 %vm269_vm1, %v9735_v27 }
  0x2b   : > { %8807 = vmatmul.mubr.msk.f32.gmra.mrb[10].mxu0 %vm269_vm1, %v9746_v28 }
  0x2c   : > { %8859 = vmatmul.mubr.msk.f32.gmra.mrb[10].mxu1 %vm269_vm1, %v9749_v29  ;;  %8809 = vmatprep.mubr.msk.f32.mxu0 %vm269_vm1, %v9752_v30 }
  0x2d   : > { %8861 = vmatprep.mubr.msk.f32.mxu1 %vm269_vm1, %v9755_v31 }
  0x2f   : > { %8810 = vmatmul.mubr.msk.f32.gmra.mrb[12].mxu0 %vm269_vm1, %v9766_v32 }
  0x30   : > { %8862 = vmatmul.mubr.msk.f32.gmra.mrb[12].mxu1 %vm269_vm1, %v9769_v33  ;;  %8812 = vmatprep.mubr.msk.f32.mxu0 %vm269_vm1, %v9772_v34 }
  0x31   : > { %8864 = vmatprep.mubr.msk.f32.mxu1 %vm269_vm1, %v9775_v35 }
  0x33   : > { %8813 = vmatmul.mubr.msk.f32.gmra.mrb[14].mxu0 %vm269_vm1, %v9786_v36 }
  0x34   : > { %8865 = vmatmul.mubr.msk.f32.gmra.mrb[14].mxu1 %vm269_vm1, %v9789_v37  ;;  %8817 = vmatprep.mubr.msk.f32.mxu0 %vm269_vm1, %v9627_v5  ;;  %v10221_v5 = vld [vmem:[%s9623_s5 + $0xca] sm:$0xff] }
  0x35   : > { %8869 = vmatprep.mubr.msk.f32.mxu1 %vm269_vm1, %v879_v38 }
  0x37   : > { %8818 = vmatmul.mubr.msk.f32.vlgmr.msra.gmra.mrb[0].mxu0 %vm269_vm1, %v9634_v7  ;;  %v8187_v7 = vld [vmem:[%s9623_s5 + $0xd9] sm:$0xff] }
  0x38   : > { %8870 = vmatmul.mubr.msk.f32.vlgmr.msra.gmra.mrb[0].mxu1 %vm269_vm1, %v880_v39  ;;  %8894 = vmatpush3.msk.msra.mxu0 %vm318_vm0, %v9648_v10  ;;  %v8239_v10 = vld [vmem:[%s9623_s5 + $0xda] sm:$0xff] }
  0x39   : > { %8920 = vmatpush3.msk.msra.mxu1 %vm318_vm0, %v9653_v11  ;;  %8820 = vmatprep.mubr.msk.f32.mxu0 %vm269_vm1, %v9640_v9  ;;  %v8240_v11 = vld [vmem:[%s9623_s5 + $0xe2] sm:$0xff] }
  0x3a   : > { %8872 = vmatprep.mubr.msk.f32.mxu1 %vm269_vm1, %v9801_v40  ;;  %8945 = vmatprep.subr.msk.mxu0 %vm318_vm0, %v8013_v41 }
  0x3b   : > { %8971 = vmatprep.subr.msk.mxu1 %vm318_vm0, %v8031_v42  ;;  %8821 = vmatmul.mubr.msk.f32.gmra.mrb[2].mxu0 %vm269_vm1, %v9661_v13 }
  0x3c   : > { %8873 = vmatmul.mubr.msk.f32.gmra.mrb[2].mxu1 %vm269_vm1, %v9817_v43  ;;  %8823 = vmatprep.mubr.msk.f32.mxu0 %vm269_vm1, %v9671_v15 }
  0x3d   : > { %8875 = vmatprep.mubr.msk.f32.mxu1 %vm269_vm1, %v9824_v44 }
  0x3f   : > { %8824 = vmatmul.mubr.msk.f32.gmra.mrb[4].mxu0 %vm269_vm1, %v9689_v17 }
  0x40   : > { %8876 = vmatmul.mubr.msk.f32.gmra.mrb[4].mxu1 %vm269_vm1, %v9837_v45  ;;  %8826 = vmatprep.mubr.msk.f32.mxu0 %vm269_vm1, %v9695_v19 }
  0x41   : > { %8878 = vmatprep.mubr.msk.f32.mxu1 %vm269_vm1, %v9840_v46 }
  0x43   : > { %8827 = vmatmul.mubr.msk.f32.gmra.mrb[6].mxu0 %vm269_vm1, %v9709_v21 }
  0x44   : > { %8879 = vmatmul.mubr.msk.f32.gmra.mrb[6].mxu1 %vm269_vm1, %v9851_v47  ;;  %8829 = vmatprep.mubr.msk.f32.mxu0 %vm269_vm1, %v9715_v23 }
  0x45   : > { %8881 = vmatprep.mubr.msk.f32.mxu1 %vm269_vm1, %v9854_v48 }
  0x47   : > { %8830 = vmatmul.mubr.msk.f32.gmra.mrb[8].mxu0 %vm269_vm1, %v9729_v25 }
  0x48   : > { %8882 = vmatmul.mubr.msk.f32.gmra.mrb[8].mxu1 %vm269_vm1, %v9865_v49  ;;  %8832 = vmatprep.mubr.msk.f32.mxu0 %vm269_vm1, %v9735_v27 }
  0x49   : > { %8884 = vmatprep.mubr.msk.f32.mxu1 %vm269_vm1, %v9868_v50 }
  0x4b   : > { %8833 = vmatmul.mubr.msk.f32.gmra.mrb[10].mxu0 %vm269_vm1, %v9749_v29 }
  0x4c   : > { %8885 = vmatmul.mubr.msk.f32.gmra.mrb[10].mxu1 %vm269_vm1, %v9879_v51  ;;  %8835 = vmatprep.mubr.msk.f32.mxu0 %vm269_vm1, %v9755_v31 }
  0x4d   : > { %8887 = vmatprep.mubr.msk.f32.mxu1 %vm269_vm1, %v9882_v52 }
  0x4f   : > { %8836 = vmatmul.mubr.msk.f32.gmra.mrb[12].mxu0 %vm269_vm1, %v9769_v33 }
  0x50   : > { %8888 = vmatmul.mubr.msk.f32.gmra.mrb[12].mxu1 %vm269_vm1, %v9893_v53  ;;  %8838 = vmatprep.mubr.msk.f32.mxu0 %vm269_vm1, %v9775_v35 }
  0x51   : > { %8890 = vmatprep.mubr.msk.f32.mxu1 %vm269_vm1, %v9896_v54 }
  0x53   : > { %8839 = vmatmul.mubr.msk.f32.gmra.mrb[14].mxu0 %vm269_vm1, %v9789_v37 }
  0x54   : > { %8891 = vmatmul.mubr.msk.f32.gmra.mrb[14].mxu1 %vm269_vm1, %v9907_v55  ;;  %8895 = vmatprep.mubr.msk.f32.mxu0 %vm269_vm1, %v9637_v8 }
  0x55   : > { %8921 = vmatprep.mubr.msk.f32.mxu1 %vm269_vm1, %v9637_v8  ;;  %v8154_v8 = vld [vmem:[%s9623_s5 + $0xe0] sm:$0xff] }
  0x57   : > { %8896 = vmatmul.mubr.msk.f32.vlgmr.msra.gmra.mrb[0].mxu0 %vm269_vm1, %v9658_v12 }
  0x58   : > { %8922 = vmatmul.mubr.msk.f32.vlgmr.msra.gmra.mrb[16].mxu1 %vm269_vm1, %v9658_v12  ;;  %8946 = vmatpush3.msk.msra.mxu0 %vm318_vm0, %v8013_v41  ;;  %v9545_v12 = vmov 1966171168  }
  0x59   : > { %8972 = vmatpush3.msk.msra.mxu1 %vm318_vm0, %v8031_v42  ;;  %8898 = vmatprep.mubr.msk.f32.mxu0 %vm269_vm1, %v9668_v14 }
  0x5a   : > { %8924 = vmatprep.mubr.msk.f32.mxu1 %vm269_vm1, %v9668_v14  ;;  %8997 = vmatprep.subr.msk.mxu1 %vm318_vm0, %v8049_v56 }
  0x5b   : > { %9023 = vmatprep.subr.msk.mxu0 %vm318_vm0, %v8067_v57  ;;  %8899 = vmatmul.mubr.msk.f32.gmra.mrb[2].mxu0 %vm269_vm1, %v9686_v16 }
  0x5c   : > { %8925 = vmatmul.mubr.msk.f32.gmra.mrb[18].mxu1 %vm269_vm1, %v9686_v16  ;;  %8901 = vmatprep.mubr.msk.f32.mxu0 %vm269_vm1, %v9692_v18 }
  0x5d   : > { %8927 = vmatprep.mubr.msk.f32.mxu1 %vm269_vm1, %v9692_v18 }
  0x5f   : > { %8902 = vmatmul.mubr.msk.f32.gmra.mrb[4].mxu0 %vm269_vm1, %v9706_v20 }
  0x60   : > { %8928 = vmatmul.mubr.msk.f32.gmra.mrb[20].mxu1 %vm269_vm1, %v9706_v20  ;;  %8904 = vmatprep.mubr.msk.f32.mxu0 %vm269_vm1, %v9712_v22 }
  0x61   : > { %8930 = vmatprep.mubr.msk.f32.mxu1 %vm269_vm1, %v9712_v22 }
  0x63   : > { %8905 = vmatmul.mubr.msk.f32.gmra.mrb[6].mxu0 %vm269_vm1, %v9726_v24 }
  0x64   : > { %8931 = vmatmul.mubr.msk.f32.gmra.mrb[22].mxu1 %vm269_vm1, %v9726_v24  ;;  %8907 = vmatprep.mubr.msk.f32.mxu0 %vm269_vm1, %v9732_v26 }
  0x65   : > { %8933 = vmatprep.mubr.msk.f32.mxu1 %vm269_vm1, %v9732_v26 }
  0x67   : > { %8908 = vmatmul.mubr.msk.f32.gmra.mrb[8].mxu0 %vm269_vm1, %v9746_v28 }
  0x68   : > { %8934 = vmatmul.mubr.msk.f32.gmra.mrb[24].mxu1 %vm269_vm1, %v9746_v28  ;;  %8910 = vmatprep.mubr.msk.f32.mxu0 %vm269_vm1, %v9752_v30 }
  0x69   : > { %8936 = vmatprep.mubr.msk.f32.mxu1 %vm269_vm1, %v9752_v30 }
  0x6b   : > { %8911 = vmatmul.mubr.msk.f32.gmra.mrb[10].mxu0 %vm269_vm1, %v9766_v32 }
  0x6c   : > { %8937 = vmatmul.mubr.msk.f32.gmra.mrb[26].mxu1 %vm269_vm1, %v9766_v32  ;;  %8913 = vmatprep.mubr.msk.f32.mxu0 %vm269_vm1, %v9772_v34 }
  0x6d   : > { %8939 = vmatprep.mubr.msk.f32.mxu1 %vm269_vm1, %v9772_v34 }
  0x6f   : > { %8914 = vmatmul.mubr.msk.f32.gmra.mrb[12].mxu0 %vm269_vm1, %v9786_v36 }
  0x70   : > { %8940 = vmatmul.mubr.msk.f32.gmra.mrb[28].mxu1 %vm269_vm1, %v9786_v36  ;;  %8916 = vmatprep.mubr.msk.f32.mxu0 %vm269_vm1, %v9976_v58 }
  0x71   : > { %8942 = vmatprep.mubr.msk.f32.mxu1 %vm269_vm1, %v9976_v58 }
  0x73   : > { %8917 = vmatmul.mubr.msk.f32.gmra.mrb[14].mxu0 %vm269_vm1, %v9987_v59 }
  0x74   : > { %8943 = vmatmul.mubr.msk.f32.gmra.mrb[30].mxu1 %vm269_vm1, %v9987_v59  ;;  %8947 = vmatprep.mubr.msk.f32.mxu0 %vm269_vm1, %v9640_v9 }
  0x75   : > { %8973 = vmatprep.mubr.msk.f32.mxu1 %vm269_vm1, %v9640_v9 }
  0x77   : > { %8948 = vmatmul.mubr.msk.f32.vlgmr.msra.gmra.mrb[0].mxu0 %vm269_vm1, %v9661_v13 }
  0x78   : > { %8974 = vmatmul.mubr.msk.f32.vlgmr.msra.gmra.mrb[0].mxu1 %vm269_vm1, %v9661_v13  ;;  %9024 = vmatpush3.msk.msra.mxu0 %vm318_vm0, %v8067_v57 }
  0x79   : > { %8998 = vmatpush3.msk.msra.mxu1 %vm318_vm0, %v8049_v56  ;;  %8950 = vmatprep.mubr.msk.f32.mxu0 %vm269_vm1, %v9671_v15 }
  0x7a   : > { %8976 = vmatprep.mubr.msk.f32.mxu1 %vm269_vm1, %v9671_v15  ;;  %9049 = vmatprep.subr.msk.mxu1 %vm318_vm0, %v8101_v60 }
  0x7b   : > { %9075 = vmatprep.subr.msk.mxu0 %vm318_vm0, %v8119_v61  ;;  %8951 = vmatmul.mubr.msk.f32.gmra.mrb[2].mxu0 %vm269_vm1, %v9689_v17 }
  0x7c   : > { %8977 = vmatmul.mubr.msk.f32.gmra.mrb[2].mxu1 %vm269_vm1, %v9689_v17  ;;  %8953 = vmatprep.mubr.msk.f32.mxu0 %vm269_vm1, %v9695_v19 }
  0x7d   : > { %8979 = vmatprep.mubr.msk.f32.mxu1 %vm269_vm1, %v9695_v19 }
  0x7f   : > { %8954 = vmatmul.mubr.msk.f32.gmra.mrb[4].mxu0 %vm269_vm1, %v9709_v21 }
  0x80   : > { %8980 = vmatmul.mubr.msk.f32.gmra.mrb[4].mxu1 %vm269_vm1, %v9709_v21  ;;  %8956 = vmatprep.mubr.msk.f32.mxu0 %vm269_vm1, %v9715_v23 }
  0x81   : > { %8982 = vmatprep.mubr.msk.f32.mxu1 %vm269_vm1, %v9715_v23 }
  0x83   : > { %8957 = vmatmul.mubr.msk.f32.gmra.mrb[6].mxu0 %vm269_vm1, %v9729_v25 }
  0x84   : > { %8983 = vmatmul.mubr.msk.f32.gmra.mrb[6].mxu1 %vm269_vm1, %v9729_v25  ;;  %8959 = vmatprep.mubr.msk.f32.mxu0 %vm269_vm1, %v9735_v27 }
  0x85   : > { %8985 = vmatprep.mubr.msk.f32.mxu1 %vm269_vm1, %v9735_v27 }
  0x87   : > { %8960 = vmatmul.mubr.msk.f32.gmra.mrb[8].mxu0 %vm269_vm1, %v9749_v29 }
  0x88   : > { %8986 = vmatmul.mubr.msk.f32.gmra.mrb[8].mxu1 %vm269_vm1, %v9749_v29  ;;  %8962 = vmatprep.mubr.msk.f32.mxu0 %vm269_vm1, %v9755_v31 }
  0x89   : > { %8988 = vmatprep.mubr.msk.f32.mxu1 %vm269_vm1, %v9755_v31 }
  0x8b   : > { %8963 = vmatmul.mubr.msk.f32.gmra.mrb[10].mxu0 %vm269_vm1, %v9769_v33 }
  0x8c   : > { %8989 = vmatmul.mubr.msk.f32.gmra.mrb[10].mxu1 %vm269_vm1, %v9769_v33  ;;  %8965 = vmatprep.mubr.msk.f32.mxu0 %vm269_vm1, %v9775_v35 }
  0x8d   : > { %8991 = vmatprep.mubr.msk.f32.mxu1 %vm269_vm1, %v9775_v35 }
  0x8f   : > { %8966 = vmatmul.mubr.msk.f32.gmra.mrb[12].mxu0 %vm269_vm1, %v9789_v37 }
  0x90   : > { %8992 = vmatmul.mubr.msk.f32.gmra.mrb[12].mxu1 %vm269_vm1, %v9789_v37  ;;  %8968 = vmatprep.mubr.msk.f32.mxu0 %vm269_vm1, %v10056_v62 }
  0x91   : > { %8994 = vmatprep.mubr.msk.f32.mxu1 %vm269_vm1, %v10056_v62 }
  0x93   : > { %8969 = vmatmul.mubr.msk.f32.gmra.mrb[14].mxu0 %vm269_vm1, %v10067_v63 }
  0x94   : > { %8995 = vmatmul.mubr.msk.f32.gmra.mrb[14].mxu1 %vm269_vm1, %v10067_v63  ;;  %9025 = vmatprep.mubr.msk.f32.mxu0 %vm269_vm1, %v9640_v9 }
  0x95   : > { %8999 = vmatprep.mubr.msk.f32.mxu1 %vm269_vm1, %v9640_v9  ;;  %v8188_v9 = vld [vmem:[%s9623_s5 + $0xe1] sm:$0xff]  ;;  %s7868_s5 = sshll.u32 %s238_s21, 1 }
  0x96   : > { %s10370_s24 = scalar_lea.vmem %s12019_s3, %s7868_s5 }
  0x97   : > { %9026 = vmatmul.mubr.msk.f32.vlgmr.msra.gmra.mrb[16].mxu0 %vm269_vm1, %v9661_v13 }
  0x98   : > { %9000 = vmatmul.mubr.msk.f32.vlgmr.msra.gmra.mrb[16].mxu1 %vm269_vm1, %v9661_v13  ;;  %9076 = vmatpush3.msk.msra.mxu0 %vm318_vm0, %v8119_v61  ;;  %v3509_v13 = vunpack.c.l.s4 %v9545_v12 }
  0x99   : > { %9050 = vmatpush3.msk.msra.mxu1 %vm318_vm0, %v8101_v60  ;;  %9002 = vmatprep.mubr.msk.f32.mxu1 %vm269_vm1, %v9671_v15 }
  0x9a   : > { %9028 = vmatprep.mubr.msk.f32.mxu0 %vm269_vm1, %v9671_v15  ;;  %9101 = vmatprep.subr.msk.mxu1 %vm318_vm0, %v8155_v0 }
  0x9b   : > { %9153 = vmatprep.subr.msk.mxu0 %vm318_vm0, %v8207_v1  ;;  %9029 = vmatmul.mubr.msk.f32.gmra.mrb[18].mxu0 %vm269_vm1, %v9689_v17 }
  0x9c   : > { %9003 = vmatmul.mubr.msk.f32.gmra.mrb[18].mxu1 %vm269_vm1, %v9689_v17  ;;  %9031 = vmatprep.mubr.msk.f32.mxu0 %vm269_vm1, %v9695_v19 }
  0x9d   : > { %9005 = vmatprep.mubr.msk.f32.mxu1 %vm269_vm1, %v9695_v19 }
  0x9f   : > { %9032 = vmatmul.mubr.msk.f32.gmra.mrb[20].mxu0 %vm269_vm1, %v9709_v21 }
  0xa0   : > { %9006 = vmatmul.mubr.msk.f32.gmra.mrb[20].mxu1 %vm269_vm1, %v9709_v21  ;;  %9034 = vmatprep.mubr.msk.f32.mxu0 %vm269_vm1, %v9715_v23 }
  0xa1   : > { %9008 = vmatprep.mubr.msk.f32.mxu1 %vm269_vm1, %v9715_v23 }
  0xa3   : > { %9035 = vmatmul.mubr.msk.f32.gmra.mrb[22].mxu0 %vm269_vm1, %v9729_v25 }
  0xa4   : > { %9009 = vmatmul.mubr.msk.f32.gmra.mrb[22].mxu1 %vm269_vm1, %v9729_v25  ;;  %9037 = vmatprep.mubr.msk.f32.mxu0 %vm269_vm1, %v9735_v27 }
  0xa5   : > { %9011 = vmatprep.mubr.msk.f32.mxu1 %vm269_vm1, %v9735_v27 }
  0xa7   : > { %9038 = vmatmul.mubr.msk.f32.gmra.mrb[24].mxu0 %vm269_vm1, %v9749_v29 }
  0xa8   : > { %9012 = vmatmul.mubr.msk.f32.gmra.mrb[24].mxu1 %vm269_vm1, %v9749_v29  ;;  %9040 = vmatprep.mubr.msk.f32.mxu0 %vm269_vm1, %v9755_v31 }
  0xa9   : > { %9014 = vmatprep.mubr.msk.f32.mxu1 %vm269_vm1, %v9755_v31 }
  0xab   : > { %9041 = vmatmul.mubr.msk.f32.gmra.mrb[26].mxu0 %vm269_vm1, %v9769_v33 }
  0xac   : > { %9015 = vmatmul.mubr.msk.f32.gmra.mrb[26].mxu1 %vm269_vm1, %v9769_v33  ;;  %9043 = vmatprep.mubr.msk.f32.mxu0 %vm269_vm1, %v9775_v35 }
  0xad   : > { %9017 = vmatprep.mubr.msk.f32.mxu1 %vm269_vm1, %v9775_v35 }
  0xaf   : > { %9044 = vmatmul.mubr.msk.f32.gmra.mrb[28].mxu0 %vm269_vm1, %v9789_v37 }
  0xb0   : > { %9018 = vmatmul.mubr.msk.f32.gmra.mrb[28].mxu1 %vm269_vm1, %v9789_v37  ;;  %9046 = vmatprep.mubr.msk.f32.mxu0 %vm269_vm1, %v10056_v62 }
  0xb1   : > { %9020 = vmatprep.mubr.msk.f32.mxu1 %vm269_vm1, %v10056_v62 }
  0xb3   : > { %9047 = vmatmul.mubr.msk.f32.gmra.mrb[30].mxu0 %vm269_vm1, %v10067_v63 }
  0xb4   : > { %9021 = vmatmul.mubr.msk.f32.gmra.mrb[30].mxu1 %vm269_vm1, %v10067_v63  ;;  %9077 = vmatprep.mubr.msk.f32.mxu0 %vm269_vm1, %v9801_v40 }
  0xb5   : > { %9051 = vmatprep.mubr.msk.f32.mxu1 %vm269_vm1, %v9801_v40 }
  0xb7   : > { %9078 = vmatmul.mubr.msk.f32.vlgmr.msra.gmra.mrb[16].mxu0 %vm269_vm1, %v9817_v43 }
  0xb8   : > { %9052 = vmatmul.mubr.msk.f32.vlgmr.msra.gmra.mrb[0].mxu1 %vm269_vm1, %v9817_v43  ;;  %9154 = vmatpush3.msk.msra.mxu0 %vm318_vm0, %v8207_v1 }
  0xb9   : > { %9102 = vmatpush3.msk.msra.mxu1 %vm318_vm0, %v8155_v0  ;;  %9054 = vmatprep.mubr.msk.f32.mxu1 %vm269_vm1, %v9824_v44 }
  0xba   : > { %9080 = vmatprep.mubr.msk.f32.mxu0 %vm269_vm1, %v9824_v44  ;;  %9127 = vmatprep.subr.msk.mxu1 %vm318_vm0, %v8189_v2 }
  0xbb   : > { %9179 = vmatprep.subr.msk.mxu0 %vm318_vm0, %v8241_v3  ;;  %9081 = vmatmul.mubr.msk.f32.gmra.mrb[18].mxu0 %vm269_vm1, %v9837_v45 }
  0xbc   : > { %9055 = vmatmul.mubr.msk.f32.gmra.mrb[2].mxu1 %vm269_vm1, %v9837_v45  ;;  %9083 = vmatprep.mubr.msk.f32.mxu0 %vm269_vm1, %v9840_v46 }
  0xbd   : > { %9057 = vmatprep.mubr.msk.f32.mxu1 %vm269_vm1, %v9840_v46 }
  0xbf   : > { %9084 = vmatmul.mubr.msk.f32.gmra.mrb[20].mxu0 %vm269_vm1, %v9851_v47 }
  0xc0   : > { %9058 = vmatmul.mubr.msk.f32.gmra.mrb[4].mxu1 %vm269_vm1, %v9851_v47  ;;  %9086 = vmatprep.mubr.msk.f32.mxu0 %vm269_vm1, %v9854_v48 }
  0xc1   : > { %9060 = vmatprep.mubr.msk.f32.mxu1 %vm269_vm1, %v9854_v48 }
  0xc3   : > { %9087 = vmatmul.mubr.msk.f32.gmra.mrb[22].mxu0 %vm269_vm1, %v9865_v49 }
  0xc4   : > { %9061 = vmatmul.mubr.msk.f32.gmra.mrb[6].mxu1 %vm269_vm1, %v9865_v49  ;;  %9089 = vmatprep.mubr.msk.f32.mxu0 %vm269_vm1, %v9868_v50 }
  0xc5   : > { %9063 = vmatprep.mubr.msk.f32.mxu1 %vm269_vm1, %v9868_v50 }
  0xc7   : > { %9090 = vmatmul.mubr.msk.f32.gmra.mrb[24].mxu0 %vm269_vm1, %v9879_v51 }
  0xc8   : > { %9064 = vmatmul.mubr.msk.f32.gmra.mrb[8].mxu1 %vm269_vm1, %v9879_v51  ;;  %9092 = vmatprep.mubr.msk.f32.mxu0 %vm269_vm1, %v9882_v52 }
  0xc9   : > { %9066 = vmatprep.mubr.msk.f32.mxu1 %vm269_vm1, %v9882_v52 }
  0xcb   : > { %9093 = vmatmul.mubr.msk.f32.gmra.mrb[26].mxu0 %vm269_vm1, %v9893_v53 }
  0xcc   : > { %9067 = vmatmul.mubr.msk.f32.gmra.mrb[10].mxu1 %vm269_vm1, %v9893_v53  ;;  %9095 = vmatprep.mubr.msk.f32.mxu0 %vm269_vm1, %v9896_v54 }
  0xcd   : > { %9069 = vmatprep.mubr.msk.f32.mxu1 %vm269_vm1, %v9896_v54 }
  0xcf   : > { %9096 = vmatmul.mubr.msk.f32.gmra.mrb[28].mxu0 %vm269_vm1, %v9907_v55 }
  0xd0   : > { %9070 = vmatmul.mubr.msk.f32.gmra.mrb[12].mxu1 %vm269_vm1, %v9907_v55  ;;  %9098 = vmatprep.mubr.msk.f32.mxu0 %vm269_vm1, %v10210_v4 }
  0xd1   : > { %9072 = vmatprep.mubr.msk.f32.mxu1 %vm269_vm1, %v10210_v4 }
  0xd3   : > { %9099 = vmatmul.mubr.msk.f32.gmra.mrb[30].mxu0 %vm269_vm1, %v10221_v5 }
  0xd4   : > { %9073 = vmatmul.mubr.msk.f32.gmra.mrb[14].mxu1 %vm269_vm1, %v10221_v5  ;;  %9155 = vmatprep.mubr.msk.f32.mxu0 %vm269_vm1, %v9671_v15 }
  0xd5   : > { %9103 = vmatprep.mubr.msk.f32.mxu1 %vm269_vm1, %v9668_v14  ;;  %v3511_v14 = vlaneseq }
  0xd7   : > { %9156 = vmatmul.mubr.msk.f32.vlgmr.msra.gmra.mrb[16].mxu0 %vm269_vm1, %v9689_v17 }
  0xd8   : > { %9104 = vmatmul.mubr.msk.f32.vlgmr.msra.gmra.mrb[16].mxu1 %vm269_vm1, %v9686_v16  ;;  %9180 = vmatpush3.msk.msra.mxu0 %vm318_vm0, %v8241_v3  ;;  %v3512_v16 = vshrl.u32 %v3511_v14, 7 }
  0xd9   : > { %9128 = vmatpush3.msk.msra.mxu1 %vm318_vm0, %v8189_v2  ;;  %9106 = vmatprep.mubr.msk.f32.mxu1 %vm269_vm1, %v9692_v18 }
  0xda   : > { %9158 = vmatprep.mubr.msk.f32.mxu0 %vm269_vm1, %v9695_v19 }
  0xdb   : > { %9159 = vmatmul.mubr.msk.f32.gmra.mrb[18].mxu0 %vm269_vm1, %v9709_v21 }
  0xdc   : > { %9107 = vmatmul.mubr.msk.f32.gmra.mrb[18].mxu1 %vm269_vm1, %v9706_v20  ;;  %9161 = vmatprep.mubr.msk.f32.mxu0 %vm269_vm1, %v9715_v23 }
  0xdd   : > { %9109 = vmatprep.mubr.msk.f32.mxu1 %vm269_vm1, %v9712_v22 }
  0xdf   : > { %9162 = vmatmul.mubr.msk.f32.gmra.mrb[20].mxu0 %vm269_vm1, %v9729_v25 }
  0xe0   : > { %9110 = vmatmul.mubr.msk.f32.gmra.mrb[20].mxu1 %vm269_vm1, %v9726_v24  ;;  %9164 = vmatprep.mubr.msk.f32.mxu0 %vm269_vm1, %v9735_v27 }
  0xe1   : > { %9112 = vmatprep.mubr.msk.f32.mxu1 %vm269_vm1, %v9732_v26 }
  0xe3   : > { %9165 = vmatmul.mubr.msk.f32.gmra.mrb[22].mxu0 %vm269_vm1, %v9749_v29 }
  0xe4   : > { %9113 = vmatmul.mubr.msk.f32.gmra.mrb[22].mxu1 %vm269_vm1, %v9746_v28  ;;  %9167 = vmatprep.mubr.msk.f32.mxu0 %vm269_vm1, %v9755_v31 }
  0xe5   : > { %9115 = vmatprep.mubr.msk.f32.mxu1 %vm269_vm1, %v9752_v30 }
  0xe7   : > { %9168 = vmatmul.mubr.msk.f32.gmra.mrb[24].mxu0 %vm269_vm1, %v9769_v33 }
  0xe8   : > { %9116 = vmatmul.mubr.msk.f32.gmra.mrb[24].mxu1 %vm269_vm1, %v9766_v32  ;;  %9170 = vmatprep.mubr.msk.f32.mxu0 %vm269_vm1, %v9775_v35 }
  0xe9   : > { %9118 = vmatprep.mubr.msk.f32.mxu1 %vm269_vm1, %v9772_v34 }
  0xeb   : > { %9171 = vmatmul.mubr.msk.f32.gmra.mrb[26].mxu0 %vm269_vm1, %v9789_v37 }
  0xec   : > { %9119 = vmatmul.mubr.msk.f32.gmra.mrb[26].mxu1 %vm269_vm1, %v9786_v36  ;;  %9173 = vmatprep.mubr.msk.f32.mxu0 %vm269_vm1, %v10056_v62 }
  0xed   : > { %9121 = vmatprep.mubr.msk.f32.mxu1 %vm269_vm1, %v9976_v58 }
  0xef   : > { %9174 = vmatmul.mubr.msk.f32.gmra.mrb[28].mxu0 %vm269_vm1, %v10067_v63 }
  0xf0   : > { %9122 = vmatmul.mubr.msk.f32.gmra.mrb[28].mxu1 %vm269_vm1, %v9987_v59  ;;  %9176 = vmatprep.mubr.msk.f32.mxu0 %vm269_vm1, %v8187_v7 }
  0xf1   : > { %9124 = vmatprep.mubr.msk.f32.mxu1 %vm269_vm1, %v8153_v6 }
  0xf3   : > { %9177 = vmatmul.mubr.msk.f32.gmra.mrb[30].mxu0 %vm269_vm1, %v8188_v9 }
  0xf4   : > { %9125 = vmatmul.mubr.msk.f32.gmra.mrb[30].mxu1 %vm269_vm1, %v8154_v8  ;;  %9181 = vmatprep.mubr.msk.f32.mxu0 %vm269_vm1, %v9824_v44 }
  0xf5   : > { %9129 = vmatprep.mubr.msk.f32.mxu1 %vm269_vm1, %v9671_v15  ;;  %v3510_v15 = vunpack.c.0.s8 %v3509_v13 }
  0xf7   : > { %9182 = vmatmul.mubr.msk.f32.vlgmr.msra.gmra.mrb[16].mxu0 %vm269_vm1, %v9837_v45  ;;  %v10362_v18 = vsub.s32 %v3510_v15, %v3512_v16 }
  0xf8   : > { %9130 = vmatmul.mubr.msk.f32.vlgmr.msra.gmra.mrb[16].mxu1 %vm269_vm1, %v9689_v17  ;;  %9184 = vmatprep.mubr.msk.f32.mxu0 %vm269_vm1, %v9840_v46  ;;  %v10360_v17 = vld [vmem:[%s12018_s2] ss:$0 sm:$0xff] }
  0xf9   : > { %9132 = vmatprep.mubr.msk.f32.mxu1 %vm269_vm1, %v9695_v19 }
  0xfb   : > { %9185 = vmatmul.mubr.msk.f32.gmra.mrb[18].mxu0 %vm269_vm1, %v9851_v47 }
  0xfc   : > { %9133 = vmatmul.mubr.msk.f32.gmra.mrb[18].mxu1 %vm269_vm1, %v9709_v21  ;;  %9187 = vmatprep.mubr.msk.f32.mxu0 %vm269_vm1, %v9854_v48 }
  0xfd   : > { %9135 = vmatprep.mubr.msk.f32.mxu1 %vm269_vm1, %v9715_v23 }
  0xff   : > { %9188 = vmatmul.mubr.msk.f32.gmra.mrb[20].mxu0 %vm269_vm1, %v9865_v49 }
 0x100   : > { %9136 = vmatmul.mubr.msk.f32.gmra.mrb[20].mxu1 %vm269_vm1, %v9729_v25  ;;  %9190 = vmatprep.mubr.msk.f32.mxu0 %vm269_vm1, %v9868_v50 }
 0x101   : > { %9138 = vmatprep.mubr.msk.f32.mxu1 %vm269_vm1, %v9735_v27 }
 0x103   : > { %9191 = vmatmul.mubr.msk.f32.gmra.mrb[22].mxu0 %vm269_vm1, %v9879_v51 }
 0x104   : > { %9139 = vmatmul.mubr.msk.f32.gmra.mrb[22].mxu1 %vm269_vm1, %v9749_v29  ;;  %9193 = vmatprep.mubr.msk.f32.mxu0 %vm269_vm1, %v9882_v52 }
 0x105   : > { %9141 = vmatprep.mubr.msk.f32.mxu1 %vm269_vm1, %v9755_v31 }
 0x107   : > { %9194 = vmatmul.mubr.msk.f32.gmra.mrb[24].mxu0 %vm269_vm1, %v9893_v53 }
 0x108   : > { %9142 = vmatmul.mubr.msk.f32.gmra.mrb[24].mxu1 %vm269_vm1, %v9769_v33  ;;  %9196 = vmatprep.mubr.msk.f32.mxu0 %vm269_vm1, %v9896_v54 }
 0x109   : > { %9144 = vmatprep.mubr.msk.f32.mxu1 %vm269_vm1, %v9775_v35 }
 0x10b   : > { %9197 = vmatmul.mubr.msk.f32.gmra.mrb[26].mxu0 %vm269_vm1, %v9907_v55 }
 0x10c   : > { %9145 = vmatmul.mubr.msk.f32.gmra.mrb[26].mxu1 %vm269_vm1, %v9789_v37  ;;  %9199 = vmatprep.mubr.msk.f32.mxu0 %vm269_vm1, %v10210_v4 }
 0x10d   : > { %9147 = vmatprep.mubr.msk.f32.mxu1 %vm269_vm1, %v10056_v62 }
 0x10f   : > { %9200 = vmatmul.mubr.msk.f32.gmra.mrb[28].mxu0 %vm269_vm1, %v10221_v5 }
 0x110   : > { %9148 = vmatmul.mubr.msk.f32.gmra.mrb[28].mxu1 %vm269_vm1, %v10067_v63  ;;  %9202 = vmatprep.mubr.msk.f32.mxu0 %vm269_vm1, %v8239_v10 }
 0x111   : > { %9150 = vmatprep.mubr.msk.f32.mxu1 %vm269_vm1, %v8187_v7 }
 0x113   : > { %9203 = vmatmul.mubr.msk.f32.gmra.mrb[30].mxu0 %vm269_vm1, %v8240_v11 }
 0x114   : > { %9151 = vmatmul.mubr.msk.f32.gmra.mrb[30].mxu1 %vm269_vm1, %v8188_v9 }
 0x14a   : > { %v8949_v19 = vpop.f32.mrb[0].mxu0 }
 0x14b   : > { %v9205_v20 = vadd.f32 %v8949_v19, %v10360_v17  ;;  %v1643_v21 = vpop.f32.mrb[1].mxu0 }
 0x14c   : > { %v9206_v22 = vadd.f32 %v10360_v17, %v1643_v21 }
 0x14d   : > { %v3556_v23 = vcombine.high %v9205_v20, %v9205_v20  ;;  %v3563_v24 = vrot.slane %v9205_v20, %v10362_v18 }
 0x14e   : > { %v3507_v25 = vcombine.high %v9206_v22, %v9206_v22  ;;  %v3514_v26 = vrot.slane %v9206_v22, %v10362_v18  ;;  %v8952_v27 = vpop.f32.mrb[2].mxu0 }
 0x14f   : > { %v3570_v28 = vrot.slane %v3556_v23, %v10362_v18  ;;  %v3571_v29 = vcombine.high %v3563_v24, %v3563_v24  ;;  %v3579_v30 = vrot.slane %v3563_v24, %v10362_v18  ;;  %v9207_v31 = vadd.f32 %v8952_v27, %v10360_v17  ;;  %v1653_v32 = vpop.f32.mrb[3].mxu0 }
 0x150   : > { %v3521_v33 = vrot.slane %v3507_v25, %v10362_v18  ;;  %v3522_v34 = vcombine.high %v3514_v26, %v3514_v26  ;;  %v3530_v35 = vrot.slane %v3514_v26, %v10362_v18  ;;  %v9208_v36 = vadd.f32 %v10360_v17, %v1653_v32 }
 0x151   : > { %v3572_v37 = vcombine.high %v3570_v28, %v3570_v28  ;;  %v3586_v38 = vrot.slane %v3570_v28, %v10362_v18  ;;  %v3593_v39 = vrot.slane %v3571_v29, %v10362_v18  ;;  %v3601_v40 = vcombine.high %v3579_v30, %v3579_v30  ;;  %4428 = vst.msk [vmem:[%s10370_s24 + $0x10] sm:$0x1] %vm4419_vm2, %v3579_v30 }
 0x152   : > { %v3523_v41 = vcombine.high %v3521_v33, %v3521_v33  ;;  %v3537_v42 = vrot.slane %v3521_v33, %v10362_v18  ;;  %v3544_v43 = vrot.slane %v3522_v34, %v10362_v18  ;;  %v3552_v44 = vcombine.high %v3530_v35, %v3530_v35  ;;  %4420 = vst.msk [vmem:[%s10370_s24] sm:$0x1] %vm4419_vm2, %v3530_v35  ;;  %v8955_v45 = vpop.f32.mrb[4].mxu0 }
 0x153   : > { %v3600_v46 = vrot.slane %v3572_v37, %v10362_v18  ;;  %v3602_v47 = vcombine.high %v3586_v38, %v3586_v38  ;;  %v3603_v48 = vcombine.high %v3593_v39, %v3593_v39  ;;  %4429 = vst.msk [vmem:[%s10370_s24 + $0x12] sm:$0x1] %vm4419_vm2, %v3593_v39  ;;  %4430 = vst.msk [vmem:[%s10370_s24 + $0x14] sm:$0x1] %vm4419_vm2, %v3601_v40  ;;  %v1663_v50 = vpop.f32.mrb[5].mxu0 }
 0x154   : > { %4432 = vst.msk [vmem:[%s10370_s24 + $0x18] sm:$0x1] %vm4419_vm2, %v3586_v38  ;;  %v3654_v49 = vcombine.high %v9207_v31, %v9207_v31  ;;  %v3551_v51 = vrot.slane %v3523_v41, %v10362_v18  ;;  %v3553_v52 = vcombine.high %v3537_v42, %v3537_v42  ;;  %v3554_v53 = vcombine.high %v3544_v43, %v3544_v43 }
 0x155   : > { %4421 = vst.msk [vmem:[%s10370_s24 + $0x2] sm:$0x1] %vm4419_vm2, %v3544_v43  ;;  %4422 = vst.msk [vmem:[%s10370_s24 + $0x4] sm:$0x1] %vm4419_vm2, %v3552_v44  ;;  %v3661_v54 = vrot.slane %v9207_v31, %v10362_v18  ;;  %v3604_v55 = vcombine.high %v3600_v46, %v3600_v46  ;;  %v3605_v57 = vcombine.high %v9208_v36, %v9208_v36 }
 0x156   : > { %4424 = vst.msk [vmem:[%s10370_s24 + $0x8] sm:$0x1] %vm4419_vm2, %v3537_v42  ;;  %4431 = vst.msk [vmem:[%s10370_s24 + $0x16] sm:$0x1] %vm4419_vm2, %v3603_v48  ;;  %v3668_v56 = vrot.slane %v3654_v49, %v10362_v18  ;;  %v3612_v58 = vrot.slane %v9208_v36, %v10362_v18  ;;  %v3555_v59 = vcombine.high %v3551_v51, %v3551_v51  ;;  %v8958_v63 = vpop.f32.mrb[6].mxu0 }
 0x157   : > { %4433 = vst.msk [vmem:[%s10370_s24 + $0x1a] sm:$0x1] %vm4419_vm2, %v3600_v46  ;;  %4434 = vst.msk [vmem:[%s10370_s24 + $0x1c] sm:$0x1] %vm4419_vm2, %v3602_v47  ;;  %v3669_v60 = vcombine.high %v3661_v54, %v3661_v54  ;;  %v3677_v61 = vrot.slane %v3661_v54, %v10362_v18  ;;  %v9209_v62 = vadd.f32 %v8955_v45, %v10360_v17  ;;  %v10422_v4 = vpop.f32.mrb[7].mxu0 }
 0x158   : > { %4423 = vst.msk [vmem:[%s10370_s24 + $0x6] sm:$0x1] %vm4419_vm2, %v3554_v53  ;;  %4425 = vst.msk [vmem:[%s10370_s24 + $0xa] sm:$0x1] %vm4419_vm2, %v3551_v51  ;;  %v3670_v0 = vcombine.high %v3668_v56, %v3668_v56  ;;  %v3684_v1 = vrot.slane %v3668_v56, %v10362_v18  ;;  %v3619_v2 = vrot.slane %v3605_v57, %v10362_v18 }
 0x159   : > { %4426 = vst.msk [vmem:[%s10370_s24 + $0xc] sm:$0x1] %vm4419_vm2, %v3553_v52  ;;  %4435 = vst.msk [vmem:[%s10370_s24 + $0x1e] sm:$0x1] %vm4419_vm2, %v3604_v55  ;;  %v3620_v3 = vcombine.high %v3612_v58, %v3612_v58  ;;  %v3691_v5 = vrot.slane %v3669_v60, %v10362_v18  ;;  %v3699_v6 = vcombine.high %v3677_v61, %v3677_v61 }
 0x15a   : > { %4427 = vst.msk [vmem:[%s10370_s24 + $0xe] sm:$0x1] %vm4419_vm2, %v3555_v59  ;;  %4444 = vst.msk [vmem:[%s10370_s24 + $0x50] sm:$0x1] %vm4419_vm2, %v3677_v61  ;;  %v3628_v7 = vrot.slane %v3612_v58, %v10362_v18  ;;  %v3752_v8 = vcombine.high %v9209_v62, %v9209_v62  ;;  %v3698_v9 = vrot.slane %v3670_v0, %v10362_v18  ;;  %v10442_v19 = vpop.f32.mrb[8].mxu0 }
 0x15b   : > { %v3700_v10 = vcombine.high %v3684_v1, %v3684_v1  ;;  %4448 = vst.msk [vmem:[%s10370_s24 + $0x58] sm:$0x1] %vm4419_vm2, %v3684_v1  ;;  %v3621_v11 = vcombine.high %v3619_v2, %v3619_v2  ;;  %v3635_v12 = vrot.slane %v3619_v2, %v10362_v18  ;;  %v3701_v13 = vcombine.high %v3691_v5, %v3691_v5  ;;  %v10452_v24 = vpop.f32.mrb[9].mxu0 }
 0x15c   : > { %4445 = vst.msk [vmem:[%s10370_s24 + $0x52] sm:$0x1] %vm4419_vm2, %v3691_v5  ;;  %4446 = vst.msk [vmem:[%s10370_s24 + $0x54] sm:$0x1] %vm4419_vm2, %v3699_v6  ;;  %v3642_v14 = vrot.slane %v3620_v3, %v10362_v18  ;;  %v3650_v15 = vcombine.high %v3628_v7, %v3628_v7  ;;  %v3759_v16 = vrot.slane %v9209_v62, %v10362_v18 }
 0x15d   : > { %4436 = vst.msk [vmem:[%s10370_s24 + $0x40] sm:$0x1] %vm4419_vm2, %v3628_v7  ;;  %v3702_v20 = vcombine.high %v3698_v9, %v3698_v9  ;;  %4449 = vst.msk [vmem:[%s10370_s24 + $0x5a] sm:$0x1] %vm4419_vm2, %v3698_v9  ;;  %v3649_v21 = vrot.slane %v3621_v11, %v10362_v18  ;;  %v3651_v22 = vcombine.high %v3635_v12, %v3635_v12 }
 0x15e   : > { %4450 = vst.msk [vmem:[%s10370_s24 + $0x5c] sm:$0x1] %vm4419_vm2, %v3700_v10  ;;  %4440 = vst.msk [vmem:[%s10370_s24 + $0x48] sm:$0x1] %vm4419_vm2, %v3635_v12  ;;  %v3766_v23 = vrot.slane %v3752_v8, %v10362_v18  ;;  %v3652_v25 = vcombine.high %v3642_v14, %v3642_v14  ;;  %v3767_v26 = vcombine.high %v3759_v16, %v3759_v16  ;;  %v8964_v37 = vpop.f32.mrb[10].mxu0 }
 0x15f   : > { %4447 = vst.msk [vmem:[%s10370_s24 + $0x56] sm:$0x1] %vm4419_vm2, %v3701_v13  ;;  %4437 = vst.msk [vmem:[%s10370_s24 + $0x42] sm:$0x1] %vm4419_vm2, %v3642_v14  ;;  %v3775_v27 = vrot.slane %v3759_v16, %v10362_v18  ;;  %v9210_v28 = vadd.f32 %v10360_v17, %v1663_v50  ;;  %v3653_v29 = vcombine.high %v3649_v21, %v3649_v21  ;;  %v10482_v42 = vpop.f32.mrb[11].mxu0 }
 0x160   : > { %4438 = vst.msk [vmem:[%s10370_s24 + $0x44] sm:$0x1] %vm4419_vm2, %v3650_v15  ;;  %4451 = vst.msk [vmem:[%s10370_s24 + $0x5e] sm:$0x1] %vm4419_vm2, %v3702_v20  ;;  %v3768_v30 = vcombine.high %v3766_v23, %v3766_v23  ;;  %v3782_v31 = vrot.slane %v3766_v23, %v10362_v18  ;;  %v9211_v32 = vadd.f32 %v8958_v63, %v10360_v17 }
 0x161   : > { %4441 = vst.msk [vmem:[%s10370_s24 + $0x4a] sm:$0x1] %vm4419_vm2, %v3649_v21  ;;  %4442 = vst.msk [vmem:[%s10370_s24 + $0x4c] sm:$0x1] %vm4419_vm2, %v3651_v22  ;;  %v3789_v33 = vrot.slane %v3767_v26, %v10362_v18  ;;  %v3797_v34 = vcombine.high %v3775_v27, %v3775_v27  ;;  %v3703_v35 = vcombine.high %v9210_v28, %v9210_v28 }
 0x162   : > { %4439 = vst.msk [vmem:[%s10370_s24 + $0x46] sm:$0x1] %vm4419_vm2, %v3652_v25  ;;  %4460 = vst.msk [vmem:[%s10370_s24 + $0x90] sm:$0x1] %vm4419_vm2, %v3775_v27  ;;  %v3710_v36 = vrot.slane %v9210_v28, %v10362_v18  ;;  %v3796_v38 = vrot.slane %v3768_v30, %v10362_v18  ;;  %v3798_v39 = vcombine.high %v3782_v31, %v3782_v31  ;;  %v10502_v55 = vpop.f32.mrb[12].mxu0 }
 0x163   : > { %4443 = vst.msk [vmem:[%s10370_s24 + $0x4e] sm:$0x1] %vm4419_vm2, %v3653_v29  ;;  %4464 = vst.msk [vmem:[%s10370_s24 + $0x98] sm:$0x1] %vm4419_vm2, %v3782_v31  ;;  %v3850_v40 = vcombine.high %v9211_v32, %v9211_v32  ;;  %v3857_v41 = vrot.slane %v9211_v32, %v10362_v18  ;;  %v3799_v43 = vcombine.high %v3789_v33, %v3789_v33  ;;  %v10510_v60 = vpop.f32.mrb[13].mxu0 }
 0x164   : > { %4461 = vst.msk [vmem:[%s10370_s24 + $0x92] sm:$0x1] %vm4419_vm2, %v3789_v33  ;;  %4462 = vst.msk [vmem:[%s10370_s24 + $0x94] sm:$0x1] %vm4419_vm2, %v3797_v34  ;;  %v3717_v44 = vrot.slane %v3703_v35, %v10362_v18  ;;  %v3718_v45 = vcombine.high %v3710_v36, %v3710_v36  ;;  %v3726_v46 = vrot.slane %v3710_v36, %v10362_v18 }
 0x165   : > { %v3800_v47 = vcombine.high %v3796_v38, %v3796_v38  ;;  %4465 = vst.msk [vmem:[%s10370_s24 + $0x9a] sm:$0x1] %vm4419_vm2, %v3796_v38  ;;  %4466 = vst.msk [vmem:[%s10370_s24 + $0x9c] sm:$0x1] %vm4419_vm2, %v3798_v39  ;;  %v3864_v48 = vrot.slane %v3850_v40, %v10362_v18  ;;  %v3865_v49 = vcombine.high %v3857_v41, %v3857_v41 }
 0x166   : > { %v3873_v50 = vrot.slane %v3857_v41, %v10362_v18  ;;  %4463 = vst.msk [vmem:[%s10370_s24 + $0x96] sm:$0x1] %vm4419_vm2, %v3799_v43  ;;  %v3719_v51 = vcombine.high %v3717_v44, %v3717_v44  ;;  %v3733_v52 = vrot.slane %v3717_v44, %v10362_v18  ;;  %v3740_v53 = vrot.slane %v3718_v45, %v10362_v18  ;;  %v10539_v9 = vpop.f32.mrb[14].mxu0 }
 0x167   : > { %v3748_v54 = vcombine.high %v3726_v46, %v3726_v46  ;;  %4452 = vst.msk [vmem:[%s10370_s24 + $0x80] sm:$0x1] %vm4419_vm2, %v3726_v46  ;;  %4467 = vst.msk [vmem:[%s10370_s24 + $0x9e] sm:$0x1] %vm4419_vm2, %v3800_v47  ;;  %v3866_v56 = vcombine.high %v3864_v48, %v3864_v48  ;;  %v3880_v57 = vrot.slane %v3864_v48, %v10362_v18  ;;  %v10549_v14 = vpop.f32.mrb[15].mxu0 }
 0x168   : > { %v3887_v58 = vrot.slane %v3865_v49, %v10362_v18  ;;  %v3895_v59 = vcombine.high %v3873_v50, %v3873_v50  ;;  %4476 = vst.msk [vmem:[%s10370_s24 + $0xd0] sm:$0x1] %vm4419_vm2, %v3873_v50  ;;  %v3747_v61 = vrot.slane %v3719_v51, %v10362_v18  ;;  %v3749_v62 = vcombine.high %v3733_v52, %v3733_v52 }
 0x169   : > { %v3750_v63 = vcombine.high %v3740_v53, %v3740_v53  ;;  %4453 = vst.msk [vmem:[%s10370_s24 + $0x82] sm:$0x1] %vm4419_vm2, %v3740_v53  ;;  %4454 = vst.msk [vmem:[%s10370_s24 + $0x84] sm:$0x1] %vm4419_vm2, %v3748_v54  ;;  %v9212_v0 = vadd.f32 %v10360_v17, %v10422_v4  ;;  %v3894_v1 = vrot.slane %v3866_v56, %v10362_v18 }
 0x16a   : > { %4456 = vst.msk [vmem:[%s10370_s24 + $0x88] sm:$0x1] %vm4419_vm2, %v3733_v52  ;;  %v3896_v2 = vcombine.high %v3880_v57, %v3880_v57  ;;  %v3897_v3 = vcombine.high %v3887_v58, %v3887_v58  ;;  %4477 = vst.msk [vmem:[%s10370_s24 + $0xd2] sm:$0x1] %vm4419_vm2, %v3887_v58  ;;  %v9213_v5 = vadd.f32 %v10442_v19, %v10360_v17 }
 0x16b   : > { %4478 = vst.msk [vmem:[%s10370_s24 + $0xd4] sm:$0x1] %vm4419_vm2, %v3895_v59  ;;  %4480 = vst.msk [vmem:[%s10370_s24 + $0xd8] sm:$0x1] %vm4419_vm2, %v3880_v57  ;;  %v3751_v6 = vcombine.high %v3747_v61, %v3747_v61  ;;  %v3801_v4 = vcombine.high %v9212_v0, %v9212_v0  ;;  %v3808_v7 = vrot.slane %v9212_v0, %v10362_v18 }
 0x16c   : > { %4455 = vst.msk [vmem:[%s10370_s24 + $0x86] sm:$0x1] %vm4419_vm2, %v3750_v63  ;;  %4457 = vst.msk [vmem:[%s10370_s24 + $0x8a] sm:$0x1] %vm4419_vm2, %v3747_v61  ;;  %v9214_v8 = vadd.f32 %v10360_v17, %v10452_v24  ;;  %v3898_v10 = vcombine.high %v3894_v1, %v3894_v1  ;;  %v3948_v11 = vcombine.high %v9213_v5, %v9213_v5 }
 0x16d   : > { %4458 = vst.msk [vmem:[%s10370_s24 + $0x8c] sm:$0x1] %vm4419_vm2, %v3749_v62  ;;  %4479 = vst.msk [vmem:[%s10370_s24 + $0xd6] sm:$0x1] %vm4419_vm2, %v3897_v3  ;;  %v3955_v12 = vrot.slane %v9213_v5, %v10362_v18  ;;  %v9215_v13 = vadd.f32 %v8964_v37, %v10360_v17  ;;  %v3815_v15 = vrot.slane %v3801_v4, %v10362_v18 }
 0x16e   : > { %4481 = vst.msk [vmem:[%s10370_s24 + $0xda] sm:$0x1] %vm4419_vm2, %v3894_v1  ;;  %4482 = vst.msk [vmem:[%s10370_s24 + $0xdc] sm:$0x1] %vm4419_vm2, %v3896_v2  ;;  %v3816_v16 = vcombine.high %v3808_v7, %v3808_v7  ;;  %v3824_v19 = vrot.slane %v3808_v7, %v10362_v18  ;;  %v3899_v20 = vcombine.high %v9214_v8, %v9214_v8 }
 0x16f   : > { %4459 = vst.msk [vmem:[%s10370_s24 + $0x8e] sm:$0x1] %vm4419_vm2, %v3751_v6  ;;  %4483 = vst.msk [vmem:[%s10370_s24 + $0xde] sm:$0x1] %vm4419_vm2, %v3898_v10  ;;  %v3962_v21 = vrot.slane %v3948_v11, %v10362_v18  ;;  %v3963_v22 = vcombine.high %v3955_v12, %v3955_v12  ;;  %v3971_v23 = vrot.slane %v3955_v12, %v10362_v18 }
 0x170   : > { %v3906_v24 = vrot.slane %v9214_v8, %v10362_v18  ;;  %v3817_v25 = vcombine.high %v3815_v15, %v3815_v15  ;;  %v3831_v26 = vrot.slane %v3815_v15, %v10362_v18  ;;  %v3838_v27 = vrot.slane %v3816_v16, %v10362_v18  ;;  %4468 = vst.msk [vmem:[%s10370_s24 + $0xc0] sm:$0x1] %vm4419_vm2, %v3824_v19 }
 0x171   : > { %v3846_v28 = vcombine.high %v3824_v19, %v3824_v19  ;;  %v3964_v29 = vcombine.high %v3962_v21, %v3962_v21  ;;  %v3978_v30 = vrot.slane %v3962_v21, %v10362_v18  ;;  %v3985_v31 = vrot.slane %v3963_v22, %v10362_v18  ;;  %4492 = vst.msk [vmem:[%s10370_s24 + $0x110] sm:$0x1] %vm4419_vm2, %v3971_v23 }
 0x172   : > { %v3993_v32 = vcombine.high %v3971_v23, %v3971_v23  ;;  %v3845_v33 = vrot.slane %v3817_v25, %v10362_v18  ;;  %v3847_v34 = vcombine.high %v3831_v26, %v3831_v26  ;;  %v3848_v35 = vcombine.high %v3838_v27, %v3838_v27  ;;  %4469 = vst.msk [vmem:[%s10370_s24 + $0xc2] sm:$0x1] %vm4419_vm2, %v3838_v27 }
 0x173   : > { %4470 = vst.msk [vmem:[%s10370_s24 + $0xc4] sm:$0x1] %vm4419_vm2, %v3846_v28  ;;  %4472 = vst.msk [vmem:[%s10370_s24 + $0xc8] sm:$0x1] %vm4419_vm2, %v3831_v26  ;;  %v3913_v36 = vrot.slane %v3899_v20, %v10362_v18  ;;  %v3992_v37 = vrot.slane %v3964_v29, %v10362_v18  ;;  %v3994_v38 = vcombine.high %v3978_v30, %v3978_v30 }
 0x174   : > { %v3995_v39 = vcombine.high %v3985_v31, %v3985_v31  ;;  %4493 = vst.msk [vmem:[%s10370_s24 + $0x112] sm:$0x1] %vm4419_vm2, %v3985_v31  ;;  %4494 = vst.msk [vmem:[%s10370_s24 + $0x114] sm:$0x1] %vm4419_vm2, %v3993_v32  ;;  %v3914_v40 = vcombine.high %v3906_v24, %v3906_v24  ;;  %v3849_v41 = vcombine.high %v3845_v33, %v3845_v33 }
 0x175   : > { %4496 = vst.msk [vmem:[%s10370_s24 + $0x118] sm:$0x1] %vm4419_vm2, %v3978_v30  ;;  %4471 = vst.msk [vmem:[%s10370_s24 + $0xc6] sm:$0x1] %vm4419_vm2, %v3848_v35  ;;  %v3915_v43 = vcombine.high %v3913_v36, %v3913_v36  ;;  %v3922_v44 = vrot.slane %v3906_v24, %v10362_v18  ;;  %v3929_v45 = vrot.slane %v3913_v36, %v10362_v18 }
 0x176   : > { %4473 = vst.msk [vmem:[%s10370_s24 + $0xca] sm:$0x1] %vm4419_vm2, %v3845_v33  ;;  %4474 = vst.msk [vmem:[%s10370_s24 + $0xcc] sm:$0x1] %vm4419_vm2, %v3847_v34  ;;  %v3996_v46 = vcombine.high %v3992_v37, %v3992_v37  ;;  %v3936_v47 = vrot.slane %v3914_v40, %v10362_v18  ;;  %v4046_v48 = vcombine.high %v9215_v13, %v9215_v13 }
 0x177   : > { %4495 = vst.msk [vmem:[%s10370_s24 + $0x116] sm:$0x1] %vm4419_vm2, %v3995_v39  ;;  %4497 = vst.msk [vmem:[%s10370_s24 + $0x11a] sm:$0x1] %vm4419_vm2, %v3992_v37  ;;  %v4053_v49 = vrot.slane %v9215_v13, %v10362_v18  ;;  %v3943_v50 = vrot.slane %v3915_v43, %v10362_v18  ;;  %v3944_v51 = vcombine.high %v3922_v44, %v3922_v44 }
 0x178   : > { %4498 = vst.msk [vmem:[%s10370_s24 + $0x11c] sm:$0x1] %vm4419_vm2, %v3994_v38  ;;  %4475 = vst.msk [vmem:[%s10370_s24 + $0xce] sm:$0x1] %vm4419_vm2, %v3849_v41  ;;  %v3945_v52 = vcombine.high %v3929_v45, %v3929_v45  ;;  %v9216_v53 = vadd.f32 %v10360_v17, %v10482_v42  ;;  %v3946_v54 = vcombine.high %v3936_v47, %v3936_v47 }
 0x179   : > { %4484 = vst.msk [vmem:[%s10370_s24 + $0x100] sm:$0x1] %vm4419_vm2, %v3922_v44  ;;  %4488 = vst.msk [vmem:[%s10370_s24 + $0x108] sm:$0x1] %vm4419_vm2, %v3929_v45  ;;  %v4060_v56 = vrot.slane %v4046_v48, %v10362_v18  ;;  %v4061_v57 = vcombine.high %v4053_v49, %v4053_v49  ;;  %v4069_v58 = vrot.slane %v4053_v49, %v10362_v18 }
 0x17a   : > { %4499 = vst.msk [vmem:[%s10370_s24 + $0x11e] sm:$0x1] %vm4419_vm2, %v3996_v46  ;;  %4485 = vst.msk [vmem:[%s10370_s24 + $0x102] sm:$0x1] %vm4419_vm2, %v3936_v47  ;;  %v3947_v59 = vcombine.high %v3943_v50, %v3943_v50  ;;  %v3997_v42 = vcombine.high %v9216_v53, %v9216_v53  ;;  %v4004_v61 = vrot.slane %v9216_v53, %v10362_v18 }
 0x17b   : > { %4486 = vst.msk [vmem:[%s10370_s24 + $0x104] sm:$0x1] %vm4419_vm2, %v3944_v51  ;;  %4489 = vst.msk [vmem:[%s10370_s24 + $0x10a] sm:$0x1] %vm4419_vm2, %v3943_v50  ;;  %v9217_v62 = vadd.f32 %v10502_v55, %v10360_v17  ;;  %v4062_v63 = vcombine.high %v4060_v56, %v4060_v56  ;;  %v4076_v0 = vrot.slane %v4060_v56, %v10362_v18 }
 0x17c   : > { %4490 = vst.msk [vmem:[%s10370_s24 + $0x10c] sm:$0x1] %vm4419_vm2, %v3945_v52  ;;  %4487 = vst.msk [vmem:[%s10370_s24 + $0x106] sm:$0x1] %vm4419_vm2, %v3946_v54  ;;  %v4083_v1 = vrot.slane %v4061_v57, %v10362_v18  ;;  %v4091_v2 = vcombine.high %v4069_v58, %v4069_v58  ;;  %v4011_v3 = vrot.slane %v3997_v42, %v10362_v18 }
 0x17d   : > { %4508 = vst.msk [vmem:[%s10370_s24 + $0x150] sm:$0x1] %vm4419_vm2, %v4069_v58  ;;  %4491 = vst.msk [vmem:[%s10370_s24 + $0x10e] sm:$0x1] %vm4419_vm2, %v3947_v59  ;;  %v4012_v5 = vcombine.high %v4004_v61, %v4004_v61  ;;  %v4020_v55 = vrot.slane %v4004_v61, %v10362_v18  ;;  %v4144_v6 = vcombine.high %v9217_v62, %v9217_v62 }
 0x17e   : > { %v4090_v4 = vrot.slane %v4062_v63, %v10362_v18  ;;  %v4092_v7 = vcombine.high %v4076_v0, %v4076_v0  ;;  %v4093_v8 = vcombine.high %v4083_v1, %v4083_v1  ;;  %4509 = vst.msk [vmem:[%s10370_s24 + $0x152] sm:$0x1] %vm4419_vm2, %v4083_v1  ;;  %4510 = vst.msk [vmem:[%s10370_s24 + $0x154] sm:$0x1] %vm4419_vm2, %v4091_v2 }
 0x17f   : > { %4512 = vst.msk [vmem:[%s10370_s24 + $0x158] sm:$0x1] %vm4419_vm2, %v4076_v0  ;;  %v4151_v10 = vrot.slane %v9217_v62, %v10362_v18  ;;  %v4013_v11 = vcombine.high %v4011_v3, %v4011_v3  ;;  %v4027_v12 = vrot.slane %v4011_v3, %v10362_v18  ;;  %v4034_v13 = vrot.slane %v4012_v5, %v10362_v18 }
 0x180   : > { %v4042_v15 = vcombine.high %v4020_v55, %v4020_v55  ;;  %4500 = vst.msk [vmem:[%s10370_s24 + $0x140] sm:$0x1] %vm4419_vm2, %v4020_v55  ;;  %v4094_v16 = vcombine.high %v4090_v4, %v4090_v4  ;;  %4511 = vst.msk [vmem:[%s10370_s24 + $0x156] sm:$0x1] %vm4419_vm2, %v4093_v8  ;;  %v4158_v19 = vrot.slane %v4144_v6, %v10362_v18 }
 0x181   : > { %4513 = vst.msk [vmem:[%s10370_s24 + $0x15a] sm:$0x1] %vm4419_vm2, %v4090_v4  ;;  %4514 = vst.msk [vmem:[%s10370_s24 + $0x15c] sm:$0x1] %vm4419_vm2, %v4092_v7  ;;  %v4159_v20 = vcombine.high %v4151_v10, %v4151_v10  ;;  %v4167_v21 = vrot.slane %v4151_v10, %v10362_v18  ;;  %v4041_v22 = vrot.slane %v4013_v11, %v10362_v18 }
 0x182   : > { %v4043_v23 = vcombine.high %v4027_v12, %v4027_v12  ;;  %v4044_v24 = vcombine.high %v4034_v13, %v4034_v13  ;;  %4501 = vst.msk [vmem:[%s10370_s24 + $0x142] sm:$0x1] %vm4419_vm2, %v4034_v13  ;;  %4502 = vst.msk [vmem:[%s10370_s24 + $0x144] sm:$0x1] %vm4419_vm2, %v4042_v15  ;;  %v9218_v25 = vadd.f32 %v10360_v17, %v10510_v60 }
 0x183   : > { %4504 = vst.msk [vmem:[%s10370_s24 + $0x148] sm:$0x1] %vm4419_vm2, %v4027_v12  ;;  %4515 = vst.msk [vmem:[%s10370_s24 + $0x15e] sm:$0x1] %vm4419_vm2, %v4094_v16  ;;  %v4160_v26 = vcombine.high %v4158_v19, %v4158_v19  ;;  %v4174_v27 = vrot.slane %v4158_v19, %v10362_v18  ;;  %v4181_v28 = vrot.slane %v4159_v20, %v10362_v18 }
 0x184   : > { %v4189_v29 = vcombine.high %v4167_v21, %v4167_v21  ;;  %4524 = vst.msk [vmem:[%s10370_s24 + $0x190] sm:$0x1] %vm4419_vm2, %v4167_v21  ;;  %v4045_v30 = vcombine.high %v4041_v22, %v4041_v22  ;;  %4503 = vst.msk [vmem:[%s10370_s24 + $0x146] sm:$0x1] %vm4419_vm2, %v4044_v24  ;;  %v4095_v60 = vcombine.high %v9218_v25, %v9218_v25 }
 0x185   : > { %4505 = vst.msk [vmem:[%s10370_s24 + $0x14a] sm:$0x1] %vm4419_vm2, %v4041_v22  ;;  %4506 = vst.msk [vmem:[%s10370_s24 + $0x14c] sm:$0x1] %vm4419_vm2, %v4043_v23  ;;  %v4102_v31 = vrot.slane %v9218_v25, %v10362_v18  ;;  %v9219_v32 = vadd.f32 %v10539_v9, %v10360_v17  ;;  %v4188_v33 = vrot.slane %v4160_v26, %v10362_v18 }
 0x186   : > { %v4190_v34 = vcombine.high %v4174_v27, %v4174_v27  ;;  %v4191_v35 = vcombine.high %v4181_v28, %v4181_v28  ;;  %4525 = vst.msk [vmem:[%s10370_s24 + $0x192] sm:$0x1] %vm4419_vm2, %v4181_v28  ;;  %4526 = vst.msk [vmem:[%s10370_s24 + $0x194] sm:$0x1] %vm4419_vm2, %v4189_v29  ;;  %v9220_v36 = vadd.f32 %v10360_v17, %v10549_v14 }
 0x187   : > { %4528 = vst.msk [vmem:[%s10370_s24 + $0x198] sm:$0x1] %vm4419_vm2, %v4174_v27  ;;  %4507 = vst.msk [vmem:[%s10370_s24 + $0x14e] sm:$0x1] %vm4419_vm2, %v4045_v30  ;;  %v4109_v37 = vrot.slane %v4095_v60, %v10362_v18  ;;  %v4110_v9 = vcombine.high %v4102_v31, %v4102_v31  ;;  %v4118_v38 = vrot.slane %v4102_v31, %v10362_v18 }
 0x188   : > { %v4242_v39 = vcombine.high %v9219_v32, %v9219_v32  ;;  %v4192_v40 = vcombine.high %v4188_v33, %v4188_v33  ;;  %4527 = vst.msk [vmem:[%s10370_s24 + $0x196] sm:$0x1] %vm4419_vm2, %v4191_v35  ;;  %4529 = vst.msk [vmem:[%s10370_s24 + $0x19a] sm:$0x1] %vm4419_vm2, %v4188_v33  ;;  %v4249_v41 = vrot.slane %v9219_v32, %v10362_v18 }
 0x189   : > { %4530 = vst.msk [vmem:[%s10370_s24 + $0x19c] sm:$0x1] %vm4419_vm2, %v4190_v34  ;;  %v4193_v14 = vcombine.high %v9220_v36, %v9220_v36  ;;  %v4200_v43 = vrot.slane %v9220_v36, %v10362_v18  ;;  %v4111_v44 = vcombine.high %v4109_v37, %v4109_v37  ;;  %v4125_v45 = vrot.slane %v4109_v37, %v10362_v18 }
 0x18a   : > { %v4132_v46 = vrot.slane %v4110_v9, %v10362_v18  ;;  %v4140_v47 = vcombine.high %v4118_v38, %v4118_v38  ;;  %4516 = vst.msk [vmem:[%s10370_s24 + $0x180] sm:$0x1] %vm4419_vm2, %v4118_v38  ;;  %4531 = vst.msk [vmem:[%s10370_s24 + $0x19e] sm:$0x1] %vm4419_vm2, %v4192_v40  ;;  %v4256_v48 = vrot.slane %v4242_v39, %v10362_v18 }
 0x18b   : > { %v4257_v49 = vcombine.high %v4249_v41, %v4249_v41  ;;  %v4265_v50 = vrot.slane %v4249_v41, %v10362_v18  ;;  %v4207_v51 = vrot.slane %v4193_v14, %v10362_v18  ;;  %v4139_v52 = vrot.slane %v4111_v44, %v10362_v18  ;;  %4520 = vst.msk [vmem:[%s10370_s24 + $0x188] sm:$0x1] %vm4419_vm2, %v4125_v45  ;;  %v9053_v11 = vpop.f32.mrb[0].mxu1 }
 0x18c   : > { %v4141_v53 = vcombine.high %v4125_v45, %v4125_v45  ;;  %v4142_v54 = vcombine.high %v4132_v46, %v4132_v46  ;;  %4517 = vst.msk [vmem:[%s10370_s24 + $0x182] sm:$0x1] %vm4419_vm2, %v4132_v46  ;;  %4518 = vst.msk [vmem:[%s10370_s24 + $0x184] sm:$0x1] %vm4419_vm2, %v4140_v47  ;;  %v4208_v56 = vcombine.high %v4200_v43, %v4200_v43  ;;  %v2371_v13 = vpop.f32.mrb[1].mxu1 }
 0x18d   : > { %v4258_v57 = vcombine.high %v4256_v48, %v4256_v48  ;;  %v4272_v58 = vrot.slane %v4256_v48, %v10362_v18  ;;  %v4279_v59 = vrot.slane %v4257_v49, %v10362_v18  ;;  %v4287_v42 = vcombine.high %v4265_v50, %v4265_v50  ;;  %4540 = vst.msk [vmem:[%s10370_s24 + $0x1d0] sm:$0x1] %vm4419_vm2, %v4265_v50 }
 0x18e   : > { %v4143_v61 = vcombine.high %v4139_v52, %v4139_v52  ;;  %4519 = vst.msk [vmem:[%s10370_s24 + $0x186] sm:$0x1] %vm4419_vm2, %v4142_v54  ;;  %4521 = vst.msk [vmem:[%s10370_s24 + $0x18a] sm:$0x1] %vm4419_vm2, %v4139_v52  ;;  %v4209_v62 = vcombine.high %v4207_v51, %v4207_v51  ;;  %v4216_v63 = vrot.slane %v4200_v43, %v10362_v18 }
 0x18f   : > { %4522 = vst.msk [vmem:[%s10370_s24 + $0x18c] sm:$0x1] %vm4419_vm2, %v4141_v53  ;;  %v4223_v0 = vrot.slane %v4207_v51, %v10362_v18  ;;  %v4286_v1 = vrot.slane %v4258_v57, %v10362_v18  ;;  %v4288_v2 = vcombine.high %v4272_v58, %v4272_v58  ;;  %v4289_v3 = vcombine.high %v4279_v59, %v4279_v59  ;;  %v9056_v22 = vpop.f32.mrb[2].mxu1 }
 0x190   : > { %4541 = vst.msk [vmem:[%s10370_s24 + $0x1d2] sm:$0x1] %vm4419_vm2, %v4279_v59  ;;  %4542 = vst.msk [vmem:[%s10370_s24 + $0x1d4] sm:$0x1] %vm4419_vm2, %v4287_v42  ;;  %v4230_v5 = vrot.slane %v4208_v56, %v10362_v18  ;;  %v4237_v55 = vrot.slane %v4209_v62, %v10362_v18  ;;  %v4238_v6 = vcombine.high %v4216_v63, %v4216_v63  ;;  %v2381_v27 = vpop.f32.mrb[3].mxu1 }
 0x191   : > { %4544 = vst.msk [vmem:[%s10370_s24 + $0x1d8] sm:$0x1] %vm4419_vm2, %v4272_v58  ;;  %4523 = vst.msk [vmem:[%s10370_s24 + $0x18e] sm:$0x1] %vm4419_vm2, %v4143_v61  ;;  %v4239_v4 = vcombine.high %v4223_v0, %v4223_v0  ;;  %v4290_v7 = vcombine.high %v4286_v1, %v4286_v1  ;;  %v9221_v12 = vadd.f32 %v9053_v11, %v10360_v17 }
 0x192   : > { %4532 = vst.msk [vmem:[%s10370_s24 + $0x1c0] sm:$0x1] %vm4419_vm2, %v4216_v63  ;;  %4536 = vst.msk [vmem:[%s10370_s24 + $0x1c8] sm:$0x1] %vm4419_vm2, %v4223_v0  ;;  %v4240_v8 = vcombine.high %v4230_v5, %v4230_v5  ;;  %v4241_v10 = vcombine.high %v4237_v55, %v4237_v55  ;;  %v9222_v15 = vadd.f32 %v10360_v17, %v2371_v13 }
 0x193   : > { %4543 = vst.msk [vmem:[%s10370_s24 + $0x1d6] sm:$0x1] %vm4419_vm2, %v4289_v3  ;;  %4545 = vst.msk [vmem:[%s10370_s24 + $0x1da] sm:$0x1] %vm4419_vm2, %v4286_v1  ;;  %v4613_v16 = vcombine.high %v9221_v12, %v9221_v12  ;;  %v4620_v19 = vrot.slane %v9221_v12, %v10362_v18  ;;  %v9223_v26 = vadd.f32 %v9056_v22, %v10360_v17  ;;  %v9059_v38 = vpop.f32.mrb[4].mxu1 }
 0x194   : > { %4546 = vst.msk [vmem:[%s10370_s24 + $0x1dc] sm:$0x1] %vm4419_vm2, %v4288_v2  ;;  %4533 = vst.msk [vmem:[%s10370_s24 + $0x1c2] sm:$0x1] %vm4419_vm2, %v4230_v5  ;;  %v4564_v20 = vcombine.high %v9222_v15, %v9222_v15  ;;  %v4571_v21 = vrot.slane %v9222_v15, %v10362_v18  ;;  %v9224_v60 = vadd.f32 %v10360_v17, %v2381_v27  ;;  %v2391_v43 = vpop.f32.mrb[5].mxu1 }
 0x195   : > { %4534 = vst.msk [vmem:[%s10370_s24 + $0x1c4] sm:$0x1] %vm4419_vm2, %v4238_v6  ;;  %4537 = vst.msk [vmem:[%s10370_s24 + $0x1ca] sm:$0x1] %vm4419_vm2, %v4237_v55  ;;  %v4627_v23 = vrot.slane %v4613_v16, %v10362_v18  ;;  %v4628_v24 = vcombine.high %v4620_v19, %v4620_v19  ;;  %v4636_v25 = vrot.slane %v4620_v19, %v10362_v18 }
 0x196   : > { %4538 = vst.msk [vmem:[%s10370_s24 + $0x1cc] sm:$0x1] %vm4419_vm2, %v4239_v4  ;;  %4547 = vst.msk [vmem:[%s10370_s24 + $0x1de] sm:$0x1] %vm4419_vm2, %v4290_v7  ;;  %v4578_v28 = vrot.slane %v4564_v20, %v10362_v18  ;;  %v4579_v29 = vcombine.high %v4571_v21, %v4571_v21  ;;  %v4587_v30 = vrot.slane %v4571_v21, %v10362_v18 }
 0x197   : > { %4535 = vst.msk [vmem:[%s10370_s24 + $0x1c6] sm:$0x1] %vm4419_vm2, %v4240_v8  ;;  %4539 = vst.msk [vmem:[%s10370_s24 + $0x1ce] sm:$0x1] %vm4419_vm2, %v4241_v10  ;;  %v4629_v31 = vcombine.high %v4627_v23, %v4627_v23  ;;  %v4643_v32 = vrot.slane %v4627_v23, %v10362_v18  ;;  %v4650_v33 = vrot.slane %v4628_v24, %v10362_v18  ;;  %v9062_v57 = vpop.f32.mrb[6].mxu1 }
 0x198   : > { %v4658_v34 = vcombine.high %v4636_v25, %v4636_v25  ;;  %5484 = vst.msk [vmem:[%s10370_s24 + $0x11] sm:$0x1] %vm4419_vm2, %v4636_v25  ;;  %v4580_v35 = vcombine.high %v4578_v28, %v4578_v28  ;;  %v4594_v36 = vrot.slane %v4578_v28, %v10362_v18  ;;  %v4601_v37 = vrot.slane %v4579_v29, %v10362_v18  ;;  %v10814_v62 = vpop.f32.mrb[7].mxu1 }
 0x199   : > { %v4609_v9 = vcombine.high %v4587_v30, %v4587_v30  ;;  %5476 = vst.msk [vmem:[%s10370_s24 + $0x1] sm:$0x1] %vm4419_vm2, %v4587_v30  ;;  %v4657_v39 = vrot.slane %v4629_v31, %v10362_v18  ;;  %v4659_v40 = vcombine.high %v4643_v32, %v4643_v32  ;;  %v4660_v41 = vcombine.high %v4650_v33, %v4650_v33 }
 0x19a   : > { %5485 = vst.msk [vmem:[%s10370_s24 + $0x13] sm:$0x1] %vm4419_vm2, %v4650_v33  ;;  %5486 = vst.msk [vmem:[%s10370_s24 + $0x15] sm:$0x1] %vm4419_vm2, %v4658_v34  ;;  %v4711_v14 = vcombine.high %v9223_v26, %v9223_v26  ;;  %v4608_v44 = vrot.slane %v4580_v35, %v10362_v18  ;;  %v4610_v45 = vcombine.high %v4594_v36, %v4594_v36 }
 0x19b   : > { %5488 = vst.msk [vmem:[%s10370_s24 + $0x19] sm:$0x1] %vm4419_vm2, %v4643_v32  ;;  %v4611_v46 = vcombine.high %v4601_v37, %v4601_v37  ;;  %5477 = vst.msk [vmem:[%s10370_s24 + $0x3] sm:$0x1] %vm4419_vm2, %v4601_v37  ;;  %v4718_v47 = vrot.slane %v9223_v26, %v10362_v18  ;;  %v4661_v48 = vcombine.high %v4657_v39, %v4657_v39  ;;  %v10834_v11 = vpop.f32.mrb[8].mxu1 }
 0x19c   : > { %5478 = vst.msk [vmem:[%s10370_s24 + $0x5] sm:$0x1] %vm4419_vm2, %v4609_v9  ;;  %5480 = vst.msk [vmem:[%s10370_s24 + $0x9] sm:$0x1] %vm4419_vm2, %v4594_v36  ;;  %v4725_v49 = vrot.slane %v4711_v14, %v10362_v18  ;;  %v4662_v50 = vcombine.high %v9224_v60, %v9224_v60  ;;  %v4669_v51 = vrot.slane %v9224_v60, %v10362_v18  ;;  %v10844_v19 = vpop.f32.mrb[9].mxu1 }
 0x19d   : > { %5487 = vst.msk [vmem:[%s10370_s24 + $0x17] sm:$0x1] %vm4419_vm2, %v4660_v41  ;;  %5489 = vst.msk [vmem:[%s10370_s24 + $0x1b] sm:$0x1] %vm4419_vm2, %v4657_v39  ;;  %v4612_v52 = vcombine.high %v4608_v44, %v4608_v44  ;;  %v4726_v53 = vcombine.high %v4718_v47, %v4718_v47  ;;  %v4734_v54 = vrot.slane %v4718_v47, %v10362_v18 }
 0x19e   : > { %5490 = vst.msk [vmem:[%s10370_s24 + $0x1d] sm:$0x1] %vm4419_vm2, %v4659_v40  ;;  %5479 = vst.msk [vmem:[%s10370_s24 + $0x7] sm:$0x1] %vm4419_vm2, %v4611_v46  ;;  %v9225_v56 = vadd.f32 %v9059_v38, %v10360_v17  ;;  %v4727_v58 = vcombine.high %v4725_v49, %v4725_v49  ;;  %v4741_v59 = vrot.slane %v4725_v49, %v10362_v18 }
 0x19f   : > { %5481 = vst.msk [vmem:[%s10370_s24 + $0xb] sm:$0x1] %vm4419_vm2, %v4608_v44  ;;  %5482 = vst.msk [vmem:[%s10370_s24 + $0xd] sm:$0x1] %vm4419_vm2, %v4610_v45  ;;  %v4676_v42 = vrot.slane %v4662_v50, %v10362_v18  ;;  %v4677_v61 = vcombine.high %v4669_v51, %v4669_v51  ;;  %v4748_v63 = vrot.slane %v4726_v53, %v10362_v18  ;;  %v10868_v31 = vpop.f32.mrb[10].mxu1 }
 0x1a0   : > { %5491 = vst.msk [vmem:[%s10370_s24 + $0x1f] sm:$0x1] %vm4419_vm2, %v4661_v48  ;;  %5483 = vst.msk [vmem:[%s10370_s24 + $0xf] sm:$0x1] %vm4419_vm2, %v4612_v52  ;;  %v4756_v0 = vcombine.high %v4734_v54, %v4734_v54  ;;  %v4685_v1 = vrot.slane %v4669_v51, %v10362_v18  ;;  %v4809_v2 = vcombine.high %v9225_v56, %v9225_v56  ;;  %v10876_v35 = vpop.f32.mrb[11].mxu1 }
 0x1a1   : > { %5500 = vst.msk [vmem:[%s10370_s24 + $0x51] sm:$0x1] %vm4419_vm2, %v4734_v54  ;;  %v4755_v3 = vrot.slane %v4727_v58, %v10362_v18  ;;  %v4757_v5 = vcombine.high %v4741_v59, %v4741_v59  ;;  %5504 = vst.msk [vmem:[%s10370_s24 + $0x59] sm:$0x1] %vm4419_vm2, %v4741_v59  ;;  %v4678_v55 = vcombine.high %v4676_v42, %v4676_v42 }
 0x1a2   : > { %v4692_v6 = vrot.slane %v4676_v42, %v10362_v18  ;;  %v4758_v4 = vcombine.high %v4748_v63, %v4748_v63  ;;  %5501 = vst.msk [vmem:[%s10370_s24 + $0x53] sm:$0x1] %vm4419_vm2, %v4748_v63  ;;  %5502 = vst.msk [vmem:[%s10370_s24 + $0x55] sm:$0x1] %vm4419_vm2, %v4756_v0  ;;  %v4699_v7 = vrot.slane %v4677_v61, %v10362_v18 }
 0x1a3   : > { %v4707_v8 = vcombine.high %v4685_v1, %v4685_v1  ;;  %5492 = vst.msk [vmem:[%s10370_s24 + $0x41] sm:$0x1] %vm4419_vm2, %v4685_v1  ;;  %v4816_v10 = vrot.slane %v9225_v56, %v10362_v18  ;;  %v4759_v12 = vcombine.high %v4755_v3, %v4755_v3  ;;  %5505 = vst.msk [vmem:[%s10370_s24 + $0x5b] sm:$0x1] %vm4419_vm2, %v4755_v3  ;;  %v10896_v47 = vpop.f32.mrb[12].mxu1 }
 0x1a4   : > { %5506 = vst.msk [vmem:[%s10370_s24 + $0x5d] sm:$0x1] %vm4419_vm2, %v4757_v5  ;;  %v4706_v13 = vrot.slane %v4678_v55, %v10362_v18  ;;  %v4708_v15 = vcombine.high %v4692_v6, %v4692_v6  ;;  %5496 = vst.msk [vmem:[%s10370_s24 + $0x49] sm:$0x1] %vm4419_vm2, %v4692_v6  ;;  %v4823_v16 = vrot.slane %v4809_v2, %v10362_v18  ;;  %v10904_v52 = vpop.f32.mrb[13].mxu1 }
 0x1a5   : > { %5503 = vst.msk [vmem:[%s10370_s24 + $0x57] sm:$0x1] %vm4419_vm2, %v4758_v4  ;;  %v4709_v20 = vcombine.high %v4699_v7, %v4699_v7  ;;  %5493 = vst.msk [vmem:[%s10370_s24 + $0x43] sm:$0x1] %vm4419_vm2, %v4699_v7  ;;  %v4824_v21 = vcombine.high %v4816_v10, %v4816_v10  ;;  %v4832_v22 = vrot.slane %v4816_v10, %v10362_v18 }
 0x1a6   : > { %5494 = vst.msk [vmem:[%s10370_s24 + $0x45] sm:$0x1] %vm4419_vm2, %v4707_v8  ;;  %v9226_v23 = vadd.f32 %v10360_v17, %v2391_v43  ;;  %5507 = vst.msk [vmem:[%s10370_s24 + $0x5f] sm:$0x1] %vm4419_vm2, %v4759_v12  ;;  %v4710_v24 = vcombine.high %v4706_v13, %v4706_v13  ;;  %v4825_v25 = vcombine.high %v4823_v16, %v4823_v16 }
 0x1a7   : > { %5497 = vst.msk [vmem:[%s10370_s24 + $0x4b] sm:$0x1] %vm4419_vm2, %v4706_v13  ;;  %5498 = vst.msk [vmem:[%s10370_s24 + $0x4d] sm:$0x1] %vm4419_vm2, %v4708_v15  ;;  %v4839_v26 = vrot.slane %v4823_v16, %v10362_v18  ;;  %v9227_v27 = vadd.f32 %v9062_v57, %v10360_v17  ;;  %v4846_v28 = vrot.slane %v4824_v21, %v10362_v18  ;;  %v10916_v57 = vld [vmem:[%s12018_s2] ss:$0 sm:$0xff] }
 0x1a8   : > { %5495 = vst.msk [vmem:[%s10370_s24 + $0x47] sm:$0x1] %vm4419_vm2, %v4709_v20  ;;  %v4854_v29 = vcombine.high %v4832_v22, %v4832_v22  ;;  %5516 = vst.msk [vmem:[%s10370_s24 + $0x91] sm:$0x1] %vm4419_vm2, %v4832_v22  ;;  %v4760_v30 = vcombine.high %v9226_v23, %v9226_v23  ;;  %v4767_v60 = vrot.slane %v9226_v23, %v10362_v18  ;;  %v10938_v3 = vpop.f32.mrb[14].mxu1 }
 0x1a9   : > { %5499 = vst.msk [vmem:[%s10370_s24 + $0x4f] sm:$0x1] %vm4419_vm2, %v4710_v24  ;;  %v4853_v17 = vrot.slane %v4825_v25, %v10362_v18  ;;  %v4855_v32 = vcombine.high %v4839_v26, %v4839_v26  ;;  %5520 = vst.msk [vmem:[%s10370_s24 + $0x99] sm:$0x1] %vm4419_vm2, %v4839_v26  ;;  %v4907_v33 = vcombine.high %v9227_v27, %v9227_v27  ;;  %v10949_v7 = vpop.f32.mrb[15].mxu1 }
 0x1aa   : > { %v4914_v34 = vrot.slane %v9227_v27, %v10362_v18  ;;  %v4856_v36 = vcombine.high %v4846_v28, %v4846_v28  ;;  %5517 = vst.msk [vmem:[%s10370_s24 + $0x93] sm:$0x1] %vm4419_vm2, %v4846_v28  ;;  %5518 = vst.msk [vmem:[%s10370_s24 + $0x95] sm:$0x1] %vm4419_vm2, %v4854_v29  ;;  %v4774_v37 = vrot.slane %v4760_v30, %v10362_v18 }
 0x1ab   : > { %v4775_v9 = vcombine.high %v4767_v60, %v4767_v60  ;;  %v4783_v38 = vrot.slane %v4767_v60, %v10362_v18  ;;  %v4857_v39 = vcombine.high %v4853_v17, %v4853_v17  ;;  %5521 = vst.msk [vmem:[%s10370_s24 + $0x9b] sm:$0x1] %vm4419_vm2, %v4853_v17  ;;  %5522 = vst.msk [vmem:[%s10370_s24 + $0x9d] sm:$0x1] %vm4419_vm2, %v4855_v32 }
 0x1ac   : > { %v4921_v40 = vrot.slane %v4907_v33, %v10362_v18  ;;  %v4922_v41 = vcombine.high %v4914_v34, %v4914_v34  ;;  %v4930_v14 = vrot.slane %v4914_v34, %v10362_v18  ;;  %5519 = vst.msk [vmem:[%s10370_s24 + $0x97] sm:$0x1] %vm4419_vm2, %v4856_v36  ;;  %v4776_v43 = vcombine.high %v4774_v37, %v4774_v37 }
 0x1ad   : > { %v4790_v44 = vrot.slane %v4774_v37, %v10362_v18  ;;  %v4797_v45 = vrot.slane %v4775_v9, %v10362_v18  ;;  %v4805_v46 = vcombine.high %v4783_v38, %v4783_v38  ;;  %5508 = vst.msk [vmem:[%s10370_s24 + $0x81] sm:$0x1] %vm4419_vm2, %v4783_v38  ;;  %5523 = vst.msk [vmem:[%s10370_s24 + $0x9f] sm:$0x1] %vm4419_vm2, %v4857_v39 }
 0x1ae   : > { %v4923_v48 = vcombine.high %v4921_v40, %v4921_v40  ;;  %v4937_v49 = vrot.slane %v4921_v40, %v10362_v18  ;;  %v4944_v50 = vrot.slane %v4922_v41, %v10362_v18  ;;  %v4952_v51 = vcombine.high %v4930_v14, %v4930_v14  ;;  %5532 = vst.msk [vmem:[%s10370_s24 + $0xd1] sm:$0x1] %vm4419_vm2, %v4930_v14 }
 0x1af   : > { %v4804_v53 = vrot.slane %v4776_v43, %v10362_v18  ;;  %v4806_v54 = vcombine.high %v4790_v44, %v4790_v44  ;;  %v4807_v56 = vcombine.high %v4797_v45, %v4797_v45  ;;  %5509 = vst.msk [vmem:[%s10370_s24 + $0x83] sm:$0x1] %vm4419_vm2, %v4797_v45  ;;  %5510 = vst.msk [vmem:[%s10370_s24 + $0x85] sm:$0x1] %vm4419_vm2, %v4805_v46 }
 0x1b0   : > { %5512 = vst.msk [vmem:[%s10370_s24 + $0x89] sm:$0x1] %vm4419_vm2, %v4790_v44  ;;  %v9228_v58 = vadd.f32 %v10916_v57, %v10814_v62  ;;  %v4951_v59 = vrot.slane %v4923_v48, %v10362_v18  ;;  %v4953_v42 = vcombine.high %v4937_v49, %v4937_v49  ;;  %v4954_v61 = vcombine.high %v4944_v50, %v4944_v50 }
 0x1b1   : > { %5533 = vst.msk [vmem:[%s10370_s24 + $0xd3] sm:$0x1] %vm4419_vm2, %v4944_v50  ;;  %5534 = vst.msk [vmem:[%s10370_s24 + $0xd5] sm:$0x1] %vm4419_vm2, %v4952_v51  ;;  %v9229_v63 = vadd.f32 %v10916_v57, %v10834_v11  ;;  %v4808_v0 = vcombine.high %v4804_v53, %v4804_v53  ;;  %v9230_v2 = vadd.f32 %v10916_v57, %v10844_v19 }
 0x1b2   : > { %5536 = vst.msk [vmem:[%s10370_s24 + $0xd9] sm:$0x1] %vm4419_vm2, %v4937_v49  ;;  %5511 = vst.msk [vmem:[%s10370_s24 + $0x87] sm:$0x1] %vm4419_vm2, %v4807_v56  ;;  %v4858_v62 = vcombine.high %v9228_v58, %v9228_v58  ;;  %v4865_v1 = vrot.slane %v9228_v58, %v10362_v18  ;;  %v4955_v5 = vcombine.high %v4951_v59, %v4951_v59 }
 0x1b3   : > { %5513 = vst.msk [vmem:[%s10370_s24 + $0x8b] sm:$0x1] %vm4419_vm2, %v4804_v53  ;;  %5514 = vst.msk [vmem:[%s10370_s24 + $0x8d] sm:$0x1] %vm4419_vm2, %v4806_v54  ;;  %v5005_v55 = vcombine.high %v9229_v63, %v9229_v63  ;;  %v5012_v6 = vrot.slane %v9229_v63, %v10362_v18  ;;  %v9231_v4 = vadd.f32 %v10916_v57, %v10868_v31 }
 0x1b4   : > { %5535 = vst.msk [vmem:[%s10370_s24 + $0xd7] sm:$0x1] %vm4419_vm2, %v4954_v61  ;;  %5537 = vst.msk [vmem:[%s10370_s24 + $0xdb] sm:$0x1] %vm4419_vm2, %v4951_v59  ;;  %v4872_v8 = vrot.slane %v4858_v62, %v10362_v18  ;;  %v4873_v10 = vcombine.high %v4865_v1, %v4865_v1  ;;  %v4881_v11 = vrot.slane %v4865_v1, %v10362_v18 }
 0x1b5   : > { %5538 = vst.msk [vmem:[%s10370_s24 + $0xdd] sm:$0x1] %vm4419_vm2, %v4953_v42  ;;  %5515 = vst.msk [vmem:[%s10370_s24 + $0x8f] sm:$0x1] %vm4419_vm2, %v4808_v0  ;;  %v4956_v12 = vcombine.high %v9230_v2, %v9230_v2  ;;  %v5019_v13 = vrot.slane %v5005_v55, %v10362_v18  ;;  %v5020_v15 = vcombine.high %v5012_v6, %v5012_v6 }
 0x1b6   : > { %5539 = vst.msk [vmem:[%s10370_s24 + $0xdf] sm:$0x1] %vm4419_vm2, %v4955_v5  ;;  %v5028_v16 = vrot.slane %v5012_v6, %v10362_v18  ;;  %v4963_v19 = vrot.slane %v9230_v2, %v10362_v18  ;;  %v4874_v20 = vcombine.high %v4872_v8, %v4872_v8  ;;  %v4888_v21 = vrot.slane %v4872_v8, %v10362_v18 }
 0x1b7   : > { %v4895_v22 = vrot.slane %v4873_v10, %v10362_v18  ;;  %v4903_v23 = vcombine.high %v4881_v11, %v4881_v11  ;;  %5524 = vst.msk [vmem:[%s10370_s24 + $0xc1] sm:$0x1] %vm4419_vm2, %v4881_v11  ;;  %v5021_v24 = vcombine.high %v5019_v13, %v5019_v13  ;;  %v5035_v25 = vrot.slane %v5019_v13, %v10362_v18 }
 0x1b8   : > { %v5042_v26 = vrot.slane %v5020_v15, %v10362_v18  ;;  %v5050_v27 = vcombine.high %v5028_v16, %v5028_v16  ;;  %5548 = vst.msk [vmem:[%s10370_s24 + $0x111] sm:$0x1] %vm4419_vm2, %v5028_v16  ;;  %v4902_v28 = vrot.slane %v4874_v20, %v10362_v18  ;;  %v4904_v29 = vcombine.high %v4888_v21, %v4888_v21 }
 0x1b9   : > { %v4905_v30 = vcombine.high %v4895_v22, %v4895_v22  ;;  %5525 = vst.msk [vmem:[%s10370_s24 + $0xc3] sm:$0x1] %vm4419_vm2, %v4895_v22  ;;  %5526 = vst.msk [vmem:[%s10370_s24 + $0xc5] sm:$0x1] %vm4419_vm2, %v4903_v23  ;;  %v4970_v60 = vrot.slane %v4956_v12, %v10362_v18  ;;  %v5049_v31 = vrot.slane %v5021_v24, %v10362_v18 }
 0x1ba   : > { %5528 = vst.msk [vmem:[%s10370_s24 + $0xc9] sm:$0x1] %vm4419_vm2, %v4888_v21  ;;  %v5051_v17 = vcombine.high %v5035_v25, %v5035_v25  ;;  %v5052_v32 = vcombine.high %v5042_v26, %v5042_v26  ;;  %5549 = vst.msk [vmem:[%s10370_s24 + $0x113] sm:$0x1] %vm4419_vm2, %v5042_v26  ;;  %v4971_v33 = vcombine.high %v4963_v19, %v4963_v19 }
 0x1bb   : > { %5550 = vst.msk [vmem:[%s10370_s24 + $0x115] sm:$0x1] %vm4419_vm2, %v5050_v27  ;;  %5552 = vst.msk [vmem:[%s10370_s24 + $0x119] sm:$0x1] %vm4419_vm2, %v5035_v25  ;;  %v4906_v34 = vcombine.high %v4902_v28, %v4902_v28  ;;  %v4972_v36 = vcombine.high %v4970_v60, %v4970_v60  ;;  %v4979_v37 = vrot.slane %v4963_v19, %v10362_v18 }
 0x1bc   : > { %5527 = vst.msk [vmem:[%s10370_s24 + $0xc7] sm:$0x1] %vm4419_vm2, %v4905_v30  ;;  %5529 = vst.msk [vmem:[%s10370_s24 + $0xcb] sm:$0x1] %vm4419_vm2, %v4902_v28  ;;  %v4986_v9 = vrot.slane %v4970_v60, %v10362_v18  ;;  %v5053_v38 = vcombine.high %v5049_v31, %v5049_v31  ;;  %v4993_v39 = vrot.slane %v4971_v33, %v10362_v18 }
 0x1bd   : > { %5530 = vst.msk [vmem:[%s10370_s24 + $0xcd] sm:$0x1] %vm4419_vm2, %v4904_v29  ;;  %5551 = vst.msk [vmem:[%s10370_s24 + $0x117] sm:$0x1] %vm4419_vm2, %v5052_v32  ;;  %v5103_v40 = vcombine.high %v9231_v4, %v9231_v4  ;;  %v5110_v41 = vrot.slane %v9231_v4, %v10362_v18  ;;  %v5000_v14 = vrot.slane %v4972_v36, %v10362_v18 }
 0x1be   : > { %5553 = vst.msk [vmem:[%s10370_s24 + $0x11b] sm:$0x1] %vm4419_vm2, %v5049_v31  ;;  %5554 = vst.msk [vmem:[%s10370_s24 + $0x11d] sm:$0x1] %vm4419_vm2, %v5051_v17  ;;  %v5001_v43 = vcombine.high %v4979_v37, %v4979_v37  ;;  %v5002_v44 = vcombine.high %v4986_v9, %v4986_v9  ;;  %v9232_v45 = vadd.f32 %v10916_v57, %v10876_v35 }
 0x1bf   : > { %5531 = vst.msk [vmem:[%s10370_s24 + $0xcf] sm:$0x1] %vm4419_vm2, %v4906_v34  ;;  %5540 = vst.msk [vmem:[%s10370_s24 + $0x101] sm:$0x1] %vm4419_vm2, %v4979_v37  ;;  %v5003_v46 = vcombine.high %v4993_v39, %v4993_v39  ;;  %v5117_v48 = vrot.slane %v5103_v40, %v10362_v18  ;;  %v5118_v49 = vcombine.high %v5110_v41, %v5110_v41 }
 0x1c0   : > { %5544 = vst.msk [vmem:[%s10370_s24 + $0x109] sm:$0x1] %vm4419_vm2, %v4986_v9  ;;  %5555 = vst.msk [vmem:[%s10370_s24 + $0x11f] sm:$0x1] %vm4419_vm2, %v5053_v38  ;;  %v5126_v50 = vrot.slane %v5110_v41, %v10362_v18  ;;  %v5004_v51 = vcombine.high %v5000_v14, %v5000_v14  ;;  %v5054_v35 = vcombine.high %v9232_v45, %v9232_v45 }
 0x1c1   : > { %5541 = vst.msk [vmem:[%s10370_s24 + $0x103] sm:$0x1] %vm4419_vm2, %v4993_v39  ;;  %5542 = vst.msk [vmem:[%s10370_s24 + $0x105] sm:$0x1] %vm4419_vm2, %v5001_v43  ;;  %v5061_v53 = vrot.slane %v9232_v45, %v10362_v18  ;;  %v9233_v54 = vadd.f32 %v10916_v57, %v10896_v47  ;;  %v5119_v56 = vcombine.high %v5117_v48, %v5117_v48 }
 0x1c2   : > { %5545 = vst.msk [vmem:[%s10370_s24 + $0x10b] sm:$0x1] %vm4419_vm2, %v5000_v14  ;;  %5546 = vst.msk [vmem:[%s10370_s24 + $0x10d] sm:$0x1] %vm4419_vm2, %v5002_v44  ;;  %v5133_v58 = vrot.slane %v5117_v48, %v10362_v18  ;;  %v5140_v59 = vrot.slane %v5118_v49, %v10362_v18  ;;  %v5148_v42 = vcombine.high %v5126_v50, %v5126_v50 }
 0x1c3   : > { %5543 = vst.msk [vmem:[%s10370_s24 + $0x107] sm:$0x1] %vm4419_vm2, %v5003_v46  ;;  %5564 = vst.msk [vmem:[%s10370_s24 + $0x151] sm:$0x1] %vm4419_vm2, %v5126_v50  ;;  %v5068_v61 = vrot.slane %v5054_v35, %v10362_v18  ;;  %v5069_v63 = vcombine.high %v5061_v53, %v5061_v53  ;;  %v5077_v47 = vrot.slane %v5061_v53, %v10362_v18 }
 0x1c4   : > { %5547 = vst.msk [vmem:[%s10370_s24 + $0x10f] sm:$0x1] %vm4419_vm2, %v5004_v51  ;;  %v5201_v0 = vcombine.high %v9233_v54, %v9233_v54  ;;  %v5147_v62 = vrot.slane %v5119_v56, %v10362_v18  ;;  %v5149_v1 = vcombine.high %v5133_v58, %v5133_v58  ;;  %v5150_v2 = vcombine.high %v5140_v59, %v5140_v59 }
 0x1c5   : > { %5565 = vst.msk [vmem:[%s10370_s24 + $0x153] sm:$0x1] %vm4419_vm2, %v5140_v59  ;;  %5566 = vst.msk [vmem:[%s10370_s24 + $0x155] sm:$0x1] %vm4419_vm2, %v5148_v42  ;;  %v5208_v5 = vrot.slane %v9233_v54, %v10362_v18  ;;  %v5070_v55 = vcombine.high %v5068_v61, %v5068_v61  ;;  %v5084_v6 = vrot.slane %v5068_v61, %v10362_v18 }
 0x1c6   : > { %5568 = vst.msk [vmem:[%s10370_s24 + $0x159] sm:$0x1] %vm4419_vm2, %v5133_v58  ;;  %v5091_v4 = vrot.slane %v5069_v63, %v10362_v18  ;;  %v5099_v8 = vcombine.high %v5077_v47, %v5077_v47  ;;  %5556 = vst.msk [vmem:[%s10370_s24 + $0x141] sm:$0x1] %vm4419_vm2, %v5077_v47  ;;  %v5151_v10 = vcombine.high %v5147_v62, %v5147_v62 }
 0x1c7   : > { %5567 = vst.msk [vmem:[%s10370_s24 + $0x157] sm:$0x1] %vm4419_vm2, %v5150_v2  ;;  %5569 = vst.msk [vmem:[%s10370_s24 + $0x15b] sm:$0x1] %vm4419_vm2, %v5147_v62  ;;  %v5215_v11 = vrot.slane %v5201_v0, %v10362_v18  ;;  %v5216_v12 = vcombine.high %v5208_v5, %v5208_v5  ;;  %v5224_v13 = vrot.slane %v5208_v5, %v10362_v18 }
 0x1c8   : > { %5570 = vst.msk [vmem:[%s10370_s24 + $0x15d] sm:$0x1] %vm4419_vm2, %v5149_v1  ;;  %v5098_v15 = vrot.slane %v5070_v55, %v10362_v18  ;;  %v5100_v16 = vcombine.high %v5084_v6, %v5084_v6  ;;  %v5101_v19 = vcombine.high %v5091_v4, %v5091_v4  ;;  %5557 = vst.msk [vmem:[%s10370_s24 + $0x143] sm:$0x1] %vm4419_vm2, %v5091_v4 }
 0x1c9   : > { %5558 = vst.msk [vmem:[%s10370_s24 + $0x145] sm:$0x1] %vm4419_vm2, %v5099_v8  ;;  %5560 = vst.msk [vmem:[%s10370_s24 + $0x149] sm:$0x1] %vm4419_vm2, %v5084_v6  ;;  %v9234_v20 = vadd.f32 %v10916_v57, %v10904_v52  ;;  %v5217_v21 = vcombine.high %v5215_v11, %v5215_v11  ;;  %v5231_v22 = vrot.slane %v5215_v11, %v10362_v18 }
 0x1ca   : > { %5571 = vst.msk [vmem:[%s10370_s24 + $0x15f] sm:$0x1] %vm4419_vm2, %v5151_v10  ;;  %v5238_v23 = vrot.slane %v5216_v12, %v10362_v18  ;;  %v5246_v24 = vcombine.high %v5224_v13, %v5224_v13  ;;  %5580 = vst.msk [vmem:[%s10370_s24 + $0x191] sm:$0x1] %vm4419_vm2, %v5224_v13  ;;  %v5102_v25 = vcombine.high %v5098_v15, %v5098_v15  ;;  %v9183_v6 = vpop.f32.mrb[16].mxu0 }
 0x1cb   : > { %5559 = vst.msk [vmem:[%s10370_s24 + $0x147] sm:$0x1] %vm4419_vm2, %v5101_v19  ;;  %5561 = vst.msk [vmem:[%s10370_s24 + $0x14b] sm:$0x1] %vm4419_vm2, %v5098_v15  ;;  %v5152_v52 = vcombine.high %v9234_v20, %v9234_v20  ;;  %v5159_v26 = vrot.slane %v9234_v20, %v10362_v18  ;;  %v9235_v27 = vadd.f32 %v10916_v57, %v10938_v3  ;;  %v9131_v55 = vpop.f32.mrb[16].mxu1  ;;  %v3396_v11 = vpop.f32.mrb[17].mxu0 }
 0x1cc   : > { %5562 = vst.msk [vmem:[%s10370_s24 + $0x14d] sm:$0x1] %vm4419_vm2, %v5100_v16  ;;  %v5245_v28 = vrot.slane %v5217_v21, %v10362_v18  ;;  %v5247_v29 = vcombine.high %v5231_v22, %v5231_v22  ;;  %v5248_v30 = vcombine.high %v5238_v23, %v5238_v23  ;;  %5581 = vst.msk [vmem:[%s10370_s24 + $0x193] sm:$0x1] %vm4419_vm2, %v5238_v23  ;;  %v3000_v10 = vpop.f32.mrb[17].mxu1 }
 0x1cd   : > { %5582 = vst.msk [vmem:[%s10370_s24 + $0x195] sm:$0x1] %vm4419_vm2, %v5246_v24  ;;  %5584 = vst.msk [vmem:[%s10370_s24 + $0x199] sm:$0x1] %vm4419_vm2, %v5231_v22  ;;  %v9236_v60 = vadd.f32 %v10916_v57, %v10949_v7  ;;  %v5166_v31 = vrot.slane %v5152_v52, %v10362_v18  ;;  %v5167_v3 = vcombine.high %v5159_v26, %v5159_v26 }
 0x1ce   : > { %5563 = vst.msk [vmem:[%s10370_s24 + $0x14f] sm:$0x1] %vm4419_vm2, %v5102_v25  ;;  %v5175_v17 = vrot.slane %v5159_v26, %v10362_v18  ;;  %v5299_v32 = vcombine.high %v9235_v27, %v9235_v27  ;;  %v5249_v33 = vcombine.high %v5245_v28, %v5245_v28  ;;  %5583 = vst.msk [vmem:[%s10370_s24 + $0x197] sm:$0x1] %vm4419_vm2, %v5248_v30  ;;  %v11178_v52 = vpop.f32.mrb[18].mxu0 }
 0x1cf   : > { %5585 = vst.msk [vmem:[%s10370_s24 + $0x19b] sm:$0x1] %vm4419_vm2, %v5245_v28  ;;  %5586 = vst.msk [vmem:[%s10370_s24 + $0x19d] sm:$0x1] %vm4419_vm2, %v5247_v29  ;;  %v5306_v34 = vrot.slane %v9235_v27, %v10362_v18  ;;  %v5250_v7 = vcombine.high %v9236_v60, %v9236_v60  ;;  %v5257_v36 = vrot.slane %v9236_v60, %v10362_v18  ;;  %v11176_v25 = vpop.f32.mrb[18].mxu1  ;;  %v11185_v60 = vpop.f32.mrb[19].mxu0 }
 0x1d0   : > { %v5168_v37 = vcombine.high %v5166_v31, %v5166_v31  ;;  %v5182_v9 = vrot.slane %v5166_v31, %v10362_v18  ;;  %v5189_v38 = vrot.slane %v5167_v3, %v10362_v18  ;;  %v5197_v39 = vcombine.high %v5175_v17, %v5175_v17  ;;  %5572 = vst.msk [vmem:[%s10370_s24 + $0x181] sm:$0x1] %vm4419_vm2, %v5175_v17  ;;  %v11183_v30 = vpop.f32.mrb[19].mxu1 }
 0x1d1   : > { %5587 = vst.msk [vmem:[%s10370_s24 + $0x19f] sm:$0x1] %vm4419_vm2, %v5249_v33  ;;  %v5313_v40 = vrot.slane %v5299_v32, %v10362_v18  ;;  %v5314_v41 = vcombine.high %v5306_v34, %v5306_v34  ;;  %v5322_v14 = vrot.slane %v5306_v34, %v10362_v18  ;;  %v5264_v43 = vrot.slane %v5250_v7, %v10362_v18 }
 0x1d2   : > { %v5196_v44 = vrot.slane %v5168_v37, %v10362_v18  ;;  %v5198_v45 = vcombine.high %v5182_v9, %v5182_v9  ;;  %v5199_v46 = vcombine.high %v5189_v38, %v5189_v38  ;;  %5573 = vst.msk [vmem:[%s10370_s24 + $0x183] sm:$0x1] %vm4419_vm2, %v5189_v38  ;;  %5574 = vst.msk [vmem:[%s10370_s24 + $0x185] sm:$0x1] %vm4419_vm2, %v5197_v39 }
 0x1d3   : > { %5576 = vst.msk [vmem:[%s10370_s24 + $0x189] sm:$0x1] %vm4419_vm2, %v5182_v9  ;;  %v5265_v48 = vcombine.high %v5257_v36, %v5257_v36  ;;  %v5315_v49 = vcombine.high %v5313_v40, %v5313_v40  ;;  %v5329_v50 = vrot.slane %v5313_v40, %v10362_v18  ;;  %v5336_v51 = vrot.slane %v5314_v41, %v10362_v18  ;;  %v11197_v40 = vpop.f32.mrb[20].mxu1  ;;  %v11199_v41 = vpop.f32.mrb[20].mxu0 }
 0x1d4   : > { %v5344_v35 = vcombine.high %v5322_v14, %v5322_v14  ;;  %5596 = vst.msk [vmem:[%s10370_s24 + $0x1d1] sm:$0x1] %vm4419_vm2, %v5322_v14  ;;  %v5200_v53 = vcombine.high %v5196_v44, %v5196_v44  ;;  %5575 = vst.msk [vmem:[%s10370_s24 + $0x187] sm:$0x1] %vm4419_vm2, %v5199_v46  ;;  %v5266_v54 = vcombine.high %v5264_v43, %v5264_v43  ;;  %v11208_v46 = vpop.f32.mrb[21].mxu1 }
 0x1d5   : > { %5577 = vst.msk [vmem:[%s10370_s24 + $0x18b] sm:$0x1] %vm4419_vm2, %v5196_v44  ;;  %5578 = vst.msk [vmem:[%s10370_s24 + $0x18d] sm:$0x1] %vm4419_vm2, %v5198_v45  ;;  %v5273_v56 = vrot.slane %v5257_v36, %v10362_v18  ;;  %v5280_v58 = vrot.slane %v5264_v43, %v10362_v18  ;;  %v5343_v59 = vrot.slane %v5315_v49, %v10362_v18 }
 0x1d6   : > { %v5345_v42 = vcombine.high %v5329_v50, %v5329_v50  ;;  %v5346_v61 = vcombine.high %v5336_v51, %v5336_v51  ;;  %5597 = vst.msk [vmem:[%s10370_s24 + $0x1d3] sm:$0x1] %vm4419_vm2, %v5336_v51  ;;  %5598 = vst.msk [vmem:[%s10370_s24 + $0x1d5] sm:$0x1] %vm4419_vm2, %v5344_v35  ;;  %v5287_v63 = vrot.slane %v5265_v48, %v10362_v18  ;;  %v11210_v48 = vpop.f32.mrb[21].mxu0 }
 0x1d7   : > { %5600 = vst.msk [vmem:[%s10370_s24 + $0x1d9] sm:$0x1] %vm4419_vm2, %v5329_v50  ;;  %5579 = vst.msk [vmem:[%s10370_s24 + $0x18f] sm:$0x1] %vm4419_vm2, %v5200_v53  ;;  %v5294_v47 = vrot.slane %v5266_v54, %v10362_v18  ;;  %v5295_v0 = vcombine.high %v5273_v56, %v5273_v56  ;;  %v5296_v62 = vcombine.high %v5280_v58, %v5280_v58 }
 0x1d8   : > { %5588 = vst.msk [vmem:[%s10370_s24 + $0x1c1] sm:$0x1] %vm4419_vm2, %v5273_v56  ;;  %5592 = vst.msk [vmem:[%s10370_s24 + $0x1c9] sm:$0x1] %vm4419_vm2, %v5280_v58  ;;  %v5347_v1 = vcombine.high %v5343_v59, %v5343_v59  ;;  %v5297_v2 = vcombine.high %v5287_v63, %v5287_v63  ;;  %v9237_v4 = vadd.f32 %v10916_v57, %v9131_v55 }
 0x1d9   : > { %5599 = vst.msk [vmem:[%s10370_s24 + $0x1d7] sm:$0x1] %vm4419_vm2, %v5346_v61  ;;  %5601 = vst.msk [vmem:[%s10370_s24 + $0x1db] sm:$0x1] %vm4419_vm2, %v5343_v59  ;;  %v5298_v5 = vcombine.high %v5294_v47, %v5294_v47  ;;  %v9253_v8 = vadd.f32 %v10916_v57, %v9183_v6  ;;  %v9238_v12 = vadd.f32 %v10916_v57, %v3000_v10 }
 0x1da   : > { %5602 = vst.msk [vmem:[%s10370_s24 + $0x1dd] sm:$0x1] %vm4419_vm2, %v5345_v42  ;;  %5589 = vst.msk [vmem:[%s10370_s24 + $0x1c3] sm:$0x1] %vm4419_vm2, %v5287_v63  ;;  %v11165_v13 = vadd.f32 %v10916_v57, %v3396_v11  ;;  %v5669_v15 = vcombine.high %v9237_v4, %v9237_v4  ;;  %v5676_v16 = vrot.slane %v9237_v4, %v10362_v18 }
 0x1db   : > { %5590 = vst.msk [vmem:[%s10370_s24 + $0x1c5] sm:$0x1] %vm4419_vm2, %v5295_v0  ;;  %5593 = vst.msk [vmem:[%s10370_s24 + $0x1cb] sm:$0x1] %vm4419_vm2, %v5294_v47  ;;  %v6726_v19 = vcombine.high %v9253_v8, %v9253_v8  ;;  %v6733_v20 = vrot.slane %v9253_v8, %v10362_v18  ;;  %v5620_v21 = vcombine.high %v9238_v12, %v9238_v12  ;;  %v11240_v47 = vpop.f32.mrb[22].mxu1  ;;  %v11242_v0 = vpop.f32.mrb[22].mxu0 }
 0x1dc   : > { %5594 = vst.msk [vmem:[%s10370_s24 + $0x1cd] sm:$0x1] %vm4419_vm2, %v5296_v62  ;;  %5603 = vst.msk [vmem:[%s10370_s24 + $0x1df] sm:$0x1] %vm4419_vm2, %v5347_v1  ;;  %v5627_v22 = vrot.slane %v9238_v12, %v10362_v18  ;;  %v6677_v23 = vcombine.high %v11165_v13, %v11165_v13  ;;  %v11174_v24 = vrot.slane %v11165_v13, %v10362_v18  ;;  %v11254_v55 = vpop.f32.mrb[23].mxu1  ;;  %v11256_v6 = vpop.f32.mrb[23].mxu0 }
 0x1dd   : > { %5591 = vst.msk [vmem:[%s10370_s24 + $0x1c7] sm:$0x1] %vm4419_vm2, %v5297_v2  ;;  %5595 = vst.msk [vmem:[%s10370_s24 + $0x1cf] sm:$0x1] %vm4419_vm2, %v5298_v5  ;;  %v5683_v26 = vrot.slane %v5669_v15, %v10362_v18  ;;  %v5684_v27 = vcombine.high %v5676_v16, %v5676_v16  ;;  %v5692_v28 = vrot.slane %v5676_v16, %v10362_v18 }
 0x1de   : > { %v6740_v29 = vrot.slane %v6726_v19, %v10362_v18  ;;  %v6741_v31 = vcombine.high %v6733_v20, %v6733_v20  ;;  %v6749_v3 = vrot.slane %v6733_v20, %v10362_v18  ;;  %v5634_v17 = vrot.slane %v5620_v21, %v10362_v18 }
 0x1df   : > { %v5635_v32 = vcombine.high %v5627_v22, %v5627_v22  ;;  %v5685_v33 = vcombine.high %v5683_v26, %v5683_v26  ;;  %v5699_v34 = vrot.slane %v5683_v26, %v10362_v18  ;;  %v5706_v7 = vrot.slane %v5684_v27, %v10362_v18  ;;  %8267 = vst.msk [vmem:[%s10370_s24 + $0x30] sm:$0x1] %vm4419_vm2, %v5692_v28 }
 0x1e0   : > { %v5714_v36 = vcombine.high %v5692_v28, %v5692_v28  ;;  %v6742_v37 = vcombine.high %v6740_v29, %v6740_v29  ;;  %v6756_v9 = vrot.slane %v6740_v29, %v10362_v18  ;;  %v6763_v38 = vrot.slane %v6741_v31, %v10362_v18  ;;  %8395 = vst.msk [vmem:[%s10370_s24 + $0x31] sm:$0x1] %vm4419_vm2, %v6749_v3 }
 0x1e1   : > { %v6771_v39 = vcombine.high %v6749_v3, %v6749_v3  ;;  %v5713_v14 = vrot.slane %v5685_v33, %v10362_v18  ;;  %v5715_v43 = vcombine.high %v5699_v34, %v5699_v34  ;;  %v5716_v44 = vcombine.high %v5706_v7, %v5706_v7  ;;  %8268 = vst.msk [vmem:[%s10370_s24 + $0x32] sm:$0x1] %vm4419_vm2, %v5706_v7 }
 0x1e2   : > { %8269 = vst.msk [vmem:[%s10370_s24 + $0x34] sm:$0x1] %vm4419_vm2, %v5714_v36  ;;  %8271 = vst.msk [vmem:[%s10370_s24 + $0x38] sm:$0x1] %vm4419_vm2, %v5699_v34  ;;  %v5636_v45 = vcombine.high %v5634_v17, %v5634_v17  ;;  %v6770_v49 = vrot.slane %v6742_v37, %v10362_v18  ;;  %v6772_v50 = vcombine.high %v6756_v9, %v6756_v9 }
 0x1e3   : > { %v6773_v51 = vcombine.high %v6763_v38, %v6763_v38  ;;  %8396 = vst.msk [vmem:[%s10370_s24 + $0x33] sm:$0x1] %vm4419_vm2, %v6763_v38  ;;  %8397 = vst.msk [vmem:[%s10370_s24 + $0x35] sm:$0x1] %vm4419_vm2, %v6771_v39  ;;  %v5643_v35 = vrot.slane %v5627_v22, %v10362_v18  ;;  %v5717_v53 = vcombine.high %v5713_v14, %v5713_v14 }
 0x1e4   : > { %8399 = vst.msk [vmem:[%s10370_s24 + $0x39] sm:$0x1] %vm4419_vm2, %v6756_v9  ;;  %8270 = vst.msk [vmem:[%s10370_s24 + $0x36] sm:$0x1] %vm4419_vm2, %v5716_v44  ;;  %v5650_v54 = vrot.slane %v5634_v17, %v10362_v18  ;;  %v5657_v56 = vrot.slane %v5635_v32, %v10362_v18  ;;  %v5664_v58 = vrot.slane %v5636_v45, %v10362_v18 }
 0x1e5   : > { %8272 = vst.msk [vmem:[%s10370_s24 + $0x3a] sm:$0x1] %vm4419_vm2, %v5713_v14  ;;  %8273 = vst.msk [vmem:[%s10370_s24 + $0x3c] sm:$0x1] %vm4419_vm2, %v5715_v43  ;;  %v6774_v59 = vcombine.high %v6770_v49, %v6770_v49  ;;  %v5665_v42 = vcombine.high %v5643_v35, %v5643_v35  ;;  %v6691_v61 = vrot.slane %v6677_v23, %v10362_v18  ;;  %v11287_v23 = vpop.f32.mrb[24].mxu1 }
 0x1e6   : > { %8398 = vst.msk [vmem:[%s10370_s24 + $0x37] sm:$0x1] %vm4419_vm2, %v6773_v51  ;;  %8400 = vst.msk [vmem:[%s10370_s24 + $0x3b] sm:$0x1] %vm4419_vm2, %v6770_v49  ;;  %v6692_v63 = vcombine.high %v11174_v24, %v11174_v24  ;;  %v5666_v62 = vcombine.high %v5650_v54, %v5650_v54  ;;  %v5667_v1 = vcombine.high %v5657_v56, %v5657_v56  ;;  %v11295_v28 = vpop.f32.mrb[25].mxu1 }
 0x1e7   : > { %8401 = vst.msk [vmem:[%s10370_s24 + $0x3d] sm:$0x1] %vm4419_vm2, %v6772_v50  ;;  %8259 = vst.msk [vmem:[%s10370_s24 + $0x20] sm:$0x1] %vm4419_vm2, %v5643_v35  ;;  %v5668_v2 = vcombine.high %v5664_v58, %v5664_v58  ;;  %v6700_v5 = vrot.slane %v11174_v24, %v10362_v18  ;;  %v6693_v4 = vcombine.high %v6691_v61, %v6691_v61  ;;  %v11289_v24 = vpop.f32.mrb[24].mxu0  ;;  %v11316_v38 = vpop.f32.mrb[26].mxu1 }
 0x1e8   : > { %8274 = vst.msk [vmem:[%s10370_s24 + $0x3e] sm:$0x1] %vm4419_vm2, %v5717_v53  ;;  %8260 = vst.msk [vmem:[%s10370_s24 + $0x22] sm:$0x1] %vm4419_vm2, %v5657_v56  ;;  %v6707_v8 = vrot.slane %v6691_v61, %v10362_v18  ;;  %v6714_v10 = vrot.slane %v6692_v63, %v10362_v18  ;;  %v9239_v11 = vadd.f32 %v10916_v57, %v11176_v25  ;;  %v11297_v29 = vpop.f32.mrb[25].mxu0  ;;  %v11324_v49 = vpop.f32.mrb[27].mxu1 }
 0x1e9   : > { %8263 = vst.msk [vmem:[%s10370_s24 + $0x28] sm:$0x1] %vm4419_vm2, %v5650_v54  ;;  %8264 = vst.msk [vmem:[%s10370_s24 + $0x2a] sm:$0x1] %vm4419_vm2, %v5664_v58  ;;  %v6722_v12 = vcombine.high %v6700_v5, %v6700_v5  ;;  %v9255_v13 = vadd.f32 %v10916_v57, %v11178_v52  ;;  %v9240_v15 = vadd.f32 %v10916_v57, %v11183_v30  ;;  %v11318_v39 = vpop.f32.mrb[26].mxu0 }
 0x1ea   : > { %8402 = vst.msk [vmem:[%s10370_s24 + $0x3f] sm:$0x1] %vm4419_vm2, %v6774_v59  ;;  %8261 = vst.msk [vmem:[%s10370_s24 + $0x24] sm:$0x1] %vm4419_vm2, %v5665_v42  ;;  %v11280_v16 = vadd.f32 %v10916_v57, %v11185_v60  ;;  %v6721_v19 = vrot.slane %v6693_v4, %v10362_v18  ;;  %v6723_v20 = vcombine.high %v6707_v8, %v6707_v8  ;;  %v11326_v50 = vpop.f32.mrb[27].mxu0 }
 0x1eb   : > { %8262 = vst.msk [vmem:[%s10370_s24 + $0x26] sm:$0x1] %vm4419_vm2, %v5667_v1  ;;  %8265 = vst.msk [vmem:[%s10370_s24 + $0x2c] sm:$0x1] %vm4419_vm2, %v5666_v62  ;;  %v6724_v21 = vcombine.high %v6714_v10, %v6714_v10  ;;  %v5767_v22 = vcombine.high %v9239_v11, %v9239_v11  ;;  %v5774_v25 = vrot.slane %v9239_v11, %v10362_v18 }
 0x1ec   : > { %8266 = vst.msk [vmem:[%s10370_s24 + $0x2e] sm:$0x1] %vm4419_vm2, %v5668_v2  ;;  %8387 = vst.msk [vmem:[%s10370_s24 + $0x21] sm:$0x1] %vm4419_vm2, %v6700_v5  ;;  %v6824_v52 = vcombine.high %v9255_v13, %v9255_v13  ;;  %v6831_v26 = vrot.slane %v9255_v13, %v10362_v18  ;;  %v5718_v27 = vcombine.high %v9240_v15, %v9240_v15  ;;  %v11350_v2 = vpop.f32.mrb[28].mxu1  ;;  %v11352_v5 = vpop.f32.mrb[28].mxu0 }
 0x1ed   : > { %8388 = vst.msk [vmem:[%s10370_s24 + $0x23] sm:$0x1] %vm4419_vm2, %v6714_v10  ;;  %8391 = vst.msk [vmem:[%s10370_s24 + $0x29] sm:$0x1] %vm4419_vm2, %v6707_v8  ;;  %v6725_v30 = vcombine.high %v6721_v19, %v6721_v19  ;;  %v5781_v60 = vrot.slane %v5767_v22, %v10362_v18  ;;  %v5725_v31 = vrot.slane %v9240_v15, %v10362_v18  ;;  %v11366_v13 = vpop.f32.mrb[29].mxu0 }
 0x1ee   : > { %8389 = vst.msk [vmem:[%s10370_s24 + $0x25] sm:$0x1] %vm4419_vm2, %v6722_v12  ;;  %8390 = vst.msk [vmem:[%s10370_s24 + $0x27] sm:$0x1] %vm4419_vm2, %v6724_v21  ;;  %v6775_v3 = vcombine.high %v11280_v16, %v11280_v16  ;;  %v5782_v17 = vcombine.high %v5774_v25, %v5774_v25  ;;  %v5790_v32 = vrot.slane %v5774_v25, %v10362_v18  ;;  %v11364_v12 = vpop.f32.mrb[29].mxu1 }
 0x1ef   : > { %8392 = vst.msk [vmem:[%s10370_s24 + $0x2b] sm:$0x1] %vm4419_vm2, %v6721_v19  ;;  %8393 = vst.msk [vmem:[%s10370_s24 + $0x2d] sm:$0x1] %vm4419_vm2, %v6723_v20  ;;  %v6838_v33 = vrot.slane %v6824_v52, %v10362_v18  ;;  %v6839_v34 = vcombine.high %v6831_v26, %v6831_v26  ;;  %v5783_v7 = vcombine.high %v5781_v60, %v5781_v60 }
 0x1f0   : > { %8394 = vst.msk [vmem:[%s10370_s24 + $0x2f] sm:$0x1] %vm4419_vm2, %v6725_v30  ;;  %v5797_v36 = vrot.slane %v5781_v60, %v10362_v18  ;;  %v6847_v37 = vrot.slane %v6831_v26, %v10362_v18  ;;  %v5732_v9 = vrot.slane %v5718_v27, %v10362_v18  ;;  %v5804_v14 = vrot.slane %v5782_v17, %v10362_v18  ;;  %v11390_v60 = vpop.f32.mrb[30].mxu1 }
 0x1f1   : > { %v5812_v43 = vcombine.high %v5790_v32, %v5790_v32  ;;  %8283 = vst.msk [vmem:[%s10370_s24 + $0x70] sm:$0x1] %vm4419_vm2, %v5790_v32  ;;  %v6840_v44 = vcombine.high %v6838_v33, %v6838_v33  ;;  %v6854_v45 = vrot.slane %v6838_v33, %v10362_v18  ;;  %v5811_v51 = vrot.slane %v5783_v7, %v10362_v18 }
 0x1f2   : > { %v5813_v35 = vcombine.high %v5797_v36, %v5797_v36  ;;  %8287 = vst.msk [vmem:[%s10370_s24 + $0x78] sm:$0x1] %vm4419_vm2, %v5797_v36  ;;  %v6861_v53 = vrot.slane %v6839_v34, %v10362_v18  ;;  %v6869_v54 = vcombine.high %v6847_v37, %v6847_v37  ;;  %8411 = vst.msk [vmem:[%s10370_s24 + $0x71] sm:$0x1] %vm4419_vm2, %v6847_v37  ;;  %v11404_v34 = vpop.f32.mrb[31].mxu1 }
 0x1f3   : > { %v5814_v56 = vcombine.high %v5804_v14, %v5804_v14  ;;  %8284 = vst.msk [vmem:[%s10370_s24 + $0x72] sm:$0x1] %vm4419_vm2, %v5804_v14  ;;  %8285 = vst.msk [vmem:[%s10370_s24 + $0x74] sm:$0x1] %vm4419_vm2, %v5812_v43  ;;  %v6868_v58 = vrot.slane %v6840_v44, %v10362_v18  ;;  %v6870_v59 = vcombine.high %v6854_v45, %v6854_v45 }
 0x1f4   : > { %8415 = vst.msk [vmem:[%s10370_s24 + $0x79] sm:$0x1] %vm4419_vm2, %v6854_v45  ;;  %v5733_v42 = vcombine.high %v5725_v31, %v5725_v31  ;;  %v5815_v61 = vcombine.high %v5811_v51, %v5811_v51  ;;  %8288 = vst.msk [vmem:[%s10370_s24 + $0x7a] sm:$0x1] %vm4419_vm2, %v5811_v51  ;;  %v6871_v63 = vcombine.high %v6861_v53, %v6861_v53 }
 0x1f5   : > { %8289 = vst.msk [vmem:[%s10370_s24 + $0x7c] sm:$0x1] %vm4419_vm2, %v5813_v35  ;;  %8412 = vst.msk [vmem:[%s10370_s24 + $0x73] sm:$0x1] %vm4419_vm2, %v6861_v53  ;;  %v5734_v62 = vcombine.high %v5732_v9, %v5732_v9  ;;  %v5741_v1 = vrot.slane %v5725_v31, %v10362_v18  ;;  %v6872_v4 = vcombine.high %v6868_v58, %v6868_v58  ;;  %v11392_v31 = vpop.f32.mrb[30].mxu0 }
 0x1f6   : > { %8413 = vst.msk [vmem:[%s10370_s24 + $0x75] sm:$0x1] %vm4419_vm2, %v6869_v54  ;;  %8286 = vst.msk [vmem:[%s10370_s24 + $0x76] sm:$0x1] %vm4419_vm2, %v5814_v56  ;;  %v5748_v8 = vrot.slane %v5732_v9, %v10362_v18  ;;  %v5755_v10 = vrot.slane %v5733_v42, %v10362_v18  ;;  %v6782_v11 = vrot.slane %v11280_v16, %v10362_v18  ;;  %v11406_v7 = vpop.f32.mrb[31].mxu0 }
 0x1f7   : > { %8416 = vst.msk [vmem:[%s10370_s24 + $0x7b] sm:$0x1] %vm4419_vm2, %v6868_v58  ;;  %8417 = vst.msk [vmem:[%s10370_s24 + $0x7d] sm:$0x1] %vm4419_vm2, %v6870_v59  ;;  %v5762_v15 = vrot.slane %v5734_v62, %v10362_v18  ;;  %v5763_v19 = vcombine.high %v5741_v1, %v5741_v1  ;;  %v6789_v20 = vrot.slane %v6775_v3, %v10362_v18 }
 0x1f8   : > { %8290 = vst.msk [vmem:[%s10370_s24 + $0x7e] sm:$0x1] %vm4419_vm2, %v5815_v61  ;;  %8414 = vst.msk [vmem:[%s10370_s24 + $0x77] sm:$0x1] %vm4419_vm2, %v6871_v63  ;;  %v9241_v16 = vadd.f32 %v10916_v57, %v11197_v40  ;;  %v5764_v21 = vcombine.high %v5748_v8, %v5748_v8  ;;  %v5765_v22 = vcombine.high %v5755_v10, %v5755_v10 }
 0x1f9   : > { %8275 = vst.msk [vmem:[%s10370_s24 + $0x60] sm:$0x1] %vm4419_vm2, %v5741_v1  ;;  %8418 = vst.msk [vmem:[%s10370_s24 + $0x7f] sm:$0x1] %vm4419_vm2, %v6872_v4  ;;  %v6790_v25 = vcombine.high %v6782_v11, %v6782_v11  ;;  %v6798_v52 = vrot.slane %v6782_v11, %v10362_v18  ;;  %v5766_v26 = vcombine.high %v5762_v15, %v5762_v15 }
 0x1fa   : > { %8276 = vst.msk [vmem:[%s10370_s24 + $0x62] sm:$0x1] %vm4419_vm2, %v5755_v10  ;;  %8279 = vst.msk [vmem:[%s10370_s24 + $0x68] sm:$0x1] %vm4419_vm2, %v5748_v8  ;;  %v6791_v40 = vcombine.high %v6789_v20, %v6789_v20  ;;  %v6805_v27 = vrot.slane %v6789_v20, %v10362_v18  ;;  %v5865_v30 = vcombine.high %v9241_v16, %v9241_v16 }
 0x1fb   : > { %8277 = vst.msk [vmem:[%s10370_s24 + $0x64] sm:$0x1] %vm4419_vm2, %v5763_v19  ;;  %8280 = vst.msk [vmem:[%s10370_s24 + $0x6a] sm:$0x1] %vm4419_vm2, %v5762_v15  ;;  %v6812_v3 = vrot.slane %v6790_v25, %v10362_v18  ;;  %v6820_v17 = vcombine.high %v6798_v52, %v6798_v52  ;;  %v5872_v32 = vrot.slane %v9241_v16, %v10362_v18 }
 0x1fc   : > { %8278 = vst.msk [vmem:[%s10370_s24 + $0x66] sm:$0x1] %vm4419_vm2, %v5765_v22  ;;  %8281 = vst.msk [vmem:[%s10370_s24 + $0x6c] sm:$0x1] %vm4419_vm2, %v5764_v21  ;;  %v9257_v33 = vadd.f32 %v10916_v57, %v11199_v41  ;;  %v6819_v36 = vrot.slane %v6791_v40, %v10362_v18  ;;  %v6821_v37 = vcombine.high %v6805_v27, %v6805_v27 }
 0x1fd   : > { %8403 = vst.msk [vmem:[%s10370_s24 + $0x61] sm:$0x1] %vm4419_vm2, %v6798_v52  ;;  %8282 = vst.msk [vmem:[%s10370_s24 + $0x6e] sm:$0x1] %vm4419_vm2, %v5766_v26  ;;  %v5879_v9 = vrot.slane %v5865_v30, %v10362_v18  ;;  %v9242_v14 = vadd.f32 %v10916_v57, %v11208_v46  ;;  %v6822_v41 = vcombine.high %v6812_v3, %v6812_v3 }
 0x1fe   : > { %8407 = vst.msk [vmem:[%s10370_s24 + $0x69] sm:$0x1] %vm4419_vm2, %v6805_v27  ;;  %8404 = vst.msk [vmem:[%s10370_s24 + $0x63] sm:$0x1] %vm4419_vm2, %v6812_v3  ;;  %v5880_v43 = vcombine.high %v5872_v32, %v5872_v32  ;;  %v5888_v44 = vrot.slane %v5872_v32, %v10362_v18  ;;  %v6922_v45 = vcombine.high %v9257_v33, %v9257_v33 }
 0x1ff   : > { %8405 = vst.msk [vmem:[%s10370_s24 + $0x65] sm:$0x1] %vm4419_vm2, %v6820_v17  ;;  %v6823_v51 = vcombine.high %v6819_v36, %v6819_v36  ;;  %8408 = vst.msk [vmem:[%s10370_s24 + $0x6b] sm:$0x1] %vm4419_vm2, %v6819_v36  ;;  %v5881_v35 = vcombine.high %v5879_v9, %v5879_v9  ;;  %v5895_v46 = vrot.slane %v5879_v9, %v10362_v18 }
 0x200   : > { %8409 = vst.msk [vmem:[%s10370_s24 + $0x6d] sm:$0x1] %vm4419_vm2, %v6821_v37  ;;  %v6929_v53 = vrot.slane %v9257_v33, %v10362_v18  ;;  %8406 = vst.msk [vmem:[%s10370_s24 + $0x67] sm:$0x1] %vm4419_vm2, %v6822_v41  ;;  %v5902_v54 = vrot.slane %v5880_v43, %v10362_v18  ;;  %v5910_v56 = vcombine.high %v5888_v44, %v5888_v44 }
 0x201   : > { %8299 = vst.msk [vmem:[%s10370_s24 + $0xb0] sm:$0x1] %vm4419_vm2, %v5888_v44  ;;  %v6936_v58 = vrot.slane %v6922_v45, %v10362_v18  ;;  %v5816_v59 = vcombine.high %v9242_v14, %v9242_v14  ;;  %8410 = vst.msk [vmem:[%s10370_s24 + $0x6f] sm:$0x1] %vm4419_vm2, %v6823_v51  ;;  %v5909_v42 = vrot.slane %v5881_v35, %v10362_v18 }
 0x202   : > { %v5911_v61 = vcombine.high %v5895_v46, %v5895_v46  ;;  %8303 = vst.msk [vmem:[%s10370_s24 + $0xb8] sm:$0x1] %vm4419_vm2, %v5895_v46  ;;  %v6937_v63 = vcombine.high %v6929_v53, %v6929_v53  ;;  %v6945_v62 = vrot.slane %v6929_v53, %v10362_v18  ;;  %v5912_v1 = vcombine.high %v5902_v54, %v5902_v54 }
 0x203   : > { %8300 = vst.msk [vmem:[%s10370_s24 + $0xb2] sm:$0x1] %vm4419_vm2, %v5902_v54  ;;  %8301 = vst.msk [vmem:[%s10370_s24 + $0xb4] sm:$0x1] %vm4419_vm2, %v5910_v56  ;;  %v6938_v4 = vcombine.high %v6936_v58, %v6936_v58  ;;  %v6952_v8 = vrot.slane %v6936_v58, %v10362_v18  ;;  %v5823_v10 = vrot.slane %v9242_v14, %v10362_v18 }
 0x204   : > { %v5913_v11 = vcombine.high %v5909_v42, %v5909_v42  ;;  %8304 = vst.msk [vmem:[%s10370_s24 + $0xba] sm:$0x1] %vm4419_vm2, %v5909_v42  ;;  %8305 = vst.msk [vmem:[%s10370_s24 + $0xbc] sm:$0x1] %vm4419_vm2, %v5911_v61  ;;  %v6959_v15 = vrot.slane %v6937_v63, %v10362_v18  ;;  %v6967_v19 = vcombine.high %v6945_v62, %v6945_v62 }
 0x205   : > { %8427 = vst.msk [vmem:[%s10370_s24 + $0xb1] sm:$0x1] %vm4419_vm2, %v6945_v62  ;;  %v5830_v20 = vrot.slane %v5816_v59, %v10362_v18  ;;  %8302 = vst.msk [vmem:[%s10370_s24 + $0xb6] sm:$0x1] %vm4419_vm2, %v5912_v1  ;;  %v6966_v16 = vrot.slane %v6938_v4, %v10362_v18  ;;  %v6968_v21 = vcombine.high %v6952_v8, %v6952_v8 }
 0x206   : > { %8431 = vst.msk [vmem:[%s10370_s24 + $0xb9] sm:$0x1] %vm4419_vm2, %v6952_v8  ;;  %v5831_v22 = vcombine.high %v5823_v10, %v5823_v10  ;;  %v5839_v25 = vrot.slane %v5823_v10, %v10362_v18  ;;  %8306 = vst.msk [vmem:[%s10370_s24 + $0xbe] sm:$0x1] %vm4419_vm2, %v5913_v11  ;;  %v6969_v52 = vcombine.high %v6959_v15, %v6959_v15 }
 0x207   : > { %8428 = vst.msk [vmem:[%s10370_s24 + $0xb3] sm:$0x1] %vm4419_vm2, %v6959_v15  ;;  %8429 = vst.msk [vmem:[%s10370_s24 + $0xb5] sm:$0x1] %vm4419_vm2, %v6967_v19  ;;  %v5832_v26 = vcombine.high %v5830_v20, %v5830_v20  ;;  %v5846_v40 = vrot.slane %v5830_v20, %v10362_v18  ;;  %v9258_v27 = vadd.f32 %v10916_v57, %v11210_v48 }
 0x208   : > { %v6970_v30 = vcombine.high %v6966_v16, %v6966_v16  ;;  %8432 = vst.msk [vmem:[%s10370_s24 + $0xbb] sm:$0x1] %vm4419_vm2, %v6966_v16  ;;  %8433 = vst.msk [vmem:[%s10370_s24 + $0xbd] sm:$0x1] %vm4419_vm2, %v6968_v21  ;;  %v5853_v3 = vrot.slane %v5831_v22, %v10362_v18  ;;  %v5861_v17 = vcombine.high %v5839_v25, %v5839_v25  ;;  %v11538_v22 = vld [vmem:[%s12018_s2] ss:$0 sm:$0xff] }
 0x209   : > { %8291 = vst.msk [vmem:[%s10370_s24 + $0xa0] sm:$0x1] %vm4419_vm2, %v5839_v25  ;;  %v9243_v32 = vadd.f32 %v10916_v57, %v11240_v47  ;;  %8430 = vst.msk [vmem:[%s10370_s24 + $0xb7] sm:$0x1] %vm4419_vm2, %v6969_v52  ;;  %v5860_v48 = vrot.slane %v5832_v26, %v10362_v18  ;;  %v5862_v33 = vcombine.high %v5846_v40, %v5846_v40 }
 0x20a   : > { %8295 = vst.msk [vmem:[%s10370_s24 + $0xa8] sm:$0x1] %vm4419_vm2, %v5846_v40  ;;  %v6873_v36 = vcombine.high %v9258_v27, %v9258_v27  ;;  %v6880_v37 = vrot.slane %v9258_v27, %v10362_v18  ;;  %8434 = vst.msk [vmem:[%s10370_s24 + $0xbf] sm:$0x1] %vm4419_vm2, %v6970_v30  ;;  %v5863_v9 = vcombine.high %v5853_v3, %v5853_v3 }
 0x20b   : > { %8292 = vst.msk [vmem:[%s10370_s24 + $0xa2] sm:$0x1] %vm4419_vm2, %v5853_v3  ;;  %8293 = vst.msk [vmem:[%s10370_s24 + $0xa4] sm:$0x1] %vm4419_vm2, %v5861_v17  ;;  %v5963_v47 = vcombine.high %v9243_v32, %v9243_v32  ;;  %v5970_v14 = vrot.slane %v9243_v32, %v10362_v18  ;;  %v9259_v41 = vadd.f32 %v10916_v57, %v11242_v0 }
 0x20c   : > { %v5864_v43 = vcombine.high %v5860_v48, %v5860_v48  ;;  %8296 = vst.msk [vmem:[%s10370_s24 + $0xaa] sm:$0x1] %vm4419_vm2, %v5860_v48  ;;  %8297 = vst.msk [vmem:[%s10370_s24 + $0xac] sm:$0x1] %vm4419_vm2, %v5862_v33  ;;  %v6887_v44 = vrot.slane %v6873_v36, %v10362_v18  ;;  %v6888_v45 = vcombine.high %v6880_v37, %v6880_v37 }
 0x20d   : > { %v6896_v51 = vrot.slane %v6880_v37, %v10362_v18  ;;  %8294 = vst.msk [vmem:[%s10370_s24 + $0xa6] sm:$0x1] %vm4419_vm2, %v5863_v9  ;;  %v5977_v35 = vrot.slane %v5963_v47, %v10362_v18  ;;  %v5978_v46 = vcombine.high %v5970_v14, %v5970_v14  ;;  %v5986_v53 = vrot.slane %v5970_v14, %v10362_v18 }
 0x20e   : > { %v7020_v57 = vcombine.high %v9259_v41, %v9259_v41  ;;  %8298 = vst.msk [vmem:[%s10370_s24 + $0xae] sm:$0x1] %vm4419_vm2, %v5864_v43  ;;  %v6889_v0 = vcombine.high %v6887_v44, %v6887_v44  ;;  %v6903_v54 = vrot.slane %v6887_v44, %v10362_v18  ;;  %v6910_v56 = vrot.slane %v6888_v45, %v10362_v18 }
 0x20f   : > { %v6918_v58 = vcombine.high %v6896_v51, %v6896_v51  ;;  %8419 = vst.msk [vmem:[%s10370_s24 + $0xa1] sm:$0x1] %vm4419_vm2, %v6896_v51  ;;  %v5979_v59 = vcombine.high %v5977_v35, %v5977_v35  ;;  %v5993_v42 = vrot.slane %v5977_v35, %v10362_v18  ;;  %v6000_v61 = vrot.slane %v5978_v46, %v10362_v18 }
 0x210   : > { %v6008_v63 = vcombine.high %v5986_v53, %v5986_v53  ;;  %8315 = vst.msk [vmem:[%s10370_s24 + $0xf0] sm:$0x1] %vm4419_vm2, %v5986_v53  ;;  %v6917_v62 = vrot.slane %v6889_v0, %v10362_v18  ;;  %v6919_v1 = vcombine.high %v6903_v54, %v6903_v54  ;;  %v6920_v4 = vcombine.high %v6910_v56, %v6910_v56 }
 0x211   : > { %8420 = vst.msk [vmem:[%s10370_s24 + $0xa3] sm:$0x1] %vm4419_vm2, %v6910_v56  ;;  %8421 = vst.msk [vmem:[%s10370_s24 + $0xa5] sm:$0x1] %vm4419_vm2, %v6918_v58  ;;  %v7027_v8 = vrot.slane %v9259_v41, %v10362_v18  ;;  %v6007_v10 = vrot.slane %v5979_v59, %v10362_v18  ;;  %v6009_v11 = vcombine.high %v5993_v42, %v5993_v42 }
 0x212   : > { %8423 = vst.msk [vmem:[%s10370_s24 + $0xa9] sm:$0x1] %vm4419_vm2, %v6903_v54  ;;  %v6010_v15 = vcombine.high %v6000_v61, %v6000_v61  ;;  %8316 = vst.msk [vmem:[%s10370_s24 + $0xf2] sm:$0x1] %vm4419_vm2, %v6000_v61  ;;  %v7034_v19 = vrot.slane %v7020_v57, %v10362_v18  ;;  %v6921_v20 = vcombine.high %v6917_v62, %v6917_v62 }
 0x213   : > { %8317 = vst.msk [vmem:[%s10370_s24 + $0xf4] sm:$0x1] %vm4419_vm2, %v6008_v63  ;;  %8319 = vst.msk [vmem:[%s10370_s24 + $0xf8] sm:$0x1] %vm4419_vm2, %v5993_v42  ;;  %v7035_v16 = vcombine.high %v7027_v8, %v7027_v8  ;;  %v7043_v21 = vrot.slane %v7027_v8, %v10362_v18  ;;  %v9244_v25 = vadd.f32 %v11538_v22, %v11254_v55 }
 0x214   : > { %8422 = vst.msk [vmem:[%s10370_s24 + $0xa7] sm:$0x1] %vm4419_vm2, %v6920_v4  ;;  %8424 = vst.msk [vmem:[%s10370_s24 + $0xab] sm:$0x1] %vm4419_vm2, %v6917_v62  ;;  %v6011_v52 = vcombine.high %v6007_v10, %v6007_v10  ;;  %v7036_v26 = vcombine.high %v7034_v19, %v7034_v19  ;;  %v7050_v40 = vrot.slane %v7034_v19, %v10362_v18 }
 0x215   : > { %8425 = vst.msk [vmem:[%s10370_s24 + $0xad] sm:$0x1] %vm4419_vm2, %v6919_v1  ;;  %8318 = vst.msk [vmem:[%s10370_s24 + $0xf6] sm:$0x1] %vm4419_vm2, %v6010_v15  ;;  %v9260_v27 = vadd.f32 %v11538_v22, %v11256_v6  ;;  %v7057_v55 = vrot.slane %v7035_v16, %v10362_v18  ;;  %v7065_v30 = vcombine.high %v7043_v21, %v7043_v21 }
 0x216   : > { %8320 = vst.msk [vmem:[%s10370_s24 + $0xfa] sm:$0x1] %vm4419_vm2, %v6007_v10  ;;  %8321 = vst.msk [vmem:[%s10370_s24 + $0xfc] sm:$0x1] %vm4419_vm2, %v6009_v11  ;;  %v5914_v3 = vcombine.high %v9244_v25, %v9244_v25  ;;  %v5921_v17 = vrot.slane %v9244_v25, %v10362_v18  ;;  %v7064_v32 = vrot.slane %v7036_v26, %v10362_v18 }
 0x217   : > { %8426 = vst.msk [vmem:[%s10370_s24 + $0xaf] sm:$0x1] %vm4419_vm2, %v6921_v20  ;;  %8443 = vst.msk [vmem:[%s10370_s24 + $0xf1] sm:$0x1] %vm4419_vm2, %v7043_v21  ;;  %v7066_v48 = vcombine.high %v7050_v40, %v7050_v40  ;;  %v6971_v6 = vcombine.high %v9260_v27, %v9260_v27  ;;  %v6978_v33 = vrot.slane %v9260_v27, %v10362_v18 }
 0x218   : > { %8322 = vst.msk [vmem:[%s10370_s24 + $0xfe] sm:$0x1] %vm4419_vm2, %v6011_v52  ;;  %8447 = vst.msk [vmem:[%s10370_s24 + $0xf9] sm:$0x1] %vm4419_vm2, %v7050_v40  ;;  %v7067_v36 = vcombine.high %v7057_v55, %v7057_v55  ;;  %v5928_v37 = vrot.slane %v5914_v3, %v10362_v18  ;;  %v5929_v9 = vcombine.high %v5921_v17, %v5921_v17 }
 0x219   : > { %8444 = vst.msk [vmem:[%s10370_s24 + $0xf3] sm:$0x1] %vm4419_vm2, %v7057_v55  ;;  %8445 = vst.msk [vmem:[%s10370_s24 + $0xf5] sm:$0x1] %vm4419_vm2, %v7065_v30  ;;  %v5937_v47 = vrot.slane %v5921_v17, %v10362_v18  ;;  %v7068_v14 = vcombine.high %v7064_v32, %v7064_v32  ;;  %v6985_v41 = vrot.slane %v6971_v6, %v10362_v18 }
 0x21a   : > { %8448 = vst.msk [vmem:[%s10370_s24 + $0xfb] sm:$0x1] %vm4419_vm2, %v7064_v32  ;;  %8449 = vst.msk [vmem:[%s10370_s24 + $0xfd] sm:$0x1] %vm4419_vm2, %v7066_v48  ;;  %v6986_v43 = vcombine.high %v6978_v33, %v6978_v33  ;;  %v6994_v44 = vrot.slane %v6978_v33, %v10362_v18  ;;  %v5930_v45 = vcombine.high %v5928_v37, %v5928_v37 }
 0x21b   : > { %8446 = vst.msk [vmem:[%s10370_s24 + $0xf7] sm:$0x1] %vm4419_vm2, %v7067_v36  ;;  %v5944_v51 = vrot.slane %v5928_v37, %v10362_v18  ;;  %v5951_v35 = vrot.slane %v5929_v9, %v10362_v18  ;;  %v5959_v46 = vcombine.high %v5937_v47, %v5937_v47  ;;  %8307 = vst.msk [vmem:[%s10370_s24 + $0xe0] sm:$0x1] %vm4419_vm2, %v5937_v47 }
 0x21c   : > { %8450 = vst.msk [vmem:[%s10370_s24 + $0xff] sm:$0x1] %vm4419_vm2, %v7068_v14  ;;  %v6987_v53 = vcombine.high %v6985_v41, %v6985_v41  ;;  %v7001_v57 = vrot.slane %v6985_v41, %v10362_v18  ;;  %v7008_v0 = vrot.slane %v6986_v43, %v10362_v18  ;;  %v7016_v54 = vcombine.high %v6994_v44, %v6994_v44 }
 0x21d   : > { %8435 = vst.msk [vmem:[%s10370_s24 + $0xe1] sm:$0x1] %vm4419_vm2, %v6994_v44  ;;  %v5958_v56 = vrot.slane %v5930_v45, %v10362_v18  ;;  %v5960_v58 = vcombine.high %v5944_v51, %v5944_v51  ;;  %v5961_v59 = vcombine.high %v5951_v35, %v5951_v35  ;;  %8308 = vst.msk [vmem:[%s10370_s24 + $0xe2] sm:$0x1] %vm4419_vm2, %v5951_v35 }
 0x21e   : > { %8309 = vst.msk [vmem:[%s10370_s24 + $0xe4] sm:$0x1] %vm4419_vm2, %v5959_v46  ;;  %8311 = vst.msk [vmem:[%s10370_s24 + $0xe8] sm:$0x1] %vm4419_vm2, %v5944_v51  ;;  %v9245_v42 = vadd.f32 %v11538_v22, %v11287_v23  ;;  %v7015_v61 = vrot.slane %v6987_v53, %v10362_v18  ;;  %v7017_v63 = vcombine.high %v7001_v57, %v7001_v57 }
 0x21f   : > { %v7018_v62 = vcombine.high %v7008_v0, %v7008_v0  ;;  %8436 = vst.msk [vmem:[%s10370_s24 + $0xe3] sm:$0x1] %vm4419_vm2, %v7008_v0  ;;  %8437 = vst.msk [vmem:[%s10370_s24 + $0xe5] sm:$0x1] %vm4419_vm2, %v7016_v54  ;;  %v9261_v1 = vadd.f32 %v11538_v22, %v11289_v24  ;;  %v5962_v4 = vcombine.high %v5958_v56, %v5958_v56 }
 0x220   : > { %8439 = vst.msk [vmem:[%s10370_s24 + $0xe9] sm:$0x1] %vm4419_vm2, %v7001_v57  ;;  %8310 = vst.msk [vmem:[%s10370_s24 + $0xe6] sm:$0x1] %vm4419_vm2, %v5961_v59  ;;  %v6061_v23 = vcombine.high %v9245_v42, %v9245_v42  ;;  %v6068_v8 = vrot.slane %v9245_v42, %v10362_v18  ;;  %v9246_v10 = vadd.f32 %v11538_v22, %v11295_v28 }
 0x221   : > { %8312 = vst.msk [vmem:[%s10370_s24 + $0xea] sm:$0x1] %vm4419_vm2, %v5958_v56  ;;  %8313 = vst.msk [vmem:[%s10370_s24 + $0xec] sm:$0x1] %vm4419_vm2, %v5960_v58  ;;  %v7019_v11 = vcombine.high %v7015_v61, %v7015_v61  ;;  %v7118_v24 = vcombine.high %v9261_v1, %v9261_v1  ;;  %v7125_v15 = vrot.slane %v9261_v1, %v10362_v18 }
 0x222   : > { %8438 = vst.msk [vmem:[%s10370_s24 + $0xe7] sm:$0x1] %vm4419_vm2, %v7018_v62  ;;  %8440 = vst.msk [vmem:[%s10370_s24 + $0xeb] sm:$0x1] %vm4419_vm2, %v7015_v61  ;;  %v9262_v19 = vadd.f32 %v11538_v22, %v11297_v29  ;;  %v6075_v20 = vrot.slane %v6061_v23, %v10362_v18  ;;  %v6076_v16 = vcombine.high %v6068_v8, %v6068_v8 }
 0x223   : > { %8441 = vst.msk [vmem:[%s10370_s24 + $0xed] sm:$0x1] %vm4419_vm2, %v7017_v63  ;;  %8314 = vst.msk [vmem:[%s10370_s24 + $0xee] sm:$0x1] %vm4419_vm2, %v5962_v4  ;;  %v6084_v28 = vrot.slane %v6068_v8, %v10362_v18  ;;  %v6012_v21 = vcombine.high %v9246_v10, %v9246_v10  ;;  %v7132_v25 = vrot.slane %v7118_v24, %v10362_v18 }
 0x224   : > { %8442 = vst.msk [vmem:[%s10370_s24 + $0xef] sm:$0x1] %vm4419_vm2, %v7019_v11  ;;  %v7133_v52 = vcombine.high %v7125_v15, %v7125_v15  ;;  %v7141_v26 = vrot.slane %v7125_v15, %v10362_v18  ;;  %v6019_v29 = vrot.slane %v9246_v10, %v10362_v18  ;;  %v6077_v40 = vcombine.high %v6075_v20, %v6075_v20 }
 0x225   : > { %v6091_v27 = vrot.slane %v6075_v20, %v10362_v18  ;;  %v6098_v55 = vrot.slane %v6076_v16, %v10362_v18  ;;  %v6106_v30 = vcombine.high %v6084_v28, %v6084_v28  ;;  %8331 = vst.msk [vmem:[%s10370_s24 + $0x130] sm:$0x1] %vm4419_vm2, %v6084_v28  ;;  %v7134_v3 = vcombine.high %v7132_v25, %v7132_v25 }
 0x226   : > { %v7148_v17 = vrot.slane %v7132_v25, %v10362_v18  ;;  %v7155_v32 = vrot.slane %v7133_v52, %v10362_v18  ;;  %v7163_v48 = vcombine.high %v7141_v26, %v7141_v26  ;;  %8459 = vst.msk [vmem:[%s10370_s24 + $0x131] sm:$0x1] %vm4419_vm2, %v7141_v26  ;;  %v6105_v6 = vrot.slane %v6077_v40, %v10362_v18 }
 0x227   : > { %v6107_v33 = vcombine.high %v6091_v27, %v6091_v27  ;;  %v6108_v36 = vcombine.high %v6098_v55, %v6098_v55  ;;  %8332 = vst.msk [vmem:[%s10370_s24 + $0x132] sm:$0x1] %vm4419_vm2, %v6098_v55  ;;  %8333 = vst.msk [vmem:[%s10370_s24 + $0x134] sm:$0x1] %vm4419_vm2, %v6106_v30  ;;  %v6026_v37 = vrot.slane %v6012_v21, %v10362_v18 }
 0x228   : > { %8335 = vst.msk [vmem:[%s10370_s24 + $0x138] sm:$0x1] %vm4419_vm2, %v6091_v27  ;;  %v7162_v9 = vrot.slane %v7134_v3, %v10362_v18  ;;  %v7164_v47 = vcombine.high %v7148_v17, %v7148_v17  ;;  %v7165_v14 = vcombine.high %v7155_v32, %v7155_v32  ;;  %8460 = vst.msk [vmem:[%s10370_s24 + $0x133] sm:$0x1] %vm4419_vm2, %v7155_v32 }
 0x229   : > { %8461 = vst.msk [vmem:[%s10370_s24 + $0x135] sm:$0x1] %vm4419_vm2, %v7163_v48  ;;  %8463 = vst.msk [vmem:[%s10370_s24 + $0x139] sm:$0x1] %vm4419_vm2, %v7148_v17  ;;  %v6027_v41 = vcombine.high %v6019_v29, %v6019_v29  ;;  %v6109_v43 = vcombine.high %v6105_v6, %v6105_v6  ;;  %v6028_v44 = vcombine.high %v6026_v37, %v6026_v37 }
 0x22a   : > { %8334 = vst.msk [vmem:[%s10370_s24 + $0x136] sm:$0x1] %vm4419_vm2, %v6108_v36  ;;  %8336 = vst.msk [vmem:[%s10370_s24 + $0x13a] sm:$0x1] %vm4419_vm2, %v6105_v6  ;;  %v6035_v45 = vrot.slane %v6019_v29, %v10362_v18  ;;  %v6042_v51 = vrot.slane %v6026_v37, %v10362_v18  ;;  %v7166_v35 = vcombine.high %v7162_v9, %v7162_v9 }
 0x22b   : > { %8337 = vst.msk [vmem:[%s10370_s24 + $0x13c] sm:$0x1] %vm4419_vm2, %v6107_v33  ;;  %8462 = vst.msk [vmem:[%s10370_s24 + $0x137] sm:$0x1] %vm4419_vm2, %v7165_v14  ;;  %v6049_v46 = vrot.slane %v6027_v41, %v10362_v18  ;;  %v7069_v53 = vcombine.high %v9262_v19, %v9262_v19  ;;  %v7076_v57 = vrot.slane %v9262_v19, %v10362_v18 }
 0x22c   : > { %8464 = vst.msk [vmem:[%s10370_s24 + $0x13b] sm:$0x1] %vm4419_vm2, %v7162_v9  ;;  %8465 = vst.msk [vmem:[%s10370_s24 + $0x13d] sm:$0x1] %vm4419_vm2, %v7164_v47  ;;  %v6056_v0 = vrot.slane %v6028_v44, %v10362_v18  ;;  %v6057_v54 = vcombine.high %v6035_v45, %v6035_v45  ;;  %v6058_v56 = vcombine.high %v6042_v51, %v6042_v51 }
 0x22d   : > { %8338 = vst.msk [vmem:[%s10370_s24 + $0x13e] sm:$0x1] %vm4419_vm2, %v6109_v43  ;;  %8323 = vst.msk [vmem:[%s10370_s24 + $0x120] sm:$0x1] %vm4419_vm2, %v6035_v45  ;;  %v9247_v58 = vadd.f32 %v11538_v22, %v11316_v38  ;;  %v6059_v59 = vcombine.high %v6049_v46, %v6049_v46  ;;  %v7083_v42 = vrot.slane %v7069_v53, %v10362_v18 }
 0x22e   : > { %8327 = vst.msk [vmem:[%s10370_s24 + $0x128] sm:$0x1] %vm4419_vm2, %v6042_v51  ;;  %8466 = vst.msk [vmem:[%s10370_s24 + $0x13f] sm:$0x1] %vm4419_vm2, %v7166_v35  ;;  %v7084_v61 = vcombine.high %v7076_v57, %v7076_v57  ;;  %v7092_v63 = vrot.slane %v7076_v57, %v10362_v18  ;;  %v6060_v62 = vcombine.high %v6056_v0, %v6056_v0 }
 0x22f   : > { %8324 = vst.msk [vmem:[%s10370_s24 + $0x122] sm:$0x1] %vm4419_vm2, %v6049_v46  ;;  %8325 = vst.msk [vmem:[%s10370_s24 + $0x124] sm:$0x1] %vm4419_vm2, %v6057_v54  ;;  %v6159_v38 = vcombine.high %v9247_v58, %v9247_v58  ;;  %v6166_v1 = vrot.slane %v9247_v58, %v10362_v18  ;;  %v9263_v4 = vadd.f32 %v11538_v22, %v11318_v39 }
 0x230   : > { %8328 = vst.msk [vmem:[%s10370_s24 + $0x12a] sm:$0x1] %vm4419_vm2, %v6056_v0  ;;  %8329 = vst.msk [vmem:[%s10370_s24 + $0x12c] sm:$0x1] %vm4419_vm2, %v6058_v56  ;;  %v7085_v23 = vcombine.high %v7083_v42, %v7083_v42  ;;  %v7099_v8 = vrot.slane %v7083_v42, %v10362_v18  ;;  %v7106_v10 = vrot.slane %v7084_v61, %v10362_v18 }
 0x231   : > { %8326 = vst.msk [vmem:[%s10370_s24 + $0x126] sm:$0x1] %vm4419_vm2, %v6059_v59  ;;  %v7114_v11 = vcombine.high %v7092_v63, %v7092_v63  ;;  %8451 = vst.msk [vmem:[%s10370_s24 + $0x121] sm:$0x1] %vm4419_vm2, %v7092_v63  ;;  %v6173_v24 = vrot.slane %v6159_v38, %v10362_v18  ;;  %v6174_v15 = vcombine.high %v6166_v1, %v6166_v1 }
 0x232   : > { %8330 = vst.msk [vmem:[%s10370_s24 + $0x12e] sm:$0x1] %vm4419_vm2, %v6060_v62  ;;  %v6182_v39 = vrot.slane %v6166_v1, %v10362_v18  ;;  %v7216_v19 = vcombine.high %v9263_v4, %v9263_v4  ;;  %v7113_v20 = vrot.slane %v7085_v23, %v10362_v18  ;;  %v7115_v16 = vcombine.high %v7099_v8, %v7099_v8 }
 0x233   : > { %v7116_v28 = vcombine.high %v7106_v10, %v7106_v10  ;;  %8452 = vst.msk [vmem:[%s10370_s24 + $0x123] sm:$0x1] %vm4419_vm2, %v7106_v10  ;;  %8453 = vst.msk [vmem:[%s10370_s24 + $0x125] sm:$0x1] %vm4419_vm2, %v7114_v11  ;;  %v7223_v21 = vrot.slane %v9263_v4, %v10362_v18  ;;  %v6175_v25 = vcombine.high %v6173_v24, %v6173_v24 }
 0x234   : > { %8455 = vst.msk [vmem:[%s10370_s24 + $0x129] sm:$0x1] %vm4419_vm2, %v7099_v8  ;;  %v6189_v52 = vrot.slane %v6173_v24, %v10362_v18  ;;  %v6196_v26 = vrot.slane %v6174_v15, %v10362_v18  ;;  %v6204_v29 = vcombine.high %v6182_v39, %v6182_v39  ;;  %8347 = vst.msk [vmem:[%s10370_s24 + $0x170] sm:$0x1] %vm4419_vm2, %v6182_v39 }
 0x235   : > { %v7117_v40 = vcombine.high %v7113_v20, %v7113_v20  ;;  %8454 = vst.msk [vmem:[%s10370_s24 + $0x127] sm:$0x1] %vm4419_vm2, %v7116_v28  ;;  %8456 = vst.msk [vmem:[%s10370_s24 + $0x12b] sm:$0x1] %vm4419_vm2, %v7113_v20  ;;  %v7230_v27 = vrot.slane %v7216_v19, %v10362_v18  ;;  %v7231_v55 = vcombine.high %v7223_v21, %v7223_v21 }
 0x236   : > { %8457 = vst.msk [vmem:[%s10370_s24 + $0x12d] sm:$0x1] %vm4419_vm2, %v7115_v16  ;;  %v7239_v30 = vrot.slane %v7223_v21, %v10362_v18  ;;  %v6203_v3 = vrot.slane %v6175_v25, %v10362_v18  ;;  %v6205_v17 = vcombine.high %v6189_v52, %v6189_v52  ;;  %v6206_v32 = vcombine.high %v6196_v26, %v6196_v26 }
 0x237   : > { %8348 = vst.msk [vmem:[%s10370_s24 + $0x172] sm:$0x1] %vm4419_vm2, %v6196_v26  ;;  %8349 = vst.msk [vmem:[%s10370_s24 + $0x174] sm:$0x1] %vm4419_vm2, %v6204_v29  ;;  %v9248_v48 = vadd.f32 %v11538_v22, %v11324_v49  ;;  %v7232_v6 = vcombine.high %v7230_v27, %v7230_v27  ;;  %v7246_v33 = vrot.slane %v7230_v27, %v10362_v18 }
 0x238   : > { %8351 = vst.msk [vmem:[%s10370_s24 + $0x178] sm:$0x1] %vm4419_vm2, %v6189_v52  ;;  %8458 = vst.msk [vmem:[%s10370_s24 + $0x12f] sm:$0x1] %vm4419_vm2, %v7117_v40  ;;  %v7253_v36 = vrot.slane %v7231_v55, %v10362_v18  ;;  %v7261_v37 = vcombine.high %v7239_v30, %v7239_v30  ;;  %v6207_v9 = vcombine.high %v6203_v3, %v6203_v3 }
 0x239   : > { %8475 = vst.msk [vmem:[%s10370_s24 + $0x171] sm:$0x1] %vm4419_vm2, %v7239_v30  ;;  %8350 = vst.msk [vmem:[%s10370_s24 + $0x176] sm:$0x1] %vm4419_vm2, %v6206_v32  ;;  %v6110_v49 = vcombine.high %v9248_v48, %v9248_v48  ;;  %v6117_v47 = vrot.slane %v9248_v48, %v10362_v18  ;;  %v9264_v14 = vadd.f32 %v11538_v22, %v11326_v50 }
 0x23a   : > { %8352 = vst.msk [vmem:[%s10370_s24 + $0x17a] sm:$0x1] %vm4419_vm2, %v6203_v3  ;;  %8353 = vst.msk [vmem:[%s10370_s24 + $0x17c] sm:$0x1] %vm4419_vm2, %v6205_v17  ;;  %v7260_v41 = vrot.slane %v7232_v6, %v10362_v18  ;;  %v7262_v43 = vcombine.high %v7246_v33, %v7246_v33  ;;  %v7263_v44 = vcombine.high %v7253_v36, %v7253_v36 }
 0x23b   : > { %8476 = vst.msk [vmem:[%s10370_s24 + $0x173] sm:$0x1] %vm4419_vm2, %v7253_v36  ;;  %8477 = vst.msk [vmem:[%s10370_s24 + $0x175] sm:$0x1] %vm4419_vm2, %v7261_v37  ;;  %v9249_v45 = vadd.f32 %v11538_v22, %v11350_v2  ;;  %v6124_v51 = vrot.slane %v6110_v49, %v10362_v18  ;;  %v6125_v50 = vcombine.high %v6117_v47, %v6117_v47 }
 0x23c   : > { %8479 = vst.msk [vmem:[%s10370_s24 + $0x179] sm:$0x1] %vm4419_vm2, %v7246_v33  ;;  %8354 = vst.msk [vmem:[%s10370_s24 + $0x17e] sm:$0x1] %vm4419_vm2, %v6207_v9  ;;  %v6133_v35 = vrot.slane %v6117_v47, %v10362_v18  ;;  %v7167_v46 = vcombine.high %v9264_v14, %v9264_v14  ;;  %v7264_v53 = vcombine.high %v7260_v41, %v7260_v41 }
 0x23d   : > { %8478 = vst.msk [vmem:[%s10370_s24 + $0x177] sm:$0x1] %vm4419_vm2, %v7263_v44  ;;  %8480 = vst.msk [vmem:[%s10370_s24 + $0x17b] sm:$0x1] %vm4419_vm2, %v7260_v41  ;;  %v7174_v57 = vrot.slane %v9264_v14, %v10362_v18  ;;  %v6257_v2 = vcombine.high %v9249_v45, %v9249_v45  ;;  %v6264_v0 = vrot.slane %v9249_v45, %v10362_v18 }
 0x23e   : > { %8481 = vst.msk [vmem:[%s10370_s24 + $0x17d] sm:$0x1] %vm4419_vm2, %v7262_v43  ;;  %v6126_v54 = vcombine.high %v6124_v51, %v6124_v51  ;;  %v6140_v56 = vrot.slane %v6124_v51, %v10362_v18  ;;  %v6147_v58 = vrot.slane %v6125_v50, %v10362_v18  ;;  %v6155_v59 = vcombine.high %v6133_v35, %v6133_v35 }
 0x23f   : > { %8339 = vst.msk [vmem:[%s10370_s24 + $0x160] sm:$0x1] %vm4419_vm2, %v6133_v35  ;;  %8482 = vst.msk [vmem:[%s10370_s24 + $0x17f] sm:$0x1] %vm4419_vm2, %v7264_v53  ;;  %v7181_v42 = vrot.slane %v7167_v46, %v10362_v18  ;;  %v7182_v61 = vcombine.high %v7174_v57, %v7174_v57  ;;  %v7190_v63 = vrot.slane %v7174_v57, %v10362_v18 }
 0x240   : > { %v6271_v62 = vrot.slane %v6257_v2, %v10362_v18  ;;  %v6154_v38 = vrot.slane %v6126_v54, %v10362_v18  ;;  %v6156_v1 = vcombine.high %v6140_v56, %v6140_v56  ;;  %v6157_v4 = vcombine.high %v6147_v58, %v6147_v58  ;;  %8340 = vst.msk [vmem:[%s10370_s24 + $0x162] sm:$0x1] %vm4419_vm2, %v6147_v58 }
 0x241   : > { %8341 = vst.msk [vmem:[%s10370_s24 + $0x164] sm:$0x1] %vm4419_vm2, %v6155_v59  ;;  %8343 = vst.msk [vmem:[%s10370_s24 + $0x168] sm:$0x1] %vm4419_vm2, %v6140_v56  ;;  %v6272_v23 = vcombine.high %v6264_v0, %v6264_v0  ;;  %v7183_v8 = vcombine.high %v7181_v42, %v7181_v42  ;;  %v7197_v10 = vrot.slane %v7181_v42, %v10362_v18 }
 0x242   : > { %v7204_v11 = vrot.slane %v7182_v61, %v10362_v18  ;;  %v7212_v24 = vcombine.high %v7190_v63, %v7190_v63  ;;  %8467 = vst.msk [vmem:[%s10370_s24 + $0x161] sm:$0x1] %vm4419_vm2, %v7190_v63  ;;  %v6158_v15 = vcombine.high %v6154_v38, %v6154_v38  ;;  %8342 = vst.msk [vmem:[%s10370_s24 + $0x166] sm:$0x1] %vm4419_vm2, %v6157_v4 }
 0x243   : > { %8344 = vst.msk [vmem:[%s10370_s24 + $0x16a] sm:$0x1] %vm4419_vm2, %v6154_v38  ;;  %8345 = vst.msk [vmem:[%s10370_s24 + $0x16c] sm:$0x1] %vm4419_vm2, %v6156_v1  ;;  %v6273_v39 = vcombine.high %v6271_v62, %v6271_v62  ;;  %v6280_v19 = vrot.slane %v6264_v0, %v10362_v18  ;;  %v6287_v20 = vrot.slane %v6271_v62, %v10362_v18 }
 0x244   : > { %v7211_v16 = vrot.slane %v7183_v8, %v10362_v18  ;;  %v7213_v28 = vcombine.high %v7197_v10, %v7197_v10  ;;  %v7214_v21 = vcombine.high %v7204_v11, %v7204_v11  ;;  %8468 = vst.msk [vmem:[%s10370_s24 + $0x163] sm:$0x1] %vm4419_vm2, %v7204_v11  ;;  %8469 = vst.msk [vmem:[%s10370_s24 + $0x165] sm:$0x1] %vm4419_vm2, %v7212_v24 }
 0x245   : > { %8471 = vst.msk [vmem:[%s10370_s24 + $0x169] sm:$0x1] %vm4419_vm2, %v7197_v10  ;;  %v6294_v25 = vrot.slane %v6272_v23, %v10362_v18  ;;  %8346 = vst.msk [vmem:[%s10370_s24 + $0x16e] sm:$0x1] %vm4419_vm2, %v6158_v15  ;;  %v6301_v52 = vrot.slane %v6273_v39, %v10362_v18  ;;  %v6302_v26 = vcombine.high %v6280_v19, %v6280_v19 }
 0x246   : > { %v6303_v29 = vcombine.high %v6287_v20, %v6287_v20  ;;  %8363 = vst.msk [vmem:[%s10370_s24 + $0x1b0] sm:$0x1] %vm4419_vm2, %v6280_v19  ;;  %8367 = vst.msk [vmem:[%s10370_s24 + $0x1b8] sm:$0x1] %vm4419_vm2, %v6287_v20  ;;  %v9265_v40 = vadd.f32 %v11538_v22, %v11352_v5  ;;  %v7215_v27 = vcombine.high %v7211_v16, %v7211_v16 }
 0x247   : > { %8470 = vst.msk [vmem:[%s10370_s24 + $0x167] sm:$0x1] %vm4419_vm2, %v7214_v21  ;;  %8472 = vst.msk [vmem:[%s10370_s24 + $0x16b] sm:$0x1] %vm4419_vm2, %v7211_v16  ;;  %v6304_v55 = vcombine.high %v6294_v25, %v6294_v25  ;;  %v9250_v30 = vadd.f32 %v11538_v22, %v11364_v12  ;;  %v9266_v3 = vadd.f32 %v11538_v22, %v11366_v13 }
 0x248   : > { %8473 = vst.msk [vmem:[%s10370_s24 + $0x16d] sm:$0x1] %vm4419_vm2, %v7213_v28  ;;  %8364 = vst.msk [vmem:[%s10370_s24 + $0x1b2] sm:$0x1] %vm4419_vm2, %v6294_v25  ;;  %v6305_v5 = vcombine.high %v6301_v52, %v6301_v52  ;;  %v7314_v17 = vcombine.high %v9265_v40, %v9265_v40  ;;  %v7321_v32 = vrot.slane %v9265_v40, %v10362_v18 }
 0x249   : > { %8365 = vst.msk [vmem:[%s10370_s24 + $0x1b4] sm:$0x1] %vm4419_vm2, %v6302_v26  ;;  %8368 = vst.msk [vmem:[%s10370_s24 + $0x1ba] sm:$0x1] %vm4419_vm2, %v6301_v52  ;;  %v9251_v48 = vadd.f32 %v11538_v22, %v11390_v60  ;;  %v6208_v12 = vcombine.high %v9250_v30, %v9250_v30  ;;  %v6215_v13 = vrot.slane %v9250_v30, %v10362_v18 }
 0x24a   : > { %8369 = vst.msk [vmem:[%s10370_s24 + $0x1bc] sm:$0x1] %vm4419_vm2, %v6303_v29  ;;  %8474 = vst.msk [vmem:[%s10370_s24 + $0x16f] sm:$0x1] %vm4419_vm2, %v7215_v27  ;;  %v7265_v6 = vcombine.high %v9266_v3, %v9266_v3  ;;  %v7272_v33 = vrot.slane %v9266_v3, %v10362_v18  ;;  %v7328_v36 = vrot.slane %v7314_v17, %v10362_v18 }
 0x24b   : > { %8366 = vst.msk [vmem:[%s10370_s24 + $0x1b6] sm:$0x1] %vm4419_vm2, %v6304_v55  ;;  %8370 = vst.msk [vmem:[%s10370_s24 + $0x1be] sm:$0x1] %vm4419_vm2, %v6305_v5  ;;  %v7329_v37 = vcombine.high %v7321_v32, %v7321_v32  ;;  %v7337_v9 = vrot.slane %v7321_v32, %v10362_v18  ;;  %v6355_v60 = vcombine.high %v9251_v48, %v9251_v48 }
 0x24c   : > { %v6222_v49 = vrot.slane %v6208_v12, %v10362_v18  ;;  %v6223_v47 = vcombine.high %v6215_v13, %v6215_v13  ;;  %v6231_v14 = vrot.slane %v6215_v13, %v10362_v18  ;;  %v7279_v41 = vrot.slane %v7265_v6, %v10362_v18 }
 0x24d   : > { %v7330_v43 = vcombine.high %v7328_v36, %v7328_v36  ;;  %v7344_v44 = vrot.slane %v7328_v36, %v10362_v18  ;;  %v7351_v45 = vrot.slane %v7329_v37, %v10362_v18  ;;  %v7359_v51 = vcombine.high %v7337_v9, %v7337_v9  ;;  %8491 = vst.msk [vmem:[%s10370_s24 + $0x1b1] sm:$0x1] %vm4419_vm2, %v7337_v9 }
 0x24e   : > { %v6224_v50 = vcombine.high %v6222_v49, %v6222_v49  ;;  %v6238_v35 = vrot.slane %v6222_v49, %v10362_v18  ;;  %v6245_v46 = vrot.slane %v6223_v47, %v10362_v18  ;;  %v6253_v53 = vcombine.high %v6231_v14, %v6231_v14  ;;  %8355 = vst.msk [vmem:[%s10370_s24 + $0x1a0] sm:$0x1] %vm4419_vm2, %v6231_v14 }
 0x24f   : > { %v7358_v57 = vrot.slane %v7330_v43, %v10362_v18  ;;  %v7360_v2 = vcombine.high %v7344_v44, %v7344_v44  ;;  %v7361_v0 = vcombine.high %v7351_v45, %v7351_v45  ;;  %8492 = vst.msk [vmem:[%s10370_s24 + $0x1b3] sm:$0x1] %vm4419_vm2, %v7351_v45  ;;  %8493 = vst.msk [vmem:[%s10370_s24 + $0x1b5] sm:$0x1] %vm4419_vm2, %v7359_v51 }
 0x250   : > { %8495 = vst.msk [vmem:[%s10370_s24 + $0x1b9] sm:$0x1] %vm4419_vm2, %v7344_v44  ;;  %v7280_v54 = vcombine.high %v7272_v33, %v7272_v33  ;;  %v6252_v56 = vrot.slane %v6224_v50, %v10362_v18  ;;  %v6254_v58 = vcombine.high %v6238_v35, %v6238_v35  ;;  %v6255_v59 = vcombine.high %v6245_v46, %v6245_v46 }
 0x251   : > { %8356 = vst.msk [vmem:[%s10370_s24 + $0x1a2] sm:$0x1] %vm4419_vm2, %v6245_v46  ;;  %8357 = vst.msk [vmem:[%s10370_s24 + $0x1a4] sm:$0x1] %vm4419_vm2, %v6253_v53  ;;  %v7281_v42 = vcombine.high %v7279_v41, %v7279_v41  ;;  %v7362_v61 = vcombine.high %v7358_v57, %v7358_v57  ;;  %v7288_v63 = vrot.slane %v7272_v33, %v10362_v18 }
 0x252   : > { %8359 = vst.msk [vmem:[%s10370_s24 + $0x1a8] sm:$0x1] %vm4419_vm2, %v6238_v35  ;;  %8494 = vst.msk [vmem:[%s10370_s24 + $0x1b7] sm:$0x1] %vm4419_vm2, %v7361_v0  ;;  %v7295_v62 = vrot.slane %v7279_v41, %v10362_v18  ;;  %v7302_v38 = vrot.slane %v7280_v54, %v10362_v18  ;;  %v6256_v1 = vcombine.high %v6252_v56, %v6252_v56 }
 0x253   : > { %8496 = vst.msk [vmem:[%s10370_s24 + $0x1bb] sm:$0x1] %vm4419_vm2, %v7358_v57  ;;  %8497 = vst.msk [vmem:[%s10370_s24 + $0x1bd] sm:$0x1] %vm4419_vm2, %v7360_v2  ;;  %v7309_v4 = vrot.slane %v7281_v42, %v10362_v18  ;;  %v6362_v23 = vrot.slane %v9251_v48, %v10362_v18  ;;  %v6369_v8 = vrot.slane %v6355_v60, %v10362_v18 }
 0x254   : > { %8358 = vst.msk [vmem:[%s10370_s24 + $0x1a6] sm:$0x1] %vm4419_vm2, %v6255_v59  ;;  %8360 = vst.msk [vmem:[%s10370_s24 + $0x1aa] sm:$0x1] %vm4419_vm2, %v6252_v56  ;;  %v7310_v10 = vcombine.high %v7288_v63, %v7288_v63  ;;  %v7311_v11 = vcombine.high %v7295_v62, %v7295_v62  ;;  %v7312_v24 = vcombine.high %v7302_v38, %v7302_v38 }
 0x255   : > { %8361 = vst.msk [vmem:[%s10370_s24 + $0x1ac] sm:$0x1] %vm4419_vm2, %v6254_v58  ;;  %8498 = vst.msk [vmem:[%s10370_s24 + $0x1bf] sm:$0x1] %vm4419_vm2, %v7362_v61  ;;  %v9267_v15 = vadd.f32 %v11538_v22, %v11392_v31  ;;  %v7313_v39 = vcombine.high %v7309_v4, %v7309_v4  ;;  %v6370_v19 = vcombine.high %v6362_v23, %v6362_v23 }
 0x256   : > { %8483 = vst.msk [vmem:[%s10370_s24 + $0x1a1] sm:$0x1] %vm4419_vm2, %v7288_v63  ;;  %8484 = vst.msk [vmem:[%s10370_s24 + $0x1a3] sm:$0x1] %vm4419_vm2, %v7302_v38  ;;  %v6371_v20 = vcombine.high %v6369_v8, %v6369_v8  ;;  %v6378_v16 = vrot.slane %v6362_v23, %v10362_v18  ;;  %v6385_v28 = vrot.slane %v6369_v8, %v10362_v18 }
 0x257   : > { %8487 = vst.msk [vmem:[%s10370_s24 + $0x1a9] sm:$0x1] %vm4419_vm2, %v7295_v62  ;;  %8362 = vst.msk [vmem:[%s10370_s24 + $0x1ae] sm:$0x1] %vm4419_vm2, %v6256_v1  ;;  %v7412_v31 = vcombine.high %v9267_v15, %v9267_v15  ;;  %v7419_v21 = vrot.slane %v9267_v15, %v10362_v18  ;;  %v9252_v25 = vadd.f32 %v11538_v22, %v11404_v34 }
 0x258   : > { %8488 = vst.msk [vmem:[%s10370_s24 + $0x1ab] sm:$0x1] %vm4419_vm2, %v7309_v4  ;;  %8485 = vst.msk [vmem:[%s10370_s24 + $0x1a5] sm:$0x1] %vm4419_vm2, %v7310_v10  ;;  %v6392_v52 = vrot.slane %v6370_v19, %v10362_v18  ;;  %v6399_v26 = vrot.slane %v6371_v20, %v10362_v18  ;;  %v6400_v29 = vcombine.high %v6378_v16, %v6378_v16 }
 0x259   : > { %8486 = vst.msk [vmem:[%s10370_s24 + $0x1a7] sm:$0x1] %vm4419_vm2, %v7312_v24  ;;  %8489 = vst.msk [vmem:[%s10370_s24 + $0x1ad] sm:$0x1] %vm4419_vm2, %v7311_v11  ;;  %v9268_v40 = vadd.f32 %v11538_v22, %v11406_v7  ;;  %v6401_v27 = vcombine.high %v6385_v28, %v6385_v28  ;;  %v7426_v34 = vrot.slane %v7412_v31, %v10362_v18 }
 0x25a   : > { %8490 = vst.msk [vmem:[%s10370_s24 + $0x1af] sm:$0x1] %vm4419_vm2, %v7313_v39  ;;  %8379 = vst.msk [vmem:[%s10370_s24 + $0x1f0] sm:$0x1] %vm4419_vm2, %v6378_v16  ;;  %v7427_v55 = vcombine.high %v7419_v21, %v7419_v21  ;;  %v7435_v30 = vrot.slane %v7419_v21, %v10362_v18  ;;  %v6402_v3 = vcombine.high %v6392_v52, %v6392_v52 }
 0x25b   : > { %8383 = vst.msk [vmem:[%s10370_s24 + $0x1f8] sm:$0x1] %vm4419_vm2, %v6385_v28  ;;  %v6403_v5 = vcombine.high %v6399_v26, %v6399_v26  ;;  %8380 = vst.msk [vmem:[%s10370_s24 + $0x1f2] sm:$0x1] %vm4419_vm2, %v6392_v52  ;;  %v6306_v7 = vcombine.high %v9252_v25, %v9252_v25  ;;  %v6313_v22 = vrot.slane %v9252_v25, %v10362_v18 }
 0x25c   : > { %8381 = vst.msk [vmem:[%s10370_s24 + $0x1f4] sm:$0x1] %vm4419_vm2, %v6400_v29  ;;  %8384 = vst.msk [vmem:[%s10370_s24 + $0x1fa] sm:$0x1] %vm4419_vm2, %v6399_v26  ;;  %v7428_v17 = vcombine.high %v7426_v34, %v7426_v34  ;;  %v7442_v32 = vrot.slane %v7426_v34, %v10362_v18  ;;  %v7449_v48 = vrot.slane %v7427_v55, %v10362_v18 }
 0x25d   : > { %8385 = vst.msk [vmem:[%s10370_s24 + $0x1fc] sm:$0x1] %vm4419_vm2, %v6401_v27  ;;  %v7457_v12 = vcombine.high %v7435_v30, %v7435_v30  ;;  %8507 = vst.msk [vmem:[%s10370_s24 + $0x1f1] sm:$0x1] %vm4419_vm2, %v7435_v30  ;;  %v6320_v13 = vrot.slane %v6306_v7, %v10362_v18  ;;  %v6321_v6 = vcombine.high %v6313_v22, %v6313_v22 }
 0x25e   : > { %8382 = vst.msk [vmem:[%s10370_s24 + $0x1f6] sm:$0x1] %vm4419_vm2, %v6402_v3  ;;  %8386 = vst.msk [vmem:[%s10370_s24 + $0x1fe] sm:$0x1] %vm4419_vm2, %v6403_v5  ;;  %v6329_v33 = vrot.slane %v6313_v22, %v10362_v18  ;;  %v7363_v36 = vcombine.high %v9268_v40, %v9268_v40  ;;  %v7456_v37 = vrot.slane %v7428_v17, %v10362_v18 }
 0x25f   : > { %v7458_v9 = vcombine.high %v7442_v32, %v7442_v32  ;;  %v7459_v60 = vcombine.high %v7449_v48, %v7449_v48  ;;  %8508 = vst.msk [vmem:[%s10370_s24 + $0x1f3] sm:$0x1] %vm4419_vm2, %v7449_v48  ;;  %8509 = vst.msk [vmem:[%s10370_s24 + $0x1f5] sm:$0x1] %vm4419_vm2, %v7457_v12  ;;  %v7370_v49 = vrot.slane %v9268_v40, %v10362_v18 }
 0x260   : > { %8511 = vst.msk [vmem:[%s10370_s24 + $0x1f9] sm:$0x1] %vm4419_vm2, %v7442_v32  ;;  %v6322_v47 = vcombine.high %v6320_v13, %v6320_v13  ;;  %v6336_v14 = vrot.slane %v6320_v13, %v10362_v18  ;;  %v6343_v41 = vrot.slane %v6321_v6, %v10362_v18  ;;  %v6351_v43 = vcombine.high %v6329_v33, %v6329_v33 }
 0x261   : > { %8371 = vst.msk [vmem:[%s10370_s24 + $0x1e0] sm:$0x1] %vm4419_vm2, %v6329_v33  ;;  %v7460_v44 = vcombine.high %v7456_v37, %v7456_v37  ;;  %8510 = vst.msk [vmem:[%s10370_s24 + $0x1f7] sm:$0x1] %vm4419_vm2, %v7459_v60  ;;  %v7377_v45 = vrot.slane %v7363_v36, %v10362_v18  ;;  %v7378_v51 = vcombine.high %v7370_v49, %v7370_v49 }
 0x262   : > { %8512 = vst.msk [vmem:[%s10370_s24 + $0x1fb] sm:$0x1] %vm4419_vm2, %v7456_v37  ;;  %8513 = vst.msk [vmem:[%s10370_s24 + $0x1fd] sm:$0x1] %vm4419_vm2, %v7458_v9  ;;  %v7386_v50 = vrot.slane %v7370_v49, %v10362_v18  ;;  %v6350_v35 = vrot.slane %v6322_v47, %v10362_v18  ;;  %v6352_v46 = vcombine.high %v6336_v14, %v6336_v14 }
 0x263   : > { %v6353_v53 = vcombine.high %v6343_v41, %v6343_v41  ;;  %8372 = vst.msk [vmem:[%s10370_s24 + $0x1e2] sm:$0x1] %vm4419_vm2, %v6343_v41  ;;  %8373 = vst.msk [vmem:[%s10370_s24 + $0x1e4] sm:$0x1] %vm4419_vm2, %v6351_v43  ;;  %v7379_v57 = vcombine.high %v7377_v45, %v7377_v45  ;;  %v7393_v2 = vrot.slane %v7377_v45, %v10362_v18 }
 0x264   : > { %8375 = vst.msk [vmem:[%s10370_s24 + $0x1e8] sm:$0x1] %vm4419_vm2, %v6336_v14  ;;  %8514 = vst.msk [vmem:[%s10370_s24 + $0x1ff] sm:$0x1] %vm4419_vm2, %v7460_v44  ;;  %v7400_v0 = vrot.slane %v7378_v51, %v10362_v18  ;;  %v7408_v54 = vcombine.high %v7386_v50, %v7386_v50  ;;  %v6354_v56 = vcombine.high %v6350_v35, %v6350_v35 }
 0x265   : > { %8499 = vst.msk [vmem:[%s10370_s24 + $0x1e1] sm:$0x1] %vm4419_vm2, %v7386_v50  ;;  %8374 = vst.msk [vmem:[%s10370_s24 + $0x1e6] sm:$0x1] %vm4419_vm2, %v6353_v53  ;;  %v7407_v58 = vrot.slane %v7379_v57, %v10362_v18  ;;  %v7409_v59 = vcombine.high %v7393_v2, %v7393_v2 }
 0x266   : > { %8376 = vst.msk [vmem:[%s10370_s24 + $0x1ea] sm:$0x1] %vm4419_vm2, %v6350_v35  ;;  %8377 = vst.msk [vmem:[%s10370_s24 + $0x1ec] sm:$0x1] %vm4419_vm2, %v6352_v46  ;;  %v7410_v42 = vcombine.high %v7400_v0, %v7400_v0 }
 0x267   : > { %8500 = vst.msk [vmem:[%s10370_s24 + $0x1e3] sm:$0x1] %vm4419_vm2, %v7400_v0  ;;  %8501 = vst.msk [vmem:[%s10370_s24 + $0x1e5] sm:$0x1] %vm4419_vm2, %v7408_v54  ;;  %v7411_v61 = vcombine.high %v7407_v58, %v7407_v58 }
 0x268   : > { %8503 = vst.msk [vmem:[%s10370_s24 + $0x1e9] sm:$0x1] %vm4419_vm2, %v7393_v2  ;;  %8378 = vst.msk [vmem:[%s10370_s24 + $0x1ee] sm:$0x1] %vm4419_vm2, %v6354_v56 }
 0x269   : > { %8502 = vst.msk [vmem:[%s10370_s24 + $0x1e7] sm:$0x1] %vm4419_vm2, %v7410_v42  ;;  %8504 = vst.msk [vmem:[%s10370_s24 + $0x1eb] sm:$0x1] %vm4419_vm2, %v7407_v58 }
 0x26a   : > { %8505 = vst.msk [vmem:[%s10370_s24 + $0x1ed] sm:$0x1] %vm4419_vm2, %v7409_v59  ;;  %8506 = vst.msk [vmem:[%s10370_s24 + $0x1ef] sm:$0x1] %vm4419_vm2, %v7411_v61 }
 0x26b PF: > { %s13_s16 = sadd.s32 1, %s9543_s16   ;;  %s12020_s12 = smov %s9535_s14 }
 0x26c   : > { %p10_p7 = scmp.ge.s32.totalorder %s13_s16, 6   ;;  %s12021_s13 = smov %s9539_s15 }
 0x26d   : > { %s12022_s14 = smov %s12025_s17  ;;  %s12023_s15 = smov %s12029_s18 }
 0x26e   :  { %12 = sbr.rel (!%p10_p7) target bundleno = 3 (0x3), region = 87 }

</bundles_post_ra>
